<compile_context>
chip_gen: v5e
topology: v5e:2x2
jax: 0.10.0
libtpu: 0.0.40
codegen_flags: <defaults>
</compile_context>

<pallas_src>
import numpy as np

import jax
import jax.numpy as jnp
from jax import lax
from jax.experimental import pallas as pl
from jax.experimental.pallas import tpu as pltpu


# ---------------------------------------------------------------------------
# Fused whole-network kernel
# ---------------------------------------------------------------------------
def _conv_block(a, sel_ref, m_ref, bias_ref):
    """One Conv5x5/stride2 + folded-BN + ReLU on a channels-last 2-D slab.

    a:        (H, W*Cin)          activation for one sample.
    sel_ref:  (5, OH, H)          0/1 row-gather matrices (rows i, i+2, ...).
    m_ref:    (5, W*Cin, OW*Cout) banded weight matrices (BN scale folded in).
    bias_ref: (1, OW*Cout)        folded conv+BN bias.
    returns   (OH, OW*Cout) float32.
    """
    a = a.astype(jnp.bfloat16)
    acc = None
    for i in range(sel_ref.shape[0]):                 # 5 kernel rows, unrolled
        rows = jnp.dot(sel_ref[i], a, preferred_element_type=jnp.float32)
        part = jnp.dot(rows.astype(jnp.bfloat16), m_ref[i],
                       preferred_element_type=jnp.float32)
        acc = part if acc is None else acc + part
    return jnp.maximum(acc + bias_ref[...], 0.0)


def _dqn_fused_kernel(x_ref,
                      sel1_ref, m1_ref, b1_ref,
                      sel2_ref, m2_ref, b2_ref,
                      sel3_ref, m3_ref, b3_ref,
                      v1_ref, fb1_ref, w2_ref, fb2_ref,
                      o_ref):
    # Three conv+BN+ReLU stages, all VMEM/vreg resident.
    a = _conv_block(x_ref[...], sel1_ref, m1_ref, b1_ref)   # (18, 18*16)
    a = _conv_block(a, sel2_ref, m2_ref, b2_ref)            # (7,  7*32)
    a = _conv_block(a, sel3_ref, m3_ref, b3_ref)            # (2,  2*64)

    # fc1: contract both the rows (oy) and lanes (ox, c) of `a` against the
    # pre-permuted fc1 weights; bias hoisted as the accumulator init.
    h = fb1_ref[...]                                         # (1, 512) f32
    for oy in range(v1_ref.shape[0]):
        h = h + jnp.dot(a[oy:oy + 1, :].astype(jnp.bfloat16), v1_ref[oy],
                        preferred_element_type=jnp.float32)
    h = jnp.maximum(h, 0.0).astype(jnp.bfloat16)

    # fc2 (no ReLU)
    y = jnp.dot(h, w2_ref[...], preferred_element_type=jnp.float32) + fb2_ref[...]
    o_ref[0] = y.astype(o_ref.dtype)


def _shared(shape):
    """Full-array BlockSpec, identical for every grid step (weights etc.)."""
    if len(shape) == 3:
        return pl.BlockSpec(shape, lambda n: (0, 0, 0))
    return pl.BlockSpec(shape, lambda n: (0, 0))


def dqn_forward(x_nchw, prep):
    """Full DQN forward as a single fused Pallas kernel (one sample / grid step)."""
    N, C, H, W = x_nchw.shape
    # One cheap relayout of the (tiny) network input: NCHW -> rows=(n,h),
    # lanes=(w,c).  Replaces all per-layer im2col / transpose traffic.
    x2d = jnp.transpose(x_nchw, (0, 2, 3, 1)).reshape(N * H, W * C)
    x2d = x2d.astype(jnp.float32)
    outputs = prep["fc2_b"].shape[-1]

    out = pl.pallas_call(
        _dqn_fused_kernel,
        out_shape=jax.ShapeDtypeStruct((N, 1, outputs), jnp.float32),
        grid=(N,),
        in_specs=[
            pl.BlockSpec((H, W * C), lambda n: (n, 0)),      # per-sample rows
            _shared(prep["sel1"].shape), _shared(prep["m1"].shape),
            _shared(prep["bias1"].shape),
            _shared(prep["sel2"].shape), _shared(prep["m2"].shape),
            _shared(prep["bias2"].shape),
            _shared(prep["sel3"].shape), _shared(prep["m3"].shape),
            _shared(prep["bias3"].shape),
            _shared(prep["v1"].shape), _shared(prep["fc1_b"].shape),
            _shared(prep["w2"].shape), _shared(prep["fc2_b"].shape),
        ],
        out_specs=pl.BlockSpec((1, 1, outputs), lambda n: (n, 0, 0)),
        compiler_params=pltpu.CompilerParams(
            dimension_semantics=("parallel",)),
    )(x2d,
      prep["sel1"], prep["m1"], prep["bias1"],
      prep["sel2"], prep["m2"], prep["bias2"],
      prep["sel3"], prep["m3"], prep["bias3"],
      prep["v1"], prep["fc1_b"], prep["w2"], prep["fc2_b"])
    return out[:, 0, :]


# ---------------------------------------------------------------------------
# One-time parameter preparation (host side, outside the kernel)
# ---------------------------------------------------------------------------
def prepare_params(params, h, w, eps=1e-5):
    """Fold BN / bias / input-scaling into matmul-ready operands."""
    def conv_out(s):
        return (s - 5) // 2 + 1

    prep = {}
    H, W, Cin = h, w, params["w1"].shape[1]
    for li, (wk, bk, bnk) in enumerate(
            (("w1", "b1", "bn1"), ("w2", "b2", "bn2"), ("w3", "b3", "bn3"))):
        wgt, b = params[wk], params[bk]
        gamma, beta, mean, var = params[bnk]
        Cout, _, K, _ = wgt.shape
        OH, OW = conv_out(H), conv_out(W)

        s = gamma / jnp.sqrt(var + eps)                 # BN eval-mode scale
        ws = wgt * s[:, None, None, None]
        if li == 0:
            ws = ws * (1.0 / 255.0)                     # fold x/255 into conv1

        # Lane-mixing band matrix: E[j, wi, ox] = 1 iff wi == 2*ox + j
        E = np.zeros((K, W, OW), np.float32)
        for j in range(K):
            for ox in range(OW):
                wi = 2 * ox + j
                if wi < W:
                    E[j, wi, ox] = 1.0
        M = jnp.einsum("jwo,cdij->iwdoc", jnp.asarray(E), ws)
        M = M.reshape(K, W * Cin, OW * Cout).astype(jnp.bfloat16)

        # Row-gather matrices: S[i, oy, h] = 1 iff h == 2*oy + i
        S = np.zeros((K, OH, H), np.float32)
        for i in range(K):
            for oy in range(OH):
                S[i, oy, 2 * oy + i] = 1.0

        bias = jnp.tile((b - mean) * s + beta, OW).reshape(1, OW * Cout)

        idx = li + 1
        prep[f"sel{idx}"] = jnp.asarray(S, jnp.bfloat16)
        prep[f"m{idx}"] = M
        prep[f"bias{idx}"] = bias.astype(jnp.float32)
        H, W, Cin = OH, OW, Cout

    # fc1: permute columns once so they match the kernel's channels-last
    # (oy, ox, c) flatten instead of torch's NCHW (c, oy, ox) flatten.
    F1 = params["fc1_w"].shape[0]
    V = params["fc1_w"].reshape(F1, Cin, H, W).transpose(2, 3, 1, 0)  # (oy,ox,c,f)
    prep["v1"] = V.reshape(H, W * Cin, F1).astype(jnp.bfloat16)
    prep["fc1_b"] = params["fc1_b"].reshape(1, F1).astype(jnp.float32)
    prep["w2"] = params["fc2_w"].T.astype(jnp.bfloat16)
    prep["fc2_b"] = params["fc2_b"].reshape(1, -1).astype(jnp.float32)
    return prep


# ---------------------------------------------------------------------------
# Plain-JAX reference (mirrors the PyTorch module) for a correctness check
# ---------------------------------------------------------------------------
def reference_forward(x, params, eps=1e-5):
    def block(hh, wk, bk, bnk):
        gamma, beta, mean, var = params[bnk]
        y = lax.conv_general_dilated(
            hh, params[wk], window_strides=(2, 2), padding="VALID",
            dimension_numbers=("NCHW", "OIHW", "NCHW"))
        y = y + params[bk][None, :, None, None]
        s = gamma / jnp.sqrt(var + eps)
        y = y * s[None, :, None, None] + (beta - mean * s)[None, :, None, None]
        return jnp.maximum(y, 0.0)

    hh = x / 255.0
    hh = block(hh, "w1", "b1", "bn1")
    hh = block(hh, "w2", "b2", "bn2")
    hh = block(hh, "w3", "b3", "bn3")
    hh = hh.reshape(hh.shape[0], -1)                     # NCHW flatten (torch)
    hh = jnp.maximum(hh @ params["fc1_w"].T + params["fc1_b"], 0.0)
    return hh @ params["fc2_w"].T + params["fc2_b"]


# ---------------------------------------------------------------------------
# Deterministic parameter construction (PyTorch-style fan-in uniform)
# ---------------------------------------------------------------------------
def make_params(key, h, w, outputs):
    def conv_size(s):
        return (s - 4 - 1) // 2 + 1
    convw = conv_size(conv_size(conv_size(w)))
    convh = conv_size(conv_size(conv_size(h)))
    linear_in = convw * convh * 64

    ks = jax.random.split(key, 10)

    def unif(k, shape, fan_in):
        lim = 1.0 / jnp.sqrt(jnp.float32(fan_in))
        return jax.random.uniform(k, shape, jnp.float32, -lim, lim)

    def bn(c):
        # eval-mode BN: (gamma, beta, running_mean, running_var)
        return (jnp.ones((c,), jnp.float32), jnp.zeros((c,), jnp.float32),
                jnp.zeros((c,), jnp.float32), jnp.ones((c,), jnp.float32))

    return {
        "w1": unif(ks[0], (16, 3, 5, 5), 3 * 25),
        "b1": unif(ks[1], (16,), 3 * 25),
        "bn1": bn(16),
        "w2": unif(ks[2], (32, 16, 5, 5), 16 * 25),
        "b2": unif(ks[3], (32,), 16 * 25),
        "bn2": bn(32),
        "w3": unif(ks[4], (64, 32, 5, 5), 32 * 25),
        "b3": unif(ks[5], (64,), 32 * 25),
        "bn3": bn(64),
        "fc1_w": unif(ks[6], (512, linear_in), linear_in),
        "fc1_b": unif(ks[7], (512,), linear_in),
        "fc2_w": unif(ks[8], (outputs, 512), 512),
        "fc2_b": unif(ks[9], (outputs,), 512),
    }


if __name__ == "__main__":
    key = jax.random.PRNGKey(0)
    k_p, k_x = jax.random.split(key)

    batch, h, w, outputs = 2, 40, 40, 4
    params = make_params(k_p, h, w, outputs)
    # pixel-like input in [0, 255], NCHW (PyTorch layout)
    x = jax.random.uniform(k_x, (batch, 3, h, w), jnp.float32, 0.0, 255.0)

    prep = prepare_params(params, h, w)
    fwd = jax.jit(dqn_forward)
    out = jax.block_until_ready(fwd(x, prep))

    assert out.shape == (batch, outputs), out.shape
    assert bool(jnp.all(jnp.isfinite(out)))

    # Correctness vs. a plain-JAX reference of the PyTorch module (bf16 MXU
    # path on the kernel side -> loose tolerance).
    ref = reference_forward(x, params)
    assert bool(jnp.allclose(out, ref, rtol=1e-1, atol=5e-2)), (out, ref)

    print("KERNEL_OK")
</pallas_src>

<mosaic_0001>
module attributes {stable_mosaic.version = 11 : i64} {
  func.func @_dqn_fused_kernel(%arg0: i32, %arg1: memref<40x120xf32, #tpu.memory_space<vmem>>, %arg2: memref<5x18x40xbf16, #tpu.memory_space<vmem>>, %arg3: memref<5x120x288xbf16, #tpu.memory_space<vmem>>, %arg4: memref<1x288xf32, #tpu.memory_space<vmem>>, %arg5: memref<5x7x18xbf16, #tpu.memory_space<vmem>>, %arg6: memref<5x288x224xbf16, #tpu.memory_space<vmem>>, %arg7: memref<1x224xf32, #tpu.memory_space<vmem>>, %arg8: memref<5x2x7xbf16, #tpu.memory_space<vmem>>, %arg9: memref<5x224x128xbf16, #tpu.memory_space<vmem>>, %arg10: memref<1x128xf32, #tpu.memory_space<vmem>>, %arg11: memref<2x128x512xbf16, #tpu.memory_space<vmem>>, %arg12: memref<1x512xf32, #tpu.memory_space<vmem>>, %arg13: memref<512x4xbf16, #tpu.memory_space<vmem>>, %arg14: memref<1x4xf32, #tpu.memory_space<vmem>>, %arg15: memref<1x1x4xf32, #tpu.memory_space<vmem>>) attributes {dimension_semantics = [#tpu.dimension_semantics<parallel>], iteration_bounds = array<i64: 2>, scalar_prefetch = 0 : i64, scratch_operands = 0 : i64, tpu.core_type = #tpu.core_type<tc>, window_params = [{transform_indices = @transform_0, window_bounds = array<i64: 40, 120>}, {pipeline_mode = #tpu.pipeline_mode<synchronous>, transform_indices = @transform_1, window_bounds = array<i64: 5, 18, 40>}, {pipeline_mode = #tpu.pipeline_mode<synchronous>, transform_indices = @transform_2, window_bounds = array<i64: 5, 120, 288>}, {pipeline_mode = #tpu.pipeline_mode<synchronous>, transform_indices = @transform_3, window_bounds = array<i64: 1, 288>}, {pipeline_mode = #tpu.pipeline_mode<synchronous>, transform_indices = @transform_4, window_bounds = array<i64: 5, 7, 18>}, {pipeline_mode = #tpu.pipeline_mode<synchronous>, transform_indices = @transform_5, window_bounds = array<i64: 5, 288, 224>}, {pipeline_mode = #tpu.pipeline_mode<synchronous>, transform_indices = @transform_6, window_bounds = array<i64: 1, 224>}, {pipeline_mode = #tpu.pipeline_mode<synchronous>, transform_indices = @transform_7, window_bounds = array<i64: 5, 2, 7>}, {pipeline_mode = #tpu.pipeline_mode<synchronous>, transform_indices = @transform_8, window_bounds = array<i64: 5, 224, 128>}, {pipeline_mode = #tpu.pipeline_mode<synchronous>, transform_indices = @transform_9, window_bounds = array<i64: 1, 128>}, {pipeline_mode = #tpu.pipeline_mode<synchronous>, transform_indices = @transform_10, window_bounds = array<i64: 2, 128, 512>}, {pipeline_mode = #tpu.pipeline_mode<synchronous>, transform_indices = @transform_11, window_bounds = array<i64: 1, 512>}, {pipeline_mode = #tpu.pipeline_mode<synchronous>, transform_indices = @transform_12, window_bounds = array<i64: 512, 4>}, {pipeline_mode = #tpu.pipeline_mode<synchronous>, transform_indices = @transform_13, window_bounds = array<i64: 1, 4>}, {transform_indices = @transform_14, window_bounds = array<i64: 1, 1, 4>}]} {
    %c0 = arith.constant 0 : index
    %c0_0 = arith.constant 0 : index
    %0 = vector.load %arg1[%c0, %c0_0] : memref<40x120xf32, #tpu.memory_space<vmem>>, vector<40x120xf32>
    %1 = arith.truncf %0 : vector<40x120xf32> to vector<40x120xbf16>
    %c0_1 = arith.constant 0 : index
    %c0_2 = arith.constant 0 : index
    %c0_3 = arith.constant 0 : index
    %2 = vector.load %arg2[%c0_1, %c0_2, %c0_3] : memref<5x18x40xbf16, #tpu.memory_space<vmem>>, vector<1x18x40xbf16>
    %3 = vector.shape_cast %2 : vector<1x18x40xbf16> to vector<18x40xbf16>
    %cst = arith.constant dense<0.000000e+00> : vector<18x120xf32>
    %4 = tpu.matmul %3, %1, %cst {dimension_numbers = #tpu.dot_dimension_numbers<[1], [0], [0], [1], [0, 0, 1, 1], [], []>} : vector<18x40xbf16>, vector<40x120xbf16>, vector<18x120xf32> -> vector<18x120xf32>
    %5 = arith.truncf %4 : vector<18x120xf32> to vector<18x120xbf16>
    %c0_4 = arith.constant 0 : index
    %c0_5 = arith.constant 0 : index
    %c0_6 = arith.constant 0 : index
    %6 = vector.load %arg3[%c0_4, %c0_5, %c0_6] : memref<5x120x288xbf16, #tpu.memory_space<vmem>>, vector<1x120x288xbf16>
    %7 = vector.shape_cast %6 : vector<1x120x288xbf16> to vector<120x288xbf16>
    %cst_7 = arith.constant dense<0.000000e+00> : vector<18x288xf32>
    %8 = tpu.matmul %5, %7, %cst_7 {dimension_numbers = #tpu.dot_dimension_numbers<[1], [0], [0], [1], [0, 0, 1, 1], [], []>} : vector<18x120xbf16>, vector<120x288xbf16>, vector<18x288xf32> -> vector<18x288xf32>
    %c1 = arith.constant 1 : index
    %c0_8 = arith.constant 0 : index
    %c0_9 = arith.constant 0 : index
    %9 = vector.load %arg2[%c1, %c0_8, %c0_9] : memref<5x18x40xbf16, #tpu.memory_space<vmem>>, vector<1x18x40xbf16>
    %10 = vector.shape_cast %9 : vector<1x18x40xbf16> to vector<18x40xbf16>
    %cst_10 = arith.constant dense<0.000000e+00> : vector<18x120xf32>
    %11 = tpu.matmul %10, %1, %cst_10 {dimension_numbers = #tpu.dot_dimension_numbers<[1], [0], [0], [1], [0, 0, 1, 1], [], []>} : vector<18x40xbf16>, vector<40x120xbf16>, vector<18x120xf32> -> vector<18x120xf32>
    %12 = arith.truncf %11 : vector<18x120xf32> to vector<18x120xbf16>
    %c1_11 = arith.constant 1 : index
    %c0_12 = arith.constant 0 : index
    %c0_13 = arith.constant 0 : index
    %13 = vector.load %arg3[%c1_11, %c0_12, %c0_13] : memref<5x120x288xbf16, #tpu.memory_space<vmem>>, vector<1x120x288xbf16>
    %14 = vector.shape_cast %13 : vector<1x120x288xbf16> to vector<120x288xbf16>
    %cst_14 = arith.constant dense<0.000000e+00> : vector<18x288xf32>
    %15 = tpu.matmul %12, %14, %cst_14 {dimension_numbers = #tpu.dot_dimension_numbers<[1], [0], [0], [1], [0, 0, 1, 1], [], []>} : vector<18x120xbf16>, vector<120x288xbf16>, vector<18x288xf32> -> vector<18x288xf32>
    %16 = arith.addf %8, %15 : vector<18x288xf32>
    %c2 = arith.constant 2 : index
    %c0_15 = arith.constant 0 : index
    %c0_16 = arith.constant 0 : index
    %17 = vector.load %arg2[%c2, %c0_15, %c0_16] : memref<5x18x40xbf16, #tpu.memory_space<vmem>>, vector<1x18x40xbf16>
    %18 = vector.shape_cast %17 : vector<1x18x40xbf16> to vector<18x40xbf16>
    %cst_17 = arith.constant dense<0.000000e+00> : vector<18x120xf32>
    %19 = tpu.matmul %18, %1, %cst_17 {dimension_numbers = #tpu.dot_dimension_numbers<[1], [0], [0], [1], [0, 0, 1, 1], [], []>} : vector<18x40xbf16>, vector<40x120xbf16>, vector<18x120xf32> -> vector<18x120xf32>
    %20 = arith.truncf %19 : vector<18x120xf32> to vector<18x120xbf16>
    %c2_18 = arith.constant 2 : index
    %c0_19 = arith.constant 0 : index
    %c0_20 = arith.constant 0 : index
    %21 = vector.load %arg3[%c2_18, %c0_19, %c0_20] : memref<5x120x288xbf16, #tpu.memory_space<vmem>>, vector<1x120x288xbf16>
    %22 = vector.shape_cast %21 : vector<1x120x288xbf16> to vector<120x288xbf16>
    %cst_21 = arith.constant dense<0.000000e+00> : vector<18x288xf32>
    %23 = tpu.matmul %20, %22, %cst_21 {dimension_numbers = #tpu.dot_dimension_numbers<[1], [0], [0], [1], [0, 0, 1, 1], [], []>} : vector<18x120xbf16>, vector<120x288xbf16>, vector<18x288xf32> -> vector<18x288xf32>
    %24 = arith.addf %16, %23 : vector<18x288xf32>
    %c3 = arith.constant 3 : index
    %c0_22 = arith.constant 0 : index
    %c0_23 = arith.constant 0 : index
    %25 = vector.load %arg2[%c3, %c0_22, %c0_23] : memref<5x18x40xbf16, #tpu.memory_space<vmem>>, vector<1x18x40xbf16>
    %26 = vector.shape_cast %25 : vector<1x18x40xbf16> to vector<18x40xbf16>
    %cst_24 = arith.constant dense<0.000000e+00> : vector<18x120xf32>
    %27 = tpu.matmul %26, %1, %cst_24 {dimension_numbers = #tpu.dot_dimension_numbers<[1], [0], [0], [1], [0, 0, 1, 1], [], []>} : vector<18x40xbf16>, vector<40x120xbf16>, vector<18x120xf32> -> vector<18x120xf32>
    %28 = arith.truncf %27 : vector<18x120xf32> to vector<18x120xbf16>
    %c3_25 = arith.constant 3 : index
    %c0_26 = arith.constant 0 : index
    %c0_27 = arith.constant 0 : index
    %29 = vector.load %arg3[%c3_25, %c0_26, %c0_27] : memref<5x120x288xbf16, #tpu.memory_space<vmem>>, vector<1x120x288xbf16>
    %30 = vector.shape_cast %29 : vector<1x120x288xbf16> to vector<120x288xbf16>
    %cst_28 = arith.constant dense<0.000000e+00> : vector<18x288xf32>
    %31 = tpu.matmul %28, %30, %cst_28 {dimension_numbers = #tpu.dot_dimension_numbers<[1], [0], [0], [1], [0, 0, 1, 1], [], []>} : vector<18x120xbf16>, vector<120x288xbf16>, vector<18x288xf32> -> vector<18x288xf32>
    %32 = arith.addf %24, %31 : vector<18x288xf32>
    %c4 = arith.constant 4 : index
    %c0_29 = arith.constant 0 : index
    %c0_30 = arith.constant 0 : index
    %33 = vector.load %arg2[%c4, %c0_29, %c0_30] : memref<5x18x40xbf16, #tpu.memory_space<vmem>>, vector<1x18x40xbf16>
    %34 = vector.shape_cast %33 : vector<1x18x40xbf16> to vector<18x40xbf16>
    %cst_31 = arith.constant dense<0.000000e+00> : vector<18x120xf32>
    %35 = tpu.matmul %34, %1, %cst_31 {dimension_numbers = #tpu.dot_dimension_numbers<[1], [0], [0], [1], [0, 0, 1, 1], [], []>} : vector<18x40xbf16>, vector<40x120xbf16>, vector<18x120xf32> -> vector<18x120xf32>
    %36 = arith.truncf %35 : vector<18x120xf32> to vector<18x120xbf16>
    %c4_32 = arith.constant 4 : index
    %c0_33 = arith.constant 0 : index
    %c0_34 = arith.constant 0 : index
    %37 = vector.load %arg3[%c4_32, %c0_33, %c0_34] : memref<5x120x288xbf16, #tpu.memory_space<vmem>>, vector<1x120x288xbf16>
    %38 = vector.shape_cast %37 : vector<1x120x288xbf16> to vector<120x288xbf16>
    %cst_35 = arith.constant dense<0.000000e+00> : vector<18x288xf32>
    %39 = tpu.matmul %36, %38, %cst_35 {dimension_numbers = #tpu.dot_dimension_numbers<[1], [0], [0], [1], [0, 0, 1, 1], [], []>} : vector<18x120xbf16>, vector<120x288xbf16>, vector<18x288xf32> -> vector<18x288xf32>
    %40 = arith.addf %32, %39 : vector<18x288xf32>
    %c0_36 = arith.constant 0 : index
    %c0_37 = arith.constant 0 : index
    %41 = vector.load %arg4[%c0_36, %c0_37] : memref<1x288xf32, #tpu.memory_space<vmem>>, vector<1x288xf32>
    %42 = vector.broadcast %41 : vector<1x288xf32> to vector<18x288xf32>
    %43 = arith.addf %40, %42 : vector<18x288xf32>
    %cst_38 = arith.constant 0.000000e+00 : f32
    %44 = vector.broadcast %cst_38 : f32 to vector<18x288xf32>
    %45 = arith.maximumf %43, %44 : vector<18x288xf32>
    %46 = arith.truncf %45 : vector<18x288xf32> to vector<18x288xbf16>
    %c0_39 = arith.constant 0 : index
    %c0_40 = arith.constant 0 : index
    %c0_41 = arith.constant 0 : index
    %47 = vector.load %arg5[%c0_39, %c0_40, %c0_41] : memref<5x7x18xbf16, #tpu.memory_space<vmem>>, vector<1x7x18xbf16>
    %48 = vector.shape_cast %47 : vector<1x7x18xbf16> to vector<7x18xbf16>
    %cst_42 = arith.constant dense<0.000000e+00> : vector<7x288xf32>
    %49 = tpu.matmul %48, %46, %cst_42 {dimension_numbers = #tpu.dot_dimension_numbers<[1], [0], [0], [1], [0, 0, 1, 1], [], []>} : vector<7x18xbf16>, vector<18x288xbf16>, vector<7x288xf32> -> vector<7x288xf32>
    %50 = arith.truncf %49 : vector<7x288xf32> to vector<7x288xbf16>
    %c0_43 = arith.constant 0 : index
    %c0_44 = arith.constant 0 : index
    %c0_45 = arith.constant 0 : index
    %51 = vector.load %arg6[%c0_43, %c0_44, %c0_45] : memref<5x288x224xbf16, #tpu.memory_space<vmem>>, vector<1x288x224xbf16>
    %52 = vector.shape_cast %51 : vector<1x288x224xbf16> to vector<288x224xbf16>
    %cst_46 = arith.constant dense<0.000000e+00> : vector<7x224xf32>
    %53 = tpu.matmul %50, %52, %cst_46 {dimension_numbers = #tpu.dot_dimension_numbers<[1], [0], [0], [1], [0, 0, 1, 1], [], []>} : vector<7x288xbf16>, vector<288x224xbf16>, vector<7x224xf32> -> vector<7x224xf32>
    %c1_47 = arith.constant 1 : index
    %c0_48 = arith.constant 0 : index
    %c0_49 = arith.constant 0 : index
    %54 = vector.load %arg5[%c1_47, %c0_48, %c0_49] : memref<5x7x18xbf16, #tpu.memory_space<vmem>>, vector<1x7x18xbf16>
    %55 = vector.shape_cast %54 : vector<1x7x18xbf16> to vector<7x18xbf16>
    %cst_50 = arith.constant dense<0.000000e+00> : vector<7x288xf32>
    %56 = tpu.matmul %55, %46, %cst_50 {dimension_numbers = #tpu.dot_dimension_numbers<[1], [0], [0], [1], [0, 0, 1, 1], [], []>} : vector<7x18xbf16>, vector<18x288xbf16>, vector<7x288xf32> -> vector<7x288xf32>
    %57 = arith.truncf %56 : vector<7x288xf32> to vector<7x288xbf16>
    %c1_51 = arith.constant 1 : index
    %c0_52 = arith.constant 0 : index
    %c0_53 = arith.constant 0 : index
    %58 = vector.load %arg6[%c1_51, %c0_52, %c0_53] : memref<5x288x224xbf16, #tpu.memory_space<vmem>>, vector<1x288x224xbf16>
    %59 = vector.shape_cast %58 : vector<1x288x224xbf16> to vector<288x224xbf16>
    %cst_54 = arith.constant dense<0.000000e+00> : vector<7x224xf32>
    %60 = tpu.matmul %57, %59, %cst_54 {dimension_numbers = #tpu.dot_dimension_numbers<[1], [0], [0], [1], [0, 0, 1, 1], [], []>} : vector<7x288xbf16>, vector<288x224xbf16>, vector<7x224xf32> -> vector<7x224xf32>
    %61 = arith.addf %53, %60 : vector<7x224xf32>
    %c2_55 = arith.constant 2 : index
    %c0_56 = arith.constant 0 : index
    %c0_57 = arith.constant 0 : index
    %62 = vector.load %arg5[%c2_55, %c0_56, %c0_57] : memref<5x7x18xbf16, #tpu.memory_space<vmem>>, vector<1x7x18xbf16>
    %63 = vector.shape_cast %62 : vector<1x7x18xbf16> to vector<7x18xbf16>
    %cst_58 = arith.constant dense<0.000000e+00> : vector<7x288xf32>
    %64 = tpu.matmul %63, %46, %cst_58 {dimension_numbers = #tpu.dot_dimension_numbers<[1], [0], [0], [1], [0, 0, 1, 1], [], []>} : vector<7x18xbf16>, vector<18x288xbf16>, vector<7x288xf32> -> vector<7x288xf32>
    %65 = arith.truncf %64 : vector<7x288xf32> to vector<7x288xbf16>
    %c2_59 = arith.constant 2 : index
    %c0_60 = arith.constant 0 : index
    %c0_61 = arith.constant 0 : index
    %66 = vector.load %arg6[%c2_59, %c0_60, %c0_61] : memref<5x288x224xbf16, #tpu.memory_space<vmem>>, vector<1x288x224xbf16>
    %67 = vector.shape_cast %66 : vector<1x288x224xbf16> to vector<288x224xbf16>
    %cst_62 = arith.constant dense<0.000000e+00> : vector<7x224xf32>
    %68 = tpu.matmul %65, %67, %cst_62 {dimension_numbers = #tpu.dot_dimension_numbers<[1], [0], [0], [1], [0, 0, 1, 1], [], []>} : vector<7x288xbf16>, vector<288x224xbf16>, vector<7x224xf32> -> vector<7x224xf32>
    %69 = arith.addf %61, %68 : vector<7x224xf32>
    %c3_63 = arith.constant 3 : index
    %c0_64 = arith.constant 0 : index
    %c0_65 = arith.constant 0 : index
    %70 = vector.load %arg5[%c3_63, %c0_64, %c0_65] : memref<5x7x18xbf16, #tpu.memory_space<vmem>>, vector<1x7x18xbf16>
    %71 = vector.shape_cast %70 : vector<1x7x18xbf16> to vector<7x18xbf16>
    %cst_66 = arith.constant dense<0.000000e+00> : vector<7x288xf32>
    %72 = tpu.matmul %71, %46, %cst_66 {dimension_numbers = #tpu.dot_dimension_numbers<[1], [0], [0], [1], [0, 0, 1, 1], [], []>} : vector<7x18xbf16>, vector<18x288xbf16>, vector<7x288xf32> -> vector<7x288xf32>
    %73 = arith.truncf %72 : vector<7x288xf32> to vector<7x288xbf16>
    %c3_67 = arith.constant 3 : index
    %c0_68 = arith.constant 0 : index
    %c0_69 = arith.constant 0 : index
    %74 = vector.load %arg6[%c3_67, %c0_68, %c0_69] : memref<5x288x224xbf16, #tpu.memory_space<vmem>>, vector<1x288x224xbf16>
    %75 = vector.shape_cast %74 : vector<1x288x224xbf16> to vector<288x224xbf16>
    %cst_70 = arith.constant dense<0.000000e+00> : vector<7x224xf32>
    %76 = tpu.matmul %73, %75, %cst_70 {dimension_numbers = #tpu.dot_dimension_numbers<[1], [0], [0], [1], [0, 0, 1, 1], [], []>} : vector<7x288xbf16>, vector<288x224xbf16>, vector<7x224xf32> -> vector<7x224xf32>
    %77 = arith.addf %69, %76 : vector<7x224xf32>
    %c4_71 = arith.constant 4 : index
    %c0_72 = arith.constant 0 : index
    %c0_73 = arith.constant 0 : index
    %78 = vector.load %arg5[%c4_71, %c0_72, %c0_73] : memref<5x7x18xbf16, #tpu.memory_space<vmem>>, vector<1x7x18xbf16>
    %79 = vector.shape_cast %78 : vector<1x7x18xbf16> to vector<7x18xbf16>
    %cst_74 = arith.constant dense<0.000000e+00> : vector<7x288xf32>
    %80 = tpu.matmul %79, %46, %cst_74 {dimension_numbers = #tpu.dot_dimension_numbers<[1], [0], [0], [1], [0, 0, 1, 1], [], []>} : vector<7x18xbf16>, vector<18x288xbf16>, vector<7x288xf32> -> vector<7x288xf32>
    %81 = arith.truncf %80 : vector<7x288xf32> to vector<7x288xbf16>
    %c4_75 = arith.constant 4 : index
    %c0_76 = arith.constant 0 : index
    %c0_77 = arith.constant 0 : index
    %82 = vector.load %arg6[%c4_75, %c0_76, %c0_77] : memref<5x288x224xbf16, #tpu.memory_space<vmem>>, vector<1x288x224xbf16>
    %83 = vector.shape_cast %82 : vector<1x288x224xbf16> to vector<288x224xbf16>
    %cst_78 = arith.constant dense<0.000000e+00> : vector<7x224xf32>
    %84 = tpu.matmul %81, %83, %cst_78 {dimension_numbers = #tpu.dot_dimension_numbers<[1], [0], [0], [1], [0, 0, 1, 1], [], []>} : vector<7x288xbf16>, vector<288x224xbf16>, vector<7x224xf32> -> vector<7x224xf32>
    %85 = arith.addf %77, %84 : vector<7x224xf32>
    %c0_79 = arith.constant 0 : index
    %c0_80 = arith.constant 0 : index
    %86 = vector.load %arg7[%c0_79, %c0_80] : memref<1x224xf32, #tpu.memory_space<vmem>>, vector<1x224xf32>
    %87 = vector.broadcast %86 : vector<1x224xf32> to vector<7x224xf32>
    %88 = arith.addf %85, %87 : vector<7x224xf32>
    %cst_81 = arith.constant 0.000000e+00 : f32
    %89 = vector.broadcast %cst_81 : f32 to vector<7x224xf32>
    %90 = arith.maximumf %88, %89 : vector<7x224xf32>
    %91 = arith.truncf %90 : vector<7x224xf32> to vector<7x224xbf16>
    %c0_82 = arith.constant 0 : index
    %c0_83 = arith.constant 0 : index
    %c0_84 = arith.constant 0 : index
    %92 = vector.load %arg8[%c0_82, %c0_83, %c0_84] : memref<5x2x7xbf16, #tpu.memory_space<vmem>>, vector<1x2x7xbf16>
    %93 = vector.shape_cast %92 : vector<1x2x7xbf16> to vector<2x7xbf16>
    %cst_85 = arith.constant dense<0.000000e+00> : vector<2x224xf32>
    %94 = tpu.matmul %93, %91, %cst_85 {dimension_numbers = #tpu.dot_dimension_numbers<[1], [0], [0], [1], [0, 0, 1, 1], [], []>} : vector<2x7xbf16>, vector<7x224xbf16>, vector<2x224xf32> -> vector<2x224xf32>
    %95 = arith.truncf %94 : vector<2x224xf32> to vector<2x224xbf16>
    %c0_86 = arith.constant 0 : index
    %c0_87 = arith.constant 0 : index
    %c0_88 = arith.constant 0 : index
    %96 = vector.load %arg9[%c0_86, %c0_87, %c0_88] : memref<5x224x128xbf16, #tpu.memory_space<vmem>>, vector<1x224x128xbf16>
    %97 = vector.shape_cast %96 : vector<1x224x128xbf16> to vector<224x128xbf16>
    %cst_89 = arith.constant dense<0.000000e+00> : vector<2x128xf32>
    %98 = tpu.matmul %95, %97, %cst_89 {dimension_numbers = #tpu.dot_dimension_numbers<[1], [0], [0], [1], [0, 0, 1, 1], [], []>} : vector<2x224xbf16>, vector<224x128xbf16>, vector<2x128xf32> -> vector<2x128xf32>
    %c1_90 = arith.constant 1 : index
    %c0_91 = arith.constant 0 : index
    %c0_92 = arith.constant 0 : index
    %99 = vector.load %arg8[%c1_90, %c0_91, %c0_92] : memref<5x2x7xbf16, #tpu.memory_space<vmem>>, vector<1x2x7xbf16>
    %100 = vector.shape_cast %99 : vector<1x2x7xbf16> to vector<2x7xbf16>
    %cst_93 = arith.constant dense<0.000000e+00> : vector<2x224xf32>
    %101 = tpu.matmul %100, %91, %cst_93 {dimension_numbers = #tpu.dot_dimension_numbers<[1], [0], [0], [1], [0, 0, 1, 1], [], []>} : vector<2x7xbf16>, vector<7x224xbf16>, vector<2x224xf32> -> vector<2x224xf32>
    %102 = arith.truncf %101 : vector<2x224xf32> to vector<2x224xbf16>
    %c1_94 = arith.constant 1 : index
    %c0_95 = arith.constant 0 : index
    %c0_96 = arith.constant 0 : index
    %103 = vector.load %arg9[%c1_94, %c0_95, %c0_96] : memref<5x224x128xbf16, #tpu.memory_space<vmem>>, vector<1x224x128xbf16>
    %104 = vector.shape_cast %103 : vector<1x224x128xbf16> to vector<224x128xbf16>
    %cst_97 = arith.constant dense<0.000000e+00> : vector<2x128xf32>
    %105 = tpu.matmul %102, %104, %cst_97 {dimension_numbers = #tpu.dot_dimension_numbers<[1], [0], [0], [1], [0, 0, 1, 1], [], []>} : vector<2x224xbf16>, vector<224x128xbf16>, vector<2x128xf32> -> vector<2x128xf32>
    %106 = arith.addf %98, %105 : vector<2x128xf32>
    %c2_98 = arith.constant 2 : index
    %c0_99 = arith.constant 0 : index
    %c0_100 = arith.constant 0 : index
    %107 = vector.load %arg8[%c2_98, %c0_99, %c0_100] : memref<5x2x7xbf16, #tpu.memory_space<vmem>>, vector<1x2x7xbf16>
    %108 = vector.shape_cast %107 : vector<1x2x7xbf16> to vector<2x7xbf16>
    %cst_101 = arith.constant dense<0.000000e+00> : vector<2x224xf32>
    %109 = tpu.matmul %108, %91, %cst_101 {dimension_numbers = #tpu.dot_dimension_numbers<[1], [0], [0], [1], [0, 0, 1, 1], [], []>} : vector<2x7xbf16>, vector<7x224xbf16>, vector<2x224xf32> -> vector<2x224xf32>
    %110 = arith.truncf %109 : vector<2x224xf32> to vector<2x224xbf16>
    %c2_102 = arith.constant 2 : index
    %c0_103 = arith.constant 0 : index
    %c0_104 = arith.constant 0 : index
    %111 = vector.load %arg9[%c2_102, %c0_103, %c0_104] : memref<5x224x128xbf16, #tpu.memory_space<vmem>>, vector<1x224x128xbf16>
    %112 = vector.shape_cast %111 : vector<1x224x128xbf16> to vector<224x128xbf16>
    %cst_105 = arith.constant dense<0.000000e+00> : vector<2x128xf32>
    %113 = tpu.matmul %110, %112, %cst_105 {dimension_numbers = #tpu.dot_dimension_numbers<[1], [0], [0], [1], [0, 0, 1, 1], [], []>} : vector<2x224xbf16>, vector<224x128xbf16>, vector<2x128xf32> -> vector<2x128xf32>
    %114 = arith.addf %106, %113 : vector<2x128xf32>
    %c3_106 = arith.constant 3 : index
    %c0_107 = arith.constant 0 : index
    %c0_108 = arith.constant 0 : index
    %115 = vector.load %arg8[%c3_106, %c0_107, %c0_108] : memref<5x2x7xbf16, #tpu.memory_space<vmem>>, vector<1x2x7xbf16>
    %116 = vector.shape_cast %115 : vector<1x2x7xbf16> to vector<2x7xbf16>
    %cst_109 = arith.constant dense<0.000000e+00> : vector<2x224xf32>
    %117 = tpu.matmul %116, %91, %cst_109 {dimension_numbers = #tpu.dot_dimension_numbers<[1], [0], [0], [1], [0, 0, 1, 1], [], []>} : vector<2x7xbf16>, vector<7x224xbf16>, vector<2x224xf32> -> vector<2x224xf32>
    %118 = arith.truncf %117 : vector<2x224xf32> to vector<2x224xbf16>
    %c3_110 = arith.constant 3 : index
    %c0_111 = arith.constant 0 : index
    %c0_112 = arith.constant 0 : index
    %119 = vector.load %arg9[%c3_110, %c0_111, %c0_112] : memref<5x224x128xbf16, #tpu.memory_space<vmem>>, vector<1x224x128xbf16>
    %120 = vector.shape_cast %119 : vector<1x224x128xbf16> to vector<224x128xbf16>
    %cst_113 = arith.constant dense<0.000000e+00> : vector<2x128xf32>
    %121 = tpu.matmul %118, %120, %cst_113 {dimension_numbers = #tpu.dot_dimension_numbers<[1], [0], [0], [1], [0, 0, 1, 1], [], []>} : vector<2x224xbf16>, vector<224x128xbf16>, vector<2x128xf32> -> vector<2x128xf32>
    %122 = arith.addf %114, %121 : vector<2x128xf32>
    %c4_114 = arith.constant 4 : index
    %c0_115 = arith.constant 0 : index
    %c0_116 = arith.constant 0 : index
    %123 = vector.load %arg8[%c4_114, %c0_115, %c0_116] : memref<5x2x7xbf16, #tpu.memory_space<vmem>>, vector<1x2x7xbf16>
    %124 = vector.shape_cast %123 : vector<1x2x7xbf16> to vector<2x7xbf16>
    %cst_117 = arith.constant dense<0.000000e+00> : vector<2x224xf32>
    %125 = tpu.matmul %124, %91, %cst_117 {dimension_numbers = #tpu.dot_dimension_numbers<[1], [0], [0], [1], [0, 0, 1, 1], [], []>} : vector<2x7xbf16>, vector<7x224xbf16>, vector<2x224xf32> -> vector<2x224xf32>
    %126 = arith.truncf %125 : vector<2x224xf32> to vector<2x224xbf16>
    %c4_118 = arith.constant 4 : index
    %c0_119 = arith.constant 0 : index
    %c0_120 = arith.constant 0 : index
    %127 = vector.load %arg9[%c4_118, %c0_119, %c0_120] : memref<5x224x128xbf16, #tpu.memory_space<vmem>>, vector<1x224x128xbf16>
    %128 = vector.shape_cast %127 : vector<1x224x128xbf16> to vector<224x128xbf16>
    %cst_121 = arith.constant dense<0.000000e+00> : vector<2x128xf32>
    %129 = tpu.matmul %126, %128, %cst_121 {dimension_numbers = #tpu.dot_dimension_numbers<[1], [0], [0], [1], [0, 0, 1, 1], [], []>} : vector<2x224xbf16>, vector<224x128xbf16>, vector<2x128xf32> -> vector<2x128xf32>
    %130 = arith.addf %122, %129 : vector<2x128xf32>
    %c0_122 = arith.constant 0 : index
    %c0_123 = arith.constant 0 : index
    %131 = vector.load %arg10[%c0_122, %c0_123] : memref<1x128xf32, #tpu.memory_space<vmem>>, vector<1x128xf32>
    %132 = vector.broadcast %131 : vector<1x128xf32> to vector<2x128xf32>
    %133 = arith.addf %130, %132 : vector<2x128xf32>
    %cst_124 = arith.constant 0.000000e+00 : f32
    %134 = vector.broadcast %cst_124 : f32 to vector<2x128xf32>
    %135 = arith.maximumf %133, %134 : vector<2x128xf32>
    %c0_125 = arith.constant 0 : index
    %c0_126 = arith.constant 0 : index
    %136 = vector.load %arg12[%c0_125, %c0_126] : memref<1x512xf32, #tpu.memory_space<vmem>>, vector<1x512xf32>
    %137 = vector.extract_strided_slice %135 {offsets = [0, 0], sizes = [1, 128], strides = [1, 1]} : vector<2x128xf32> to vector<1x128xf32>
    %138 = arith.truncf %137 : vector<1x128xf32> to vector<1x128xbf16>
    %c0_127 = arith.constant 0 : index
    %c0_128 = arith.constant 0 : index
    %c0_129 = arith.constant 0 : index
    %139 = vector.load %arg11[%c0_127, %c0_128, %c0_129] : memref<2x128x512xbf16, #tpu.memory_space<vmem>>, vector<1x128x512xbf16>
    %140 = vector.shape_cast %139 : vector<1x128x512xbf16> to vector<128x512xbf16>
    %cst_130 = arith.constant dense<0.000000e+00> : vector<1x512xf32>
    %141 = tpu.matmul %138, %140, %cst_130 {dimension_numbers = #tpu.dot_dimension_numbers<[1], [0], [0], [1], [0, 0, 1, 1], [], []>} : vector<1x128xbf16>, vector<128x512xbf16>, vector<1x512xf32> -> vector<1x512xf32>
    %142 = arith.addf %136, %141 : vector<1x512xf32>
    %143 = vector.extract_strided_slice %135 {offsets = [1, 0], sizes = [1, 128], strides = [1, 1]} : vector<2x128xf32> to vector<1x128xf32>
    %144 = arith.truncf %143 : vector<1x128xf32> to vector<1x128xbf16>
    %c1_131 = arith.constant 1 : index
    %c0_132 = arith.constant 0 : index
    %c0_133 = arith.constant 0 : index
    %145 = vector.load %arg11[%c1_131, %c0_132, %c0_133] : memref<2x128x512xbf16, #tpu.memory_space<vmem>>, vector<1x128x512xbf16>
    %146 = vector.shape_cast %145 : vector<1x128x512xbf16> to vector<128x512xbf16>
    %cst_134 = arith.constant dense<0.000000e+00> : vector<1x512xf32>
    %147 = tpu.matmul %144, %146, %cst_134 {dimension_numbers = #tpu.dot_dimension_numbers<[1], [0], [0], [1], [0, 0, 1, 1], [], []>} : vector<1x128xbf16>, vector<128x512xbf16>, vector<1x512xf32> -> vector<1x512xf32>
    %148 = arith.addf %142, %147 : vector<1x512xf32>
    %cst_135 = arith.constant 0.000000e+00 : f32
    %149 = vector.broadcast %cst_135 : f32 to vector<1x512xf32>
    %150 = arith.maximumf %148, %149 : vector<1x512xf32>
    %151 = arith.truncf %150 : vector<1x512xf32> to vector<1x512xbf16>
    %c0_136 = arith.constant 0 : index
    %c0_137 = arith.constant 0 : index
    %152 = vector.load %arg13[%c0_136, %c0_137] : memref<512x4xbf16, #tpu.memory_space<vmem>>, vector<512x4xbf16>
    %cst_138 = arith.constant dense<0.000000e+00> : vector<1x4xf32>
    %153 = tpu.matmul %151, %152, %cst_138 {dimension_numbers = #tpu.dot_dimension_numbers<[1], [0], [0], [1], [0, 0, 1, 1], [], []>} : vector<1x512xbf16>, vector<512x4xbf16>, vector<1x4xf32> -> vector<1x4xf32>
    %c0_139 = arith.constant 0 : index
    %c0_140 = arith.constant 0 : index
    %154 = vector.load %arg14[%c0_139, %c0_140] : memref<1x4xf32, #tpu.memory_space<vmem>>, vector<1x4xf32>
    %155 = arith.addf %153, %154 : vector<1x4xf32>
    %c0_141 = arith.constant 0 : index
    %c0_142 = arith.constant 0 : index
    %c0_143 = arith.constant 0 : index
    %156 = vector.load %arg15[%c0_141, %c0_142, %c0_143] : memref<1x1x4xf32, #tpu.memory_space<vmem>>, vector<1x1x4xf32>
    %157 = vector.shape_cast %156 : vector<1x1x4xf32> to vector<1x4xf32>
    %158 = vector.shape_cast %155 : vector<1x4xf32> to vector<1x1x4xf32>
    tpu.vector_store %arg15[%c0_141, %c0_142, %c0_143], %158 {strides = array<i32>} : memref<1x1x4xf32, #tpu.memory_space<vmem>>, vector<1x1x4xf32>,
    return
  }
  func.func @transform_0(%arg0: i32) -> (i32, i32) {
    %c0_i32 = arith.constant 0 : i32
    %c0_i32_0 = arith.constant 0 : i32
    return %arg0, %c0_i32 : i32, i32
  }
  func.func @transform_1(%arg0: i32) -> (i32, i32, i32) {
    %c0_i32 = arith.constant 0 : i32
    %c0_i32_0 = arith.constant 0 : i32
    %c0_i32_1 = arith.constant 0 : i32
    %c0_i32_2 = arith.constant 0 : i32
    return %c0_i32, %c0_i32_0, %c0_i32_1 : i32, i32, i32
  }
  func.func @transform_2(%arg0: i32) -> (i32, i32, i32) {
    %c0_i32 = arith.constant 0 : i32
    %c0_i32_0 = arith.constant 0 : i32
    %c0_i32_1 = arith.constant 0 : i32
    %c0_i32_2 = arith.constant 0 : i32
    return %c0_i32, %c0_i32_0, %c0_i32_1 : i32, i32, i32
  }
  func.func @transform_3(%arg0: i32) -> (i32, i32) {
    %c0_i32 = arith.constant 0 : i32
    %c0_i32_0 = arith.constant 0 : i32
    %c0_i32_1 = arith.constant 0 : i32
    return %c0_i32, %c0_i32_0 : i32, i32
  }
  func.func @transform_4(%arg0: i32) -> (i32, i32, i32) {
    %c0_i32 = arith.constant 0 : i32
    %c0_i32_0 = arith.constant 0 : i32
    %c0_i32_1 = arith.constant 0 : i32
    %c0_i32_2 = arith.constant 0 : i32
    return %c0_i32, %c0_i32_0, %c0_i32_1 : i32, i32, i32
  }
  func.func @transform_5(%arg0: i32) -> (i32, i32, i32) {
    %c0_i32 = arith.constant 0 : i32
    %c0_i32_0 = arith.constant 0 : i32
    %c0_i32_1 = arith.constant 0 : i32
    %c0_i32_2 = arith.constant 0 : i32
    return %c0_i32, %c0_i32_0, %c0_i32_1 : i32, i32, i32
  }
  func.func @transform_6(%arg0: i32) -> (i32, i32) {
    %c0_i32 = arith.constant 0 : i32
    %c0_i32_0 = arith.constant 0 : i32
    %c0_i32_1 = arith.constant 0 : i32
    return %c0_i32, %c0_i32_0 : i32, i32
  }
  func.func @transform_7(%arg0: i32) -> (i32, i32, i32) {
    %c0_i32 = arith.constant 0 : i32
    %c0_i32_0 = arith.constant 0 : i32
    %c0_i32_1 = arith.constant 0 : i32
    %c0_i32_2 = arith.constant 0 : i32
    return %c0_i32, %c0_i32_0, %c0_i32_1 : i32, i32, i32
  }
  func.func @transform_8(%arg0: i32) -> (i32, i32, i32) {
    %c0_i32 = arith.constant 0 : i32
    %c0_i32_0 = arith.constant 0 : i32
    %c0_i32_1 = arith.constant 0 : i32
    %c0_i32_2 = arith.constant 0 : i32
    return %c0_i32, %c0_i32_0, %c0_i32_1 : i32, i32, i32
  }
  func.func @transform_9(%arg0: i32) -> (i32, i32) {
    %c0_i32 = arith.constant 0 : i32
    %c0_i32_0 = arith.constant 0 : i32
    %c0_i32_1 = arith.constant 0 : i32
    return %c0_i32, %c0_i32_0 : i32, i32
  }
  func.func @transform_10(%arg0: i32) -> (i32, i32, i32) {
    %c0_i32 = arith.constant 0 : i32
    %c0_i32_0 = arith.constant 0 : i32
    %c0_i32_1 = arith.constant 0 : i32
    %c0_i32_2 = arith.constant 0 : i32
    return %c0_i32, %c0_i32_0, %c0_i32_1 : i32, i32, i32
  }
  func.func @transform_11(%arg0: i32) -> (i32, i32) {
    %c0_i32 = arith.constant 0 : i32
    %c0_i32_0 = arith.constant 0 : i32
    %c0_i32_1 = arith.constant 0 : i32
    return %c0_i32, %c0_i32_0 : i32, i32
  }
  func.func @transform_12(%arg0: i32) -> (i32, i32) {
    %c0_i32 = arith.constant 0 : i32
    %c0_i32_0 = arith.constant 0 : i32
    %c0_i32_1 = arith.constant 0 : i32
    return %c0_i32, %c0_i32_0 : i32, i32
  }
  func.func @transform_13(%arg0: i32) -> (i32, i32) {
    %c0_i32 = arith.constant 0 : i32
    %c0_i32_0 = arith.constant 0 : i32
    %c0_i32_1 = arith.constant 0 : i32
    return %c0_i32, %c0_i32_0 : i32, i32
  }
  func.func @transform_14(%arg0: i32) -> (i32, i32, i32) {
    %c0_i32 = arith.constant 0 : i32
    %c0_i32_0 = arith.constant 0 : i32
    %c0_i32_1 = arith.constant 0 : i32
    return %arg0, %c0_i32, %c0_i32_0 : i32, i32, i32
  }
}

</mosaic_0001>

<bundles_post_ra>
// kernel: dqn_forward.1
= control target key start
LH: loop header
LB: loop body
LE: loop exit
PB: predicated region body
PF: predicated region fallthrough
CT: control target
= control target key end

     0   :  { %s10926_s0 = inlined_call_operand.vmem [shape: f32[80,120], index: 0, kind: input, shape index: {}]   ;;  %s10927_s1 = inlined_call_operand.vmem [shape: bf16[5,18,40], index: 1, kind: input, shape index: {}]   ;;  %s10928_s2 = inlined_call_operand.vmem [shape: bf16[5,120,288], index: 2, kind: input, shape index: {}]   ;;  %s10929_s3 = inlined_call_operand.vmem [shape: f32[1,288], index: 3, kind: input, shape index: {}]   ;;  %s10930_s4 = inlined_call_operand.vmem [shape: bf16[5,7,18], index: 4, kind: input, shape index: {}]   ;;  %s10931_s5 = inlined_call_operand.vmem [shape: bf16[5,288,224], index: 5, kind: input, shape index: {}]   ;;  %s10932_s6 = inlined_call_operand.vmem [shape: f32[1,224], index: 6, kind: input, shape index: {}]   ;;  %s10933_s7 = inlined_call_operand.vmem [shape: bf16[5,2,7], index: 7, kind: input, shape index: {}]   ;;  %s10934_s8 = inlined_call_operand.vmem [shape: bf16[5,224,128], index: 8, kind: input, shape index: {}]   ;;  %s10935_s9 = inlined_call_operand.vmem [shape: f32[1,128], index: 9, kind: input, shape index: {}]   ;;  %s10936_s10 = inlined_call_operand.hbm [shape: bf16[2,128,512], index: 10, kind: input, shape index: {}]   ;;  %s10937_s11 = inlined_call_operand.vmem [shape: f32[1,512], index: 11, kind: input, shape index: {}]   ;;  %s10938_s12 = inlined_call_operand.vmem [shape: bf16[512,4], index: 12, kind: input, shape index: {}]   ;;  %s10939_s13 = inlined_call_operand.vmem [shape: f32[1,4], index: 13, kind: input, shape index: {}]   ;;  %s10940_s14 = inlined_call_operand.hbm [shape: f32[2,1,4], index: 14, kind: output, shape index: {}]  }
   0x1   :  { %10944 = sst [smem:[#allocation11_spill]] %s10926_s0 }
   0x2   :  { %10945 = sst [smem:[#allocation12_spill]] %s10936_s10 }
   0x3   :  { %19 = vsyncpa [#allocation3], 0 }
   0x4   :  { %20 = vsyncpa [#allocation4], 0 }
   0x5   :  { %22 = vsyncpa [#allocation4 + $0x1], 0  ;;  %s8422_s29 = smov 0   ;;  %s8424_s30 = smov 0  }
   0x6   :  { %s8426_s15 = smov 0   ;;  %s8428_s16 = smov 0  }
   0x7 LB: > { %10946 = sst [smem:[#allocation8_spill]] %s8337_s15  ;;  %s8443_s17 = sadd.s32 4294967295, %s8341_s16   ;;  %s8341_s16 = sphi %s8428_s16, %s10953_s16   ;;  %s8337_s15 = sphi %s8426_s15, %s10955_s15   ;;  %s8333_s30 = sphi %s8424_s30, %s10957_s30   ;;  %s8329_s29 = sphi %s8422_s29, %s10956_s29  }
   0x8   : > { %s5418_s18 = sadd.s32 4294967294, %s8341_s16   ;;  %s8447_s19 = sadd.s32 1, %s8341_s16  }
   0x9   : > { %10947 = sst [smem:[#allocation9_spill]] %s8447_s19  ;;  %s334_s20 = sadd.s32 1, %s8337_s15 }
   0xa   : > { %s331_s21 = ssub.s32 %s8341_s16, %s8447_s19  ;;  %p344_p0 = scmp.ne.s32.totalorder %s8337_s15, %s8333_s30 }
   0xb   : > { %p332_p1 = scmp.eq.s32.totalorder %s331_s21, 0  ;;  %p345_p2 = scmp.eq.s32.totalorder %s8443_s17, 1 }
   0xc   : > { %p350_p3 = scmp.ne.s32.totalorder %s8333_s30, %s8329_s29  ;;  %p351_p4 = scmp.eq.s32.totalorder %s5418_s18, 1 }
   0xd   : > { %s8458_s22 = scalar_select %p332_p1, %s8337_s15, %s334_s20  }
   0xe   : > { %p8460_p5 = por %p345_p2, %p344_p0  ;;  %p8464_p6 = por %p351_p4, %p350_p3 }
   0xf   : > { %10948 = sst [smem:[#allocation10_spill]] %s8458_s22  ;;  %p5419_p7 = scmp.ge.s32.totalorder %s8341_s16, 1 }
  0x10   : > { %p358_p8 = scmp.lt.s32.totalorder %s8341_s16, 3  ;;  %p8205_p9 = scmp.eq.s32.totalorder %s8443_s17, 0 }
  0x11   : > { %s10951_s10 = sld [smem:[#allocation12_spill]]  ;;  %s8343_s28 = smov [#allocation2]  }
  0x12   : > { %p359_p10 = pnand %p5419_p7, %p358_p8  ;;  %s398_s18 = sshll.u32 %s8343_s28, 4  ;;  %s399_s18 = int_to_ptr.vmem [resolvable:$true] %s398_s18 }
  0x13   : > { %s8344_s20 = smov 256   ;;  %s8345_s21 = smov 16  }
  0x14   : > { %p8197_p11 = pneg %p359_p10  ;;  %432 = sbr.rel (%p359_p10) target bundleno = 2228 (0x8b4), region = 76 }
  0x16   : > { %p8198_p12 = pnand %p8205_p9, %p8197_p11 }
  0x17   : > { %s396_s27 = sshll.u32 %s10951_s10, 4  ;;  %s397_s27 = int_to_ptr.hbm [resolvable:$true] %s396_s27 }
  0x18   : > { %8200 = dma.hbm_to_vmem [thread:$0]  (!%p8198_p12), %s397_s27, 8192, %s399_s18, [#allocation3], %s8344_s20, %s8344_s20, %s8345_s21  }
  0x19   : > { %8320 = dma.done.wait (%p8205_p9), [#allocation3], 8192  }
  0x1a   : > { %8322 = vsyncadd (%p8205_p9), [#allocation3], 4294959104  ;;  %s478_s25 = smul.u32 5, %s8443_s17  ;;  %s10952_s0 = sld [smem:[#allocation11_spill]]  ;;  %vm511_vm0 = vcmask 1043456   ;;  %v5468_v4 = vld [vmem:[%s10928_s2 + $0x15c] sm:$0xff] }
  0x1b   : > { %v5469_v5 = vld [vmem:[%s10928_s2 + $0x164] sm:$0xf]  ;;  %v706_v7 = vunpack.c.l.b16 %v5468_v4  ;;  %v707_v8 = vunpack.c.h.b16 %v5468_v4  ;;  %v8496_v10 = vld [vmem:[%s10928_s2 + $0xa8] sm:$0xff]  ;;  %v7769_v19 = vld [vmem:[%s10928_s2 + $0x14c] sm:$0xf0]  ;;  %vm504_vm1 = vcmask 326656   ;;  %s5347_s19 = scalar_lea.hbm %s10940_s14, %s8443_s17 }
  0x1c   : > { %p479_p13 = scmp.lt.s32.totalorder %s478_s25, 9  ;;  %v708_v9 = vunpack.c.l.b16 %v5469_v5  ;;  %v896_v12 = vunpack.c.l.b16 %v8496_v10  ;;  %v5544_v18 = vld [vmem:[%s10928_s2 + $0x144] sm:$0xf]  ;;  %v7768_v22 = vld [vmem:[%s10928_s2 + $0x148] sm:$0xf]  ;;  %v7749_v31 = vld [vmem:[%s10927_s1 + $0xc] sm:$0xff] }
  0x1d   : > { %v730_v15 = vpack.c.b16 %v706_v7, %v706_v7  ;;  %v731_v16 = vpack.c.b16 %v707_v8, %v707_v8  ;;  %v5546_v23 = vld [vmem:[%s10928_s2 + $0x150] sm:$0xf0]  ;;  %v5552_v26 = vld [vmem:[%s10928_s2 + $0x14c] sm:$0xf]  ;;  %v5545_v27 = vor.u32 %v7769_v19, %v5544_v18  ;;  %v7770_v28 = vld [vmem:[%s10928_s2 + $0x154] sm:$0xf0] }
  0x1e   : > { %s10959_s25 = smov (!%p479_p13, %s478_s25), 9  ;;  %v732_v17 = vpack.c.b16 %v708_v9, %v708_v9  ;;  %v920_v24 = vpack.c.b16 %v896_v12, %v896_v12  ;;  %v5532_v29 = vld [vmem:[%s10928_s2 + $0x12c] sm:$0xf]  ;;  %v7766_v30 = vld [vmem:[%s10928_s2 + $0x134] sm:$0xf0]  ;;  %v5549_v33 = vor.u32 %v7768_v22, %v5546_v23  ;;  %v7727_v36 = vld [vmem:[%s10927_s1] sm:$0xff]  ;;  %v5553_v40 = vor.u32 %v7770_v28, %v5552_v26 }
  0x1f   : > { %s5424_s26 = sshll.u32 %s10959_s25, 3  ;;  %v762_v20 = vsel %vm511_vm0, %v730_v15, 0  ;;  %v765_v21 = vsel %vm511_vm0, %v731_v16, 0  ;;  %v7765_v34 = vld [vmem:[%s10928_s2 + $0x130] sm:$0xf]  ;;  %v5533_v41 = vor.u32 %v7766_v30, %v5532_v29  ;;  %vm754_vm2 = vcmask 982016  }
  0x20   : > { %s482_s22 = scalar_lea.vmem %s10952_s0, %s5424_s26  ;;  %770 = vmatpush.bf16.msra.mxu2 %v762_v20  ;;  %788 = vmatpush.bf16.msra.mxu3 %v765_v21  ;;  %v768_v32 = vsel %vm511_vm0, %v732_v17, 0  ;;  %v5534_v35 = vld [vmem:[%s10928_s2 + $0x138] sm:$0xf0]  ;;  %v951_v37 = vsel %vm511_vm0, %v920_v24, 0  ;;  %v5634_v38 = vld [vmem:[%s10928_s2 + $0x90] sm:$0xf] }
  0x21   : > { %v489_v0 = vld [vmem:[%s482_s22 + $0x20] sm:$0xff]  ;;  %v487_v2 = vld [vmem:[%s482_s22 + $0x10] sm:$0xff]  ;;  %v488_v3 = vld [vmem:[%s482_s22 + $0x18] sm:$0xff]  ;;  %v5537_v45 = vor.u32 %v7765_v34, %v5534_v35  ;;  %vm1851_vm3 = vcmask 1040384   ;;  %vm1847_vm4 = vcmask 146432   ;;  %vm2203_vm5 = vcmask 261120  }
  0x22   : > { %v492_v1 = vpack.c.bf16 %v489_v0, %v489_v0  ;;  %v8499_v11 = vpack.c.bf16 %v488_v3, %v487_v2  ;;  %v485_v13 = vld [vmem:[%s482_s22] sm:$0xff]  ;;  %v486_v14 = vld [vmem:[%s482_s22 + $0x8] sm:$0xff]  ;;  %v7747_v39 = vld [vmem:[%s10928_s2 + $0x98] sm:$0xf0]  ;;  %vm3604_vm6 = vcmask 1042432   ;;  %vm3600_vm7 = vcmask 56320  }
  0x23   : > { %v8518_v25 = vpack.c.bf16 %v486_v14, %v485_v13  ;;  %v5540_v42 = vld [vmem:[%s10928_s2 + $0x134] sm:$0xf]  ;;  %v7767_v43 = vld [vmem:[%s10928_s2 + $0x13c] sm:$0xf0]  ;;  %v5635_v46 = vor.u32 %v7747_v39, %v5634_v38  ;;  %v7762_v48 = vld [vmem:[%s10928_s2 + $0x118] sm:$0xf] }
  0x24   : > { %v8491_v6 = vsel %vm511_vm0, %v492_v1, 0  ;;  %771 = vmatpush.bf16.msra.mxu2 %v5545_v27  ;;  %v5520_v44 = vld [vmem:[%s10928_s2 + $0x114] sm:$0xf]  ;;  %789 = vmatpush.bf16.msra.mxu3 %v5549_v33  ;;  %v7763_v47 = vld [vmem:[%s10928_s2 + $0x11c] sm:$0xf0]  ;;  %v5541_v52 = vor.u32 %v7767_v43, %v5540_v42  ;;  %vm3815_vm8 = vcmask 785408  }
  0x25   : > { %588 = vmatpush.bf16.msra.mxu1 %v8491_v6  ;;  %520 = vmatpush.bf16.msra.mxu0 %v8491_v6  ;;  %v5522_v49 = vld [vmem:[%s10928_s2 + $0x120] sm:$0xf0]  ;;  %v5622_v50 = vld [vmem:[%s10928_s2 + $0x78] sm:$0xf]  ;;  %v5521_v53 = vor.u32 %v7763_v47, %v5520_v44  ;;  %v5528_v54 = vld [vmem:[%s10928_s2 + $0x11c] sm:$0xf] }
  0x26   : > { %v7744_v51 = vld [vmem:[%s10928_s2 + $0x80] sm:$0xf0]  ;;  %v7764_v55 = vld [vmem:[%s10928_s2 + $0x124] sm:$0xf0]  ;;  %v5525_v56 = vor.u32 %v7762_v48, %v5522_v49  ;;  %v5508_v58 = vld [vmem:[%s10928_s2 + $0xfc] sm:$0xf] }
  0x27   : > { %v5623_v57 = vor.u32 %v7744_v51, %v5622_v50  ;;  %v7760_v59 = vld [vmem:[%s10928_s2 + $0x104] sm:$0xf0]  ;;  %v7759_v60 = vld [vmem:[%s10928_s2 + $0x100] sm:$0xf]  ;;  %v5510_v61 = vld [vmem:[%s10928_s2 + $0x108] sm:$0xf0]  ;;  %v5529_v2 = vor.u32 %v7764_v55, %v5528_v54  ;;  %v897_v54 = vunpack.c.h.b16 %v8496_v10 }
  0x28   : > { %772 = vmatpush.bf16.msra.mxu2 %v5533_v41  ;;  %790 = vmatpush.bf16.msra.mxu3 %v5537_v45  ;;  %v5610_v62 = vld [vmem:[%s10928_s2 + $0x60] sm:$0xf]  ;;  %v7741_v63 = vld [vmem:[%s10928_s2 + $0x68] sm:$0xf0]  ;;  %v5433_v0 = vld [vmem:[%s10927_s1 + $0x14] sm:$0x1]  ;;  %v5509_v3 = vor.u32 %v7760_v59, %v5508_v58  ;;  %v5513_v4 = vor.u32 %v7759_v60, %v5510_v61 }
  0x29   : > { %589 = vmatpush.bf16.msra.mxu1 %v8499_v11  ;;  %521 = vmatpush.bf16.msra.mxu0 %v8499_v11  ;;  %v495_v1 = vld [vmem:[%s10927_s1 + $0x8] sm:$0x1]  ;;  %v5516_v5 = vld [vmem:[%s10928_s2 + $0x104] sm:$0xf]  ;;  %v7761_v7 = vld [vmem:[%s10928_s2 + $0x10c] sm:$0xf0]  ;;  %v5611_v8 = vor.u32 %v7741_v63, %v5610_v62  ;;  %v574_v9 = vunpack.c.l.b16 %v5433_v0 }
  0x2a   : > { %v501_v12 = vunpack.c.l.b16 %v495_v1  ;;  %v5517_v13 = vor.u32 %v7761_v7, %v5516_v5  ;;  %v5496_v16 = vld [vmem:[%s10928_s2 + $0xe4] sm:$0xf]  ;;  %v7757_v17 = vld [vmem:[%s10928_s2 + $0xec] sm:$0xf0]  ;;  %v7756_v18 = vld [vmem:[%s10928_s2 + $0xe8] sm:$0xf] }
  0x2b   : > { %v576_v14 = vpack.c.b16 %v574_v9, %v574_v9  ;;  %v5497_v19 = vor.u32 %v7757_v17, %v5496_v16  ;;  %v5498_v20 = vld [vmem:[%s10928_s2 + $0xf0] sm:$0xf0]  ;;  %v5504_v21 = vld [vmem:[%s10928_s2 + $0xec] sm:$0xf]  ;;  %v7758_v22 = vld [vmem:[%s10928_s2 + $0xf4] sm:$0xf0] }
  0x2c   : > { %773 = vmatpush.bf16.msra.mxu2 %v5521_v53  ;;  %791 = vmatpush.bf16.msra.mxu3 %v5525_v56  ;;  %v503_v15 = vpack.c.b16 %v501_v12, %v501_v12  ;;  %v5501_v23 = vor.u32 %v7756_v18, %v5498_v20  ;;  %v5505_v24 = vor.u32 %v7758_v22, %v5504_v21  ;;  %v5598_v26 = vld [vmem:[%s10928_s2 + $0x48] sm:$0xf]  ;;  %v7738_v27 = vld [vmem:[%s10928_s2 + $0x50] sm:$0xf0]  ;;  %v5484_v29 = vld [vmem:[%s10928_s2 + $0xcc] sm:$0xf] }
  0x2d   : > { %590 = vmatpush.bf16.msra.mxu1 %v8518_v25  ;;  %522 = vmatpush.bf16.msra.mxu0 %v8518_v25  ;;  %v5599_v28 = vor.u32 %v7738_v27, %v5598_v26  ;;  %v7754_v30 = vld [vmem:[%s10928_s2 + $0xd4] sm:$0xf0]  ;;  %v5486_v33 = vld [vmem:[%s10928_s2 + $0xd8] sm:$0xf0]  ;;  %v5492_v34 = vld [vmem:[%s10928_s2 + $0xd4] sm:$0xf]  ;;  %v921_v56 = vpack.c.b16 %v897_v54, %v897_v54 }
  0x2e   : > { %v7755_v35 = vld [vmem:[%s10928_s2 + $0xdc] sm:$0xf0]  ;;  %v5586_v38 = vld [vmem:[%s10928_s2 + $0x30] sm:$0xf]  ;;  %v7735_v39 = vld [vmem:[%s10928_s2 + $0x38] sm:$0xf0] }
  0x2f   : > { %v5472_v41 = vld [vmem:[%s10928_s2 + $0xb4] sm:$0xf]  ;;  %v7751_v42 = vld [vmem:[%s10928_s2 + $0xbc] sm:$0xf0]  ;;  %v7750_v43 = vld [vmem:[%s10928_s2 + $0xb8] sm:$0xf] }
  0x30   : > { %5438 = vmatmul.msk.bf16.vlgmr.msra.gmra.mxu1 %vm504_vm1, %v7749_v31  ;;  %5429 = vmatmul.msk.bf16.vlgmr.msra.gmra.mxu0 %vm504_vm1, %v7727_v36  ;;  %v7753_v31 = vld [vmem:[%s10928_s2 + $0xd0] sm:$0xf]  ;;  %v5473_v44 = vor.u32 %v7751_v42, %v5472_v41  ;;  %v5474_v45 = vld [vmem:[%s10928_s2 + $0xc0] sm:$0xf0]  ;;  %v7752_v47 = vld [vmem:[%s10928_s2 + $0xc4] sm:$0xf0] }
  0x31   : > { %806 = vmatpush.bf16.msrb.mxu0 %v768_v32  ;;  %959 = vmatpush.bf16.msrb.mxu1 %v951_v37  ;;  %v5485_v32 = vor.u32 %v7754_v30, %v5484_v29  ;;  %v5489_v36 = vor.u32 %v7753_v31, %v5486_v33  ;;  %v5493_v37 = vor.u32 %v7755_v35, %v5492_v34  ;;  %v5574_v50 = vld [vmem:[%s10928_s2 + $0x18] sm:$0xf]  ;;  %v7732_v51 = vld [vmem:[%s10928_s2 + $0x20] sm:$0xf0]  ;;  %v954_v58 = vsel %vm511_vm0, %v921_v56, 0  ;;  %s476_s18 = sand.u32 1, %s8333_s30  }
  0x32   : > { %774 = vmatpush.bf16.msra.mxu2 %v5509_v3  ;;  %792 = vmatpush.bf16.msra.mxu3 %v5513_v4  ;;  %v5477_v48 = vor.u32 %v7750_v43, %v5474_v45  ;;  %v5575_v53 = vor.u32 %v7732_v51, %v5574_v50  ;;  %v5562_v60 = vld [vmem:[%s10928_s2] sm:$0xf]  ;;  %v7729_v10 = vld [vmem:[%s10928_s2 + $0x8] sm:$0xf0]  ;;  %v7746_v62 = vld [vmem:[%s10928_s2 + $0x94] sm:$0xf] }
  0x33   : > { %v5563_v61 = vor.u32 %v7729_v10, %v5562_v60  ;;  %v5636_v63 = vld [vmem:[%s10928_s2 + $0x9c] sm:$0xf0]  ;;  %v5642_v0 = vld [vmem:[%s10928_s2 + $0x98] sm:$0xf]  ;;  %v7743_v4 = vld [vmem:[%s10928_s2 + $0x7c] sm:$0xf] }
  0x34   : > { %v5639_v1 = vor.u32 %v7746_v62, %v5636_v63  ;;  %v5624_v5 = vld [vmem:[%s10928_s2 + $0x84] sm:$0xf0]  ;;  %v5630_v7 = vld [vmem:[%s10928_s2 + $0x80] sm:$0xf]  ;;  %v7745_v9 = vld [vmem:[%s10928_s2 + $0x88] sm:$0xf0] }
  0x35   : > { %807 = vmatpush.bf16.msrb.mxu0 %v5553_v40  ;;  %960 = vmatpush.bf16.msrb.mxu1 %v5635_v46  ;;  %v5587_v40 = vor.u32 %v7735_v39, %v5586_v38  ;;  %v5480_v46 = vld [vmem:[%s10928_s2 + $0xbc] sm:$0xf]  ;;  %v5631_v12 = vor.u32 %v7745_v9, %v5630_v7  ;;  %v7742_v17 = vld [vmem:[%s10928_s2 + $0x70] sm:$0xf0]  ;;  %v5600_v20 = vld [vmem:[%s10928_s2 + $0x54] sm:$0xf0] }
  0x36   : > { %775 = vmatpush.bf16.msra.mxu2 %v5497_v19  ;;  %793 = vmatpush.bf16.msra.mxu3 %v5501_v23  ;;  %v5481_v49 = vor.u32 %v7752_v47, %v5480_v46  ;;  %v7737_v19 = vld [vmem:[%s10928_s2 + $0x4c] sm:$0xf]  ;;  %v5606_v21 = vld [vmem:[%s10928_s2 + $0x50] sm:$0xf]  ;;  %v7739_v23 = vld [vmem:[%s10928_s2 + $0x58] sm:$0xf0] }
  0x37   : > { %v5603_v22 = vor.u32 %v7737_v19, %v5600_v20  ;;  %v7734_v26 = vld [vmem:[%s10928_s2 + $0x34] sm:$0xf]  ;;  %v5588_v27 = vld [vmem:[%s10928_s2 + $0x3c] sm:$0xf0]  ;;  %v7736_v30 = vld [vmem:[%s10928_s2 + $0x40] sm:$0xf0] }
  0x38   : > { %v5591_v29 = vor.u32 %v7734_v26, %v5588_v27  ;;  %v5576_v33 = vld [vmem:[%s10928_s2 + $0x24] sm:$0xf0]  ;;  %v5582_v34 = vld [vmem:[%s10928_s2 + $0x20] sm:$0xf]  ;;  %v7733_v35 = vld [vmem:[%s10928_s2 + $0x28] sm:$0xf0] }
  0x39   : > { %808 = vmatpush.bf16.msrb.mxu0 %v5541_v52  ;;  %961 = vmatpush.bf16.msrb.mxu1 %v5623_v57  ;;  %v564_v52 = vld [vmem:[%s10928_s2 + $0xb0] sm:$0xf]  ;;  %v5583_v39 = vor.u32 %v7733_v35, %v5582_v34  ;;  %v5570_v42 = vld [vmem:[%s10928_s2 + $0x8] sm:$0xf]  ;;  %v7730_v43 = vld [vmem:[%s10928_s2 + $0x10] sm:$0xf0] }
  0x3a   : > { %776 = vmatpush.bf16.msra.mxu2 %v5485_v32  ;;  %794 = vmatpush.bf16.msra.mxu3 %v5489_v36  ;;  %v898_v55 = vunpack.c.l.b16 %v564_v52  ;;  %v7731_v32 = vld [vmem:[%s10928_s2 + $0x1c] sm:$0xf]  ;;  %v5564_v41 = vld [vmem:[%s10928_s2 + $0xc] sm:$0xf0]  ;;  %v5571_v45 = vor.u32 %v7730_v43, %v5570_v42  ;;  %v5688_v62 = vld [vmem:[%s10928_s2 + $0x218] sm:$0xf] }
  0x3b   : > { %v5579_v38 = vor.u32 %v7731_v32, %v5576_v33  ;;  %v7771_v56 = vld [vmem:[%s10927_s1 + $0x18] sm:$0xff]  ;;  %v7792_v19 = vld [vmem:[%s10928_s2 + $0x208] sm:$0xf0]  ;;  %v7787_v26 = vld [vmem:[%s10928_s2 + $0x1e4] sm:$0xf]  ;;  %vm4746_vm9 = vcmask 1042434  }
  0x3c   : > { %v922_v57 = vpack.c.b16 %v898_v55, %v898_v55  ;;  %v5739_v33 = vld [vmem:[%s10928_s2 + $0x1c8] sm:$0xf]  ;;  %v7785_v34 = vld [vmem:[%s10928_s2 + $0x1d0] sm:$0xf0]  ;;  %v7784_v35 = vld [vmem:[%s10928_s2 + $0x1cc] sm:$0xf] }
  0x3d   : > { %809 = vmatpush.bf16.msrb.mxu0 %v5529_v2  ;;  %962 = vmatpush.bf16.msrb.mxu1 %v5611_v8  ;;  %v7748_v2 = vld [vmem:[%s10928_s2 + $0xa0] sm:$0xf0]  ;;  %v5627_v8 = vor.u32 %v7743_v4, %v5624_v5  ;;  %v5727_v42 = vld [vmem:[%s10928_s2 + $0x1b0] sm:$0xf]  ;;  %v7782_v43 = vld [vmem:[%s10928_s2 + $0x1b8] sm:$0xf0] }
  0x3e   : > { %777 = vmatpush.bf16.msra.mxu2 %v5473_v44  ;;  %795 = vmatpush.bf16.msra.mxu3 %v5477_v48  ;;  %v957_v59 = vsel %vm511_vm0, %v922_v57, 0  ;;  %v5643_v3 = vor.u32 %v7748_v2, %v5642_v0  ;;  %v5652_v57 = vld [vmem:[%s10927_s1 + $0x20] sm:$0x1]  ;;  %v5910_v2 = vld [vmem:[%s10927_s1 + $0x38] sm:$0x1]  ;;  %vm4748_vm10 = vcmask 1041408  }
  0x3f   : > { %v1556_v7 = vunpack.c.l.b16 %v5910_v2  ;;  %s477_s21 = scalar_lea.vmem [#allocation5], %s476_s18  ;;  %s5351_s22 = sshll.u32 %s5347_s19, 4  ;;  %vm5336_vm11 = vcmask 24576   ;;  %s5352_s22 = int_to_ptr.hbm [resolvable:$true] %s5351_s22 }
  0x40   : > { %5439 = vmatmul.msk.bf16.gmra.mxu1 %vm504_vm1, %v576_v14  ;;  %5430 = vmatmul.msk.bf16.gmra.mxu0 %vm504_vm1, %v503_v15  ;;  %v5612_v14 = vld [vmem:[%s10928_s2 + $0x6c] sm:$0xf0]  ;;  %v5618_v15 = vld [vmem:[%s10928_s2 + $0x68] sm:$0xf]  ;;  %s5349_s0 = sshll.u32 %s477_s21, 4  ;;  %s5339_s10 = scalar_lea.sflag [#allocation4], %s476_s18  ;;  %s5350_s0 = int_to_ptr.vmem [resolvable:$true] %s5349_s0 }
  0x41   : > { %810 = vmatpush.bf16.msrb.mxu0 %v5517_v13  ;;  %963 = vmatpush.bf16.msrb.mxu1 %v5599_v28  ;;  %v7740_v13 = vld [vmem:[%s10928_s2 + $0x64] sm:$0xf]  ;;  %v5619_v18 = vor.u32 %v7742_v17, %v5618_v15  ;;  %v5594_v28 = vld [vmem:[%s10928_s2 + $0x38] sm:$0xf]  ;;  %v7790_v15 = vld [vmem:[%s10928_s2 + $0x1fc] sm:$0xf]  ;;  %v1558_v20 = vpack.c.b16 %v1556_v7, %v1556_v7 }
  0x42   : > { %977 = vmatpush.bf16.msrb.mxu2 %v954_v58  ;;  %995 = vmatpush.bf16.msrb.mxu3 %v957_v59  ;;  %v5615_v16 = vor.u32 %v7740_v13, %v5612_v14  ;;  %v5595_v31 = vor.u32 %v7736_v30, %v5594_v28  ;;  %v1022_v58 = vunpack.c.l.b16 %v5652_v57  ;;  %v5763_v13 = vld [vmem:[%s10928_s2 + $0x1f8] sm:$0xf]  ;;  %v7791_v14 = vld [vmem:[%s10928_s2 + $0x200] sm:$0xf0]  ;;  %v5765_v17 = vld [vmem:[%s10928_s2 + $0x204] sm:$0xf0] }
  0x43   : > { %v5753_v28 = vld [vmem:[%s10928_s2 + $0x1ec] sm:$0xf0]  ;;  %v7789_v30 = vld [vmem:[%s10928_s2 + $0x1f0] sm:$0xf0]  ;;  %v7780_v57 = vld [vmem:[%s10928_s2 + $0x1a8] sm:$0xf0] }
  0x44   : > { %v1024_v59 = vpack.c.b16 %v1022_v58, %v1022_v58  ;;  %v7773_v7 = vld [vmem:[%s10928_s2 + $0x170] sm:$0xf0]  ;;  %s8289_s25 = sshra.s32 %s5352_s22, 4  ;;  %s8295_s27 = scalar_lea.hbm %s10940_s14, 2  ;;  %s8290_s25 = int_to_ptr.hbm [resolvable:$true] %s8289_s25 }
  0x45   : > { %811 = vmatpush.bf16.msrb.mxu0 %v5505_v24  ;;  %964 = vmatpush.bf16.msrb.mxu1 %v5587_v40  ;;  %v5607_v24 = vor.u32 %v7739_v23, %v5606_v21  ;;  %v7728_v40 = vld [vmem:[%s10928_s2 + $0x4] sm:$0xf]  ;;  %v5768_v21 = vor.u32 %v7790_v15, %v5765_v17  ;;  %v5751_v23 = vld [vmem:[%s10928_s2 + $0x1e0] sm:$0xf]  ;;  %v7774_v15 = vld [vmem:[%s10928_s2 + $0x178] sm:$0xf0]  ;;  %p8296_p3 = scmp.lt.s32.totalorder %s8290_s25, %s10940_s14 }
  0x46   : > { %978 = vmatpush.bf16.msrb.mxu2 %v5639_v1  ;;  %996 = vmatpush.bf16.msrb.mxu3 %v5643_v3  ;;  %v5567_v44 = vor.u32 %v7728_v40, %v5564_v41  ;;  %v1156_v1 = vunpack.c.l.b16 %v5688_v62  ;;  %v5705_v62 = vld [vmem:[%s10928_s2 + $0x18c] sm:$0xf0]  ;;  %s8291_s17 = scalar_lea.hbm %s8290_s25, 1 }
  0x47   : > { %p8292_p0 = scmp.ne.s32.totalorder %s8290_s25, %s8291_s17  ;;  %p8297_p4 = scmp.lt.s32.totalorder %s8295_s27, %s8291_s17 }
  0x48   : > { %v1180_v5 = vpack.c.b16 %v1156_v1, %v1156_v1 }
  0x49   : > { %812 = vmatpush.bf16.msrb.mxu0 %v5493_v37  ;;  %965 = vmatpush.bf16.msrb.mxu1 %v5575_v53  ;;  %p8293_p1 = pnand %p8292_p0, %p8460_p5  ;;  %p8298_p7 = por %p8297_p4, %p8296_p3 }
  0x4a   : > { %979 = vmatpush.bf16.msrb.mxu2 %v5627_v8  ;;  %997 = vmatpush.bf16.msrb.mxu3 %v5631_v12  ;;  %v1215_v12 = vsel %vm511_vm0, %v1180_v5, 0  ;;  %v5691_v5 = vld [vmem:[%s10928_s2 + $0x168] sm:$0xf] }
  0x4b   : > { %p8294_p2 = pneg %p8293_p1 }
  0x4d   : > { %813 = vmatpush.bf16.msrb.mxu0 %v5481_v49  ;;  %966 = vmatpush.bf16.msrb.mxu1 %v5563_v61  ;;  %v5687_v61 = vld [vmem:[%s10928_s2 + $0x210] sm:$0xff]  ;;  %p8299_p8 = pnand %p8298_p7, %p8294_p2 }
  0x4e   : > { %980 = vmatpush.bf16.msrb.mxu2 %v5615_v16  ;;  %998 = vmatpush.bf16.msrb.mxu3 %v5619_v18  ;;  %v1154_v63 = vunpack.c.l.b16 %v5687_v61  ;;  %v1155_v0 = vunpack.c.h.b16 %v5687_v61  ;;  %v5764_v16 = vor.u32 %v7791_v14, %v5763_v13  ;;  %v5771_v18 = vld [vmem:[%s10928_s2 + $0x200] sm:$0xf]  ;;  %v5693_v13 = vld [vmem:[%s10928_s2 + $0x174] sm:$0xf0]  ;;  %v5699_v14 = vld [vmem:[%s10928_s2 + $0x170] sm:$0xf] }
  0x4f   : > { %v5700_v17 = vor.u32 %v7774_v15, %v5699_v14 }
  0x50   : > { %v1178_v3 = vpack.c.b16 %v1154_v63, %v1154_v63  ;;  %v1179_v4 = vpack.c.b16 %v1155_v0, %v1155_v0  ;;  %v5711_v63 = vld [vmem:[%s10928_s2 + $0x188] sm:$0xf]  ;;  %v7777_v0 = vld [vmem:[%s10928_s2 + $0x190] sm:$0xf0] }
  0x51   : > { %1036 = vmatpush.bf16.msra.mxu0 %v8491_v6  ;;  %v5712_v2 = vor.u32 %v7777_v0, %v5711_v63 }
  0x52   : > { %981 = vmatpush.bf16.msrb.mxu2 %v5603_v22  ;;  %999 = vmatpush.bf16.msrb.mxu3 %v5607_v24  ;;  %v1209_v8 = vsel %vm511_vm0, %v1178_v3, 0  ;;  %v1212_v9 = vsel %vm511_vm0, %v1179_v4, 0  ;;  %v5772_v22 = vor.u32 %v7792_v19, %v5771_v18  ;;  %v7788_v24 = vld [vmem:[%s10928_s2 + $0x1e8] sm:$0xf0]  ;;  %v5816_v18 = vld [vmem:[%s10928_s2 + $0x2c4] sm:$0xff] }
  0x53   : > { %1217 = vmatpush.bf16.msra.mxu1 %v1209_v8  ;;  %v5752_v27 = vor.u32 %v7788_v24, %v5751_v23  ;;  %v7772_v8 = vld [vmem:[%s10928_s2 + $0x16c] sm:$0xf]  ;;  %v1422_v23 = vunpack.c.h.b16 %v5816_v18 }
  0x54   : > { %v5817_v19 = vld [vmem:[%s10928_s2 + $0x2cc] sm:$0xf] }
  0x55   : > { %1037 = vmatpush.bf16.msra.mxu0 %v8499_v11  ;;  %v1423_v24 = vunpack.c.l.b16 %v5817_v19  ;;  %v7800_v19 = vld [vmem:[%s10928_s2 + $0x250] sm:$0xf] }
  0x56   : > { %982 = vmatpush.bf16.msrb.mxu2 %v5591_v29  ;;  %1000 = vmatpush.bf16.msrb.mxu3 %v5595_v31  ;;  %v5759_v29 = vld [vmem:[%s10928_s2 + $0x1e8] sm:$0xf]  ;;  %v5756_v31 = vor.u32 %v7787_v26, %v5753_v28 }
  0x57   : > { %1218 = vmatpush.bf16.msra.mxu1 %v5764_v16  ;;  %v5760_v32 = vor.u32 %v7789_v30, %v5759_v29  ;;  %v5696_v16 = vor.u32 %v7772_v8, %v5693_v13  ;;  %v1447_v28 = vpack.c.b16 %v1423_v24, %v1423_v24  ;;  %v5864_v8 = vld [vmem:[%s10928_s2 + $0x26c] sm:$0xf]  ;;  %v5852_v24 = vld [vmem:[%s10928_s2 + $0x254] sm:$0xf] }
  0x59   : > { %1038 = vmatpush.bf16.msra.mxu0 %v8518_v25 }
  0x5a   : > { %983 = vmatpush.bf16.msrb.mxu2 %v5579_v38  ;;  %1001 = vmatpush.bf16.msrb.mxu3 %v5583_v39  ;;  %v5747_v38 = vld [vmem:[%s10928_s2 + $0x1d0] sm:$0xf]  ;;  %v7786_v39 = vld [vmem:[%s10928_s2 + $0x1d8] sm:$0xf0] }
  0x5b   : > { %1219 = vmatpush.bf16.msra.mxu1 %v5752_v27  ;;  %v5748_v41 = vor.u32 %v7786_v39, %v5747_v38  ;;  %v1446_v27 = vpack.c.b16 %v1422_v23, %v1422_v23  ;;  %v5894_v38 = vld [vmem:[%s10928_s2 + $0x2b8] sm:$0xf0]  ;;  %v5900_v39 = vld [vmem:[%s10928_s2 + $0x2b4] sm:$0xf] }
  0x5c   : > { %v5846_v23 = vld [vmem:[%s10928_s2 + $0x258] sm:$0xf0] }
  0x5d   : > { %v1479_v30 = vsel %vm511_vm0, %v1446_v27, 0 }
  0x5e   : > { %984 = vmatpush.bf16.msrb.mxu2 %v5567_v44  ;;  %1002 = vmatpush.bf16.msrb.mxu3 %v5571_v45  ;;  %v7781_v44 = vld [vmem:[%s10928_s2 + $0x1b4] sm:$0xf]  ;;  %v5728_v45 = vor.u32 %v7782_v43, %v5727_v42 }
  0xad   : > { %v592_v36 = vpop.f32.mrf.mxu1  ;;  %v524_v37 = vpop.f32.mrf.mxu0 }
  0xb5   : > { %v594_v46 = vpop.f32.mrf.mxu1  ;;  %v526_v47 = vpop.f32.mrf.mxu0 }
  0xb6   : > { %v601_v48 = vpack.c.bf16 %v594_v46, %v592_v36  ;;  %v533_v49 = vpack.c.bf16 %v526_v47, %v524_v37  ;;  %v5740_v36 = vor.u32 %v7785_v34, %v5739_v33  ;;  %v5741_v37 = vld [vmem:[%s10928_s2 + $0x1d4] sm:$0xf0]  ;;  %v5729_v46 = vld [vmem:[%s10928_s2 + $0x1bc] sm:$0xf0]  ;;  %v5892_v34 = vld [vmem:[%s10928_s2 + $0x2ac] sm:$0xf] }
  0xb7   : > { %v5744_v40 = vor.u32 %v7784_v35, %v5741_v37  ;;  %v5735_v47 = vld [vmem:[%s10928_s2 + $0x1b8] sm:$0xf] }
  0xb8   : > { %5554 = vmatmul.msk.bf16.vlgmr.msra.gmra.mxu2 %vm754_vm2, %v601_v48  ;;  %5556 = vmatmul.msk.bf16.vlgmr.msra.gmra.mxu3 %vm754_vm2, %v601_v48  ;;  %v7813_v35 = vld [vmem:[%s10928_s2 + $0x2b4] sm:$0xf0] }
  0xb9   : > { %5558 = vmatmul.msk.bf16.vlgmr.msrb.gmra.mxu0 %vm754_vm2, %v601_v48  ;;  %5644 = vmatmul.msk.bf16.vlgmr.msrb.gmra.mxu1 %vm754_vm2, %v533_v49  ;;  %v7783_v48 = vld [vmem:[%s10928_s2 + $0x1c0] sm:$0xf0]  ;;  %v5893_v37 = vor.u32 %v7813_v35, %v5892_v34  ;;  %v7797_v34 = vld [vmem:[%s10928_s2 + $0x238] sm:$0xf] }
  0xba   : > { %1303 = vmatpush.bf16.msrb.mxu0 %v8491_v6  ;;  %1235 = vmatpush.bf16.msra.mxu2 %v1212_v9 }
  0xbb   : > { %1253 = vmatpush.bf16.msra.mxu3 %v1215_v12  ;;  %1220 = vmatpush.bf16.msra.mxu1 %v5740_v36  ;;  %v5692_v12 = vor.u32 %v7773_v7, %v5691_v5  ;;  %v7812_v36 = vld [vmem:[%s10928_s2 + $0x2b0] sm:$0xf]  ;;  %v5858_v7 = vld [vmem:[%s10928_s2 + $0x270] sm:$0xf0] }
  0xbc   : > { %v5897_v43 = vor.u32 %v7812_v36, %v5894_v38  ;;  %v5834_v36 = vld [vmem:[%s10928_s2 + $0x240] sm:$0xf0]  ;;  %v7799_v38 = vld [vmem:[%s10928_s2 + $0x244] sm:$0xf0] }
  0xbd   : > { %v597_v50 = vpop.f32.mrf.mxu1  ;;  %v529_v51 = vpop.f32.mrf.mxu0 }
  0xbe   : > { %1304 = vmatpush.bf16.msrb.mxu0 %v8499_v11  ;;  %v602_v52 = vpack.c.bf16 %v597_v50, %v597_v50  ;;  %v534_v54 = vpack.c.bf16 %v529_v51, %v529_v51  ;;  %1236 = vmatpush.bf16.msra.mxu2 %v5768_v21  ;;  %v5736_v50 = vor.u32 %v7783_v48, %v5735_v47  ;;  %v5715_v51 = vld [vmem:[%s10928_s2 + $0x198] sm:$0xf] }
  0xbf   : > { %1254 = vmatpush.bf16.msra.mxu3 %v5772_v22  ;;  %1221 = vmatpush.bf16.msra.mxu1 %v5728_v45  ;;  %v1421_v22 = vunpack.c.l.b16 %v5816_v18  ;;  %v5880_v45 = vld [vmem:[%s10928_s2 + $0x294] sm:$0xf]  ;;  %v7809_v47 = vld [vmem:[%s10928_s2 + $0x298] sm:$0xf] }
  0xc0   : > { %v7801_v18 = vld [vmem:[%s10928_s2 + $0x254] sm:$0xf0] }
  0xc1   : > { %v1445_v26 = vpack.c.b16 %v1421_v22, %v1421_v22 }
  0xc2   : > { %1305 = vmatpush.bf16.msrb.mxu0 %v8518_v25  ;;  %1237 = vmatpush.bf16.msra.mxu2 %v5756_v31  ;;  %v1482_v31 = vsel %vm511_vm0, %v1447_v28, 0  ;;  %v5849_v28 = vor.u32 %v7800_v19, %v5846_v23  ;;  %v7832_v19 = vld [vmem:[%s10928_s2 + $0x350] sm:$0xf0] }
  0xc3   : > { %1255 = vmatpush.bf16.msra.mxu3 %v5760_v32  ;;  %v1476_v29 = vsel %vm511_vm0, %v1445_v26, 0  ;;  %v7802_v26 = vld [vmem:[%s10928_s2 + $0x25c] sm:$0xf0] }
  0xc5   : > { %v599_v53 = vpop.f32.mrf.mxu1  ;;  %v531_v55 = vpop.f32.mrf.mxu0 }
  0xc6   : > { %1238 = vmatpush.bf16.msra.mxu2 %v5744_v40  ;;  %v7778_v53 = vld [vmem:[%s10928_s2 + $0x19c] sm:$0xf]  ;;  %v5717_v55 = vld [vmem:[%s10928_s2 + $0x1a4] sm:$0xf0]  ;;  %v7814_v40 = vld [vmem:[%s10928_s2 + $0x2bc] sm:$0xf0] }
  0xc7   : > { %1256 = vmatpush.bf16.msra.mxu3 %v5748_v41  ;;  %v5720_v58 = vor.u32 %v7778_v53, %v5717_v55 }
  0xc8   : > { %5555 = vmatmul.msk.bf16.gmra.mxu2 %vm754_vm2, %v602_v52  ;;  %5557 = vmatmul.msk.bf16.gmra.mxu3 %vm754_vm2, %v602_v52 }
  0xc9   : > { %5559 = vmatmul.msk.bf16.gmra.mxu0 %vm754_vm2, %v602_v52  ;;  %5645 = vmatmul.msk.bf16.gmra.mxu1 %vm754_vm2, %v534_v54  ;;  %v7779_v52 = vld [vmem:[%s10928_s2 + $0x1a0] sm:$0xf0] }
  0xcb   : > { %1257 = vmatpush.bf16.msra.mxu3 %v5736_v50  ;;  %v5888_v50 = vld [vmem:[%s10928_s2 + $0x29c] sm:$0xf] }
  0xd8   : > { %5646 = vmatmul.msk.bf16.vlgmr.msrb.gmra.mxu2 %vm754_vm2, %v533_v49  ;;  %5648 = vmatmul.msk.bf16.vlgmr.msrb.gmra.mxu3 %vm754_vm2, %v533_v49  ;;  %v5732_v49 = vor.u32 %v7781_v44, %v5729_v46  ;;  %v5901_v44 = vor.u32 %v7814_v40, %v5900_v39  ;;  %v7810_v46 = vld [vmem:[%s10928_s2 + $0x29c] sm:$0xf0]  ;;  %v5837_v39 = vor.u32 %v7797_v34, %v5834_v36  ;;  %v5997_v36 = vld [vmem:[%s10928_s2 + $0x330] sm:$0xf] }
  0xd9   : > { %5657 = vmatmul.msk.bf16.vlgmr.msra.gmra.mxu0 %vm504_vm1, %v7771_v56  ;;  %v5723_v56 = vld [vmem:[%s10928_s2 + $0x1a0] sm:$0xf]  ;;  %v5881_v48 = vor.u32 %v7810_v46, %v5880_v45  ;;  %v5820_v46 = vld [vmem:[%s10928_s2 + $0x21c] sm:$0xf] }
  0xda   : > { %1570 = vmatpush.bf16.msra.mxu0 %v8491_v6  ;;  %v7793_v6 = vld [vmem:[%s10927_s1 + $0x24] sm:$0xff]  ;;  %1239 = vmatpush.bf16.msra.mxu2 %v5732_v49 }
  0xdb   : > { %v5882_v49 = vld [vmem:[%s10928_s2 + $0x2a0] sm:$0xf0] }
  0xde   : > { %1571 = vmatpush.bf16.msra.mxu0 %v8499_v11  ;;  %v5781_v11 = vld [vmem:[%s10927_s1 + $0x2c] sm:$0x1]  ;;  %1240 = vmatpush.bf16.msra.mxu2 %v5720_v58  ;;  %v7807_v58 = vld [vmem:[%s10928_s2 + $0x284] sm:$0xf0] }
  0xdf   : > { %v1289_v60 = vunpack.c.l.b16 %v5781_v11 }
  0xe1   : > { %v1291_v10 = vpack.c.b16 %v1289_v60, %v1289_v60  ;;  %v5703_v60 = vld [vmem:[%s10928_s2 + $0x180] sm:$0xf] }
  0xe2   : > { %1572 = vmatpush.bf16.msra.mxu0 %v8518_v25  ;;  %v7815_v25 = vld [vmem:[%s10927_s1 + $0x30] sm:$0xff] }
  0xe8   : > { %5647 = vmatmul.msk.bf16.gmra.mxu2 %vm754_vm2, %v534_v54  ;;  %5649 = vmatmul.msk.bf16.gmra.mxu3 %vm754_vm2, %v534_v54  ;;  %v5716_v54 = vor.u32 %v7779_v52, %v5715_v51  ;;  %v7811_v51 = vld [vmem:[%s10928_s2 + $0x2a4] sm:$0xf0]  ;;  %v5885_v52 = vor.u32 %v7809_v47, %v5882_v49 }
  0xe9   : > { %5658 = vmatmul.msk.bf16.gmra.mxu0 %vm504_vm1, %v1024_v59  ;;  %v5724_v59 = vor.u32 %v7780_v57, %v5723_v56  ;;  %v5889_v53 = vor.u32 %v7811_v51, %v5888_v50  ;;  %v5868_v57 = vld [vmem:[%s10928_s2 + $0x27c] sm:$0xf]  ;;  %v7795_v47 = vld [vmem:[%s10928_s2 + $0x224] sm:$0xf0]  ;;  %v7796_v50 = vld [vmem:[%s10928_s2 + $0x22c] sm:$0xf0] }
  0xea   : > { %1222 = vmatpush.bf16.msra.mxu1 %v5716_v54  ;;  %v5821_v49 = vor.u32 %v7795_v47, %v5820_v46 }
  0xeb   : > { %1258 = vmatpush.bf16.msra.mxu3 %v5724_v59  ;;  %v7806_v59 = vld [vmem:[%s10928_s2 + $0x280] sm:$0xf] }
  0xef   : > { %1259 = vmatpush.bf16.msra.mxu3 %v5712_v2  ;;  %v7804_v2 = vld [vmem:[%s10928_s2 + $0x26c] sm:$0xf0] }
  0xf3   : > { %1260 = vmatpush.bf16.msra.mxu3 %v5700_v17  ;;  %v5844_v17 = vld [vmem:[%s10928_s2 + $0x24c] sm:$0xf] }
  0xf4   : > { %v5845_v22 = vor.u32 %v7801_v18, %v5844_v17  ;;  %v6009_v18 = vld [vmem:[%s10928_s2 + $0x348] sm:$0xf] }
  0xf5   : > { %v6010_v23 = vor.u32 %v7832_v19, %v6009_v18  ;;  %v5949_v18 = vld [vmem:[%s10928_s2 + $0x2d0] sm:$0xf]  ;;  %v7817_v19 = vld [vmem:[%s10928_s2 + $0x2d8] sm:$0xf0] }
  0xf7   : > { %1520 = vmatpush.bf16.msrb.mxu3 %v1482_v31  ;;  %v7798_v31 = vld [vmem:[%s10928_s2 + $0x23c] sm:$0xf0] }
  0xf9   : > { %5786 = vmatmul.msk.bf16.vlgmr.msrb.gmra.mxu0 %vm504_vm1, %v7793_v6 }
  0xfb   : > { %1521 = vmatpush.bf16.msrb.mxu3 %v5901_v44 }
  0xff   : > { %1522 = vmatpush.bf16.msrb.mxu3 %v5889_v53 }
 0x109   : > { %5787 = vmatmul.msk.bf16.gmra.mxu0 %vm504_vm1, %v1291_v10  ;;  %v7776_v10 = vld [vmem:[%s10928_s2 + $0x188] sm:$0xf0] }
 0x10a   : > { %v5704_v61 = vor.u32 %v7776_v10, %v5703_v60  ;;  %v5870_v60 = vld [vmem:[%s10928_s2 + $0x288] sm:$0xf0]  ;;  %v5876_v10 = vld [vmem:[%s10928_s2 + $0x284] sm:$0xf] }
 0x10c   : > { %1223 = vmatpush.bf16.msra.mxu1 %v5704_v61 }
 0x110   : > { %1224 = vmatpush.bf16.msra.mxu1 %v5692_v12  ;;  %v7805_v12 = vld [vmem:[%s10928_s2 + $0x274] sm:$0xf0] }
 0x111   : > { %v5865_v14 = vor.u32 %v7805_v12, %v5864_v8  ;;  %v6023_v12 = vld [vmem:[%s10928_s2 + $0x36c] sm:$0xf0] }
 0x114   : > { %1484 = vmatpush.bf16.msrb.mxu1 %v1476_v29  ;;  %v5853_v29 = vor.u32 %v7802_v26, %v5852_v24  ;;  %v6011_v24 = vld [vmem:[%s10928_s2 + $0x354] sm:$0xf0]  ;;  %v6017_v26 = vld [vmem:[%s10928_s2 + $0x350] sm:$0xf] }
 0x118   : > { %1485 = vmatpush.bf16.msrb.mxu1 %v5893_v37  ;;  %v5840_v37 = vld [vmem:[%s10928_s2 + $0x23c] sm:$0xf] }
 0x119   : > { %5915 = vmatmul.msk.bf16.vlgmr.msra.gmra.mxu0 %vm504_vm1, %v7815_v25  ;;  %v7775_v25 = vld [vmem:[%s10928_s2 + $0x184] sm:$0xf]  ;;  %v5841_v40 = vor.u32 %v7799_v38, %v5840_v37  ;;  %v7829_v37 = vld [vmem:[%s10928_s2 + $0x338] sm:$0xf0]  ;;  %v7828_v38 = vld [vmem:[%s10928_s2 + $0x334] sm:$0xf] }
 0x11a   : > { %v5708_v1 = vor.u32 %v7775_v25, %v5705_v62  ;;  %v7808_v25 = vld [vmem:[%s10928_s2 + $0x28c] sm:$0xf0]  ;;  %v5873_v62 = vor.u32 %v7806_v59, %v5870_v60 }
 0x11b   : > { %v5877_v63 = vor.u32 %v7808_v25, %v5876_v10 }
 0x11c   : > { %1241 = vmatpush.bf16.msra.mxu2 %v5708_v1  ;;  %1486 = vmatpush.bf16.msrb.mxu1 %v5881_v48  ;;  %v5856_v1 = vld [vmem:[%s10928_s2 + $0x264] sm:$0xf]  ;;  %v7794_v48 = vld [vmem:[%s10928_s2 + $0x220] sm:$0xf] }
 0x11d   : > { %1523 = vmatpush.bf16.msrb.mxu3 %v5877_v63  ;;  %v5857_v5 = vor.u32 %v7804_v2, %v5856_v1 }
 0x120   : > { %1242 = vmatpush.bf16.msra.mxu2 %v5696_v16 }
 0x121   : > { %1524 = vmatpush.bf16.msrb.mxu3 %v5865_v14  ;;  %v7836_v14 = vld [vmem:[%s10928_s2 + $0x370] sm:$0xf0] }
 0x124   : > { %1502 = vmatpush.bf16.msrb.mxu2 %v1479_v30  ;;  %v5832_v30 = vld [vmem:[%s10928_s2 + $0x234] sm:$0xf] }
 0x125   : > { %v5833_v35 = vor.u32 %v7798_v31, %v5832_v30  ;;  %1525 = vmatpush.bf16.msrb.mxu3 %v5853_v29 }
 0x128   : > { %1503 = vmatpush.bf16.msrb.mxu2 %v5897_v43 }
 0x129   : > { %5916 = vmatmul.msk.bf16.gmra.mxu0 %vm504_vm1, %v1558_v20  ;;  %1526 = vmatpush.bf16.msrb.mxu3 %v5841_v40  ;;  %v7830_v40 = vld [vmem:[%s10928_s2 + $0x340] sm:$0xf0] }
 0x12c   : > { %1504 = vmatpush.bf16.msrb.mxu2 %v5885_v52 }
 0x130   : > { %1505 = vmatpush.bf16.msrb.mxu2 %v5873_v62 }
 0x136   : > { %v8931_v6 = vpop.f32.mrf.mxu0  ;;  %v968_v11 = vpop.f32.mrf.mxu1 }
 0x13b   : > { %v779_v3 = vpop.f32.mrf.mxu2  ;;  %v8951_v4 = vpop.f32.mrf.mxu3 }
 0x13c   : > { %v8962_v9 = vadd.f32 %v968_v11, %v779_v3  ;;  %v5869_v11 = vor.u32 %v7807_v58, %v5868_v57  ;;  %v7803_v3 = vld [vmem:[%s10928_s2 + $0x268] sm:$0xf]  ;;  %v5946_v57 = vld [vmem:[%s10928_s2 + $0x380] sm:$0xf] }
 0x13d   : > { %v5861_v13 = vor.u32 %v7803_v3, %v5858_v7  ;;  %v1690_v60 = vunpack.c.l.b16 %v5946_v57  ;;  %v6021_v3 = vld [vmem:[%s10928_s2 + $0x360] sm:$0xf]  ;;  %v7834_v7 = vld [vmem:[%s10928_s2 + $0x364] sm:$0xf] }
 0x13e   : > { %v8979_v20 = vpop.f32.mrf.mxu0  ;;  %v8981_v21 = vpop.f32.mrf.mxu1  ;;  %1487 = vmatpush.bf16.msrb.mxu1 %v5869_v11 }
 0x13f   : > { %1506 = vmatpush.bf16.msrb.mxu2 %v5861_v13  ;;  %v6029_v13 = vld [vmem:[%s10928_s2 + $0x368] sm:$0xf] }
 0x140   : > { %v6030_v17 = vor.u32 %v7836_v14, %v6029_v13 }
 0x142   : > { %1488 = vmatpush.bf16.msrb.mxu1 %v5857_v5  ;;  %v7835_v5 = vld [vmem:[%s10928_s2 + $0x368] sm:$0xf0] }
 0x143   : > { %v8986_v32 = vpop.f32.mrf.mxu2  ;;  %v8988_v33 = vpop.f32.mrf.mxu3  ;;  %1507 = vmatpush.bf16.msrb.mxu2 %v5849_v28  ;;  %v6022_v8 = vor.u32 %v7835_v5, %v6021_v3  ;;  %v5961_v3 = vld [vmem:[%s10928_s2 + $0x2e8] sm:$0xf]  ;;  %v7820_v5 = vld [vmem:[%s10928_s2 + $0x2f0] sm:$0xf0] }
 0x144   : > { %v5962_v13 = vor.u32 %v7820_v5, %v5961_v3 }
 0x146   : > { %v9008_v41 = vpop.f32.mrf.mxu0  ;;  %v973_v42 = vpop.f32.mrf.mxu1  ;;  %1489 = vmatpush.bf16.msrb.mxu1 %v5845_v22  ;;  %v7831_v22 = vld [vmem:[%s10928_s2 + $0x34c] sm:$0xf] }
 0x147   : > { %1508 = vmatpush.bf16.msrb.mxu2 %v5837_v39  ;;  %v6014_v28 = vor.u32 %v7831_v22, %v6011_v24  ;;  %v6005_v39 = vld [vmem:[%s10928_s2 + $0x338] sm:$0xf]  ;;  %v7816_v22 = vld [vmem:[%s10928_s2 + $0x2d4] sm:$0xf]  ;;  %v5951_v24 = vld [vmem:[%s10928_s2 + $0x2dc] sm:$0xf0] }
 0x148   : > { %v6006_v47 = vor.u32 %v7830_v40, %v6005_v39 }
 0x14a   : > { %1490 = vmatpush.bf16.msrb.mxu1 %v5833_v35 }
 0x14b   : > { %v784_v54 = vpop.f32.mrf.mxu2  ;;  %v9028_v55 = vpop.f32.mrf.mxu3 }
 0x14c   : > { %v9030_v56 = vadd.f32 %v973_v42, %v784_v54  ;;  %v5945_v54 = vld [vmem:[%s10928_s2 + $0x378] sm:$0xff] }
 0x14d   : > { %v1688_v59 = vunpack.c.l.b16 %v5945_v54  ;;  %v1689_v11 = vunpack.c.h.b16 %v5945_v54 }
 0x14e   : > { %v822_v61 = vpop.f32.mrf.mxu0  ;;  %v975_v0 = vpop.f32.mrf.mxu1  ;;  %1491 = vmatpush.bf16.msrb.mxu1 %v5821_v49  ;;  %v7826_v49 = vld [vmem:[%s10928_s2 + $0x320] sm:$0xf0] }
 0x14f   : > { %v1712_v10 = vpack.c.b16 %v1688_v59, %v1688_v59  ;;  %v1713_v25 = vpack.c.b16 %v1689_v11, %v1689_v11  ;;  %v1714_v61 = vpack.c.b16 %v1690_v60, %v1690_v60  ;;  %v5973_v59 = vld [vmem:[%s10928_s2 + $0x300] sm:$0xf]  ;;  %v7823_v11 = vld [vmem:[%s10928_s2 + $0x308] sm:$0xf0]  ;;  %v7822_v60 = vld [vmem:[%s10928_s2 + $0x304] sm:$0xf] }
 0x151   : > { %v1743_v0 = vsel %vm511_vm0, %v1712_v10, 0  ;;  %v1746_v1 = vsel %vm511_vm0, %v1713_v25, 0  ;;  %v1749_v2 = vsel %vm511_vm0, %v1714_v61, 0  ;;  %v5974_v10 = vor.u32 %v7823_v11, %v5973_v59  ;;  %v5975_v25 = vld [vmem:[%s10928_s2 + $0x30c] sm:$0xf0] }
 0x152   : > { %1751 = vmatpush.bf16.msrb.mxu0 %v1743_v0  ;;  %v5981_v61 = vld [vmem:[%s10928_s2 + $0x308] sm:$0xf] }
 0x153   : > { %v786_v15 = vpop.f32.mrf.mxu2  ;;  %v804_v16 = vpop.f32.mrf.mxu3 }
 0x154   : > { %v6026_v16 = vor.u32 %v7834_v7, %v6023_v12  ;;  %v7819_v7 = vld [vmem:[%s10928_s2 + $0x2ec] sm:$0xf]  ;;  %v5963_v12 = vld [vmem:[%s10928_s2 + $0x2f4] sm:$0xf0] }
 0x155   : > { %v5966_v14 = vor.u32 %v7819_v7, %v5963_v12 }
 0x156   : > { %v1040_v27 = vpop.f32.mrf.mxu0  ;;  %1752 = vmatpush.bf16.msrb.mxu0 %v6022_v8 }
 0x15a   : > { %1753 = vmatpush.bf16.msrb.mxu0 %v6010_v23 }
 0x15b   : > { %v986_v42 = vpop.f32.mrf.mxu2  ;;  %v1004_v43 = vpop.f32.mrf.mxu3 }
 0x15c   : > { %v9105_v44 = vadd.f32 %v986_v42, %v8951_v4  ;;  %v9108_v45 = vadd.f32 %v1004_v43, %v8931_v6  ;;  %v5822_v6 = vld [vmem:[%s10928_s2 + $0x228] sm:$0xf0]  ;;  %v5828_v4 = vld [vmem:[%s10928_s2 + $0x224] sm:$0xf] }
 0x15d   : > { %v5825_v52 = vor.u32 %v7794_v48, %v5822_v6  ;;  %v5829_v53 = vor.u32 %v7796_v50, %v5828_v4  ;;  %v5985_v48 = vld [vmem:[%s10928_s2 + $0x318] sm:$0xf]  ;;  %v7825_v6 = vld [vmem:[%s10928_s2 + $0x31c] sm:$0xf]  ;;  %v5987_v50 = vld [vmem:[%s10928_s2 + $0x324] sm:$0xf0] }
 0x15e   : > { %v1042_v51 = vpop.f32.mrf.mxu0  ;;  %v5986_v4 = vor.u32 %v7826_v49, %v5985_v48 }
 0x15f   : > { %v1049_v58 = vpack.c.bf16 %v1042_v51, %v1040_v27  ;;  %1509 = vmatpush.bf16.msrb.mxu2 %v5825_v52  ;;  %1527 = vmatpush.bf16.msrb.mxu3 %v5829_v53  ;;  %v7833_v27 = vld [vmem:[%s10928_s2 + $0x358] sm:$0xf0]  ;;  %v5993_v51 = vld [vmem:[%s10928_s2 + $0x320] sm:$0xf]  ;;  %v7827_v52 = vld [vmem:[%s10928_s2 + $0x328] sm:$0xf0]  ;;  %v5990_v53 = vor.u32 %v7825_v6, %v5987_v50 }
 0x160   : > { %v6018_v29 = vor.u32 %v7833_v27, %v6017_v26  ;;  %v5994_v54 = vor.u32 %v7827_v52, %v5993_v51  ;;  %v5957_v26 = vld [vmem:[%s10928_s2 + $0x2d8] sm:$0xf]  ;;  %v7818_v27 = vld [vmem:[%s10928_s2 + $0x2e0] sm:$0xf0] }
 0x161   : > { %5773 = vmatmul.msk.bf16.vlgmr.msra.gmra.mxu1 %vm754_vm2, %v1049_v58  ;;  %5775 = vmatmul.msk.bf16.vlgmr.msra.gmra.mxu2 %vm754_vm2, %v1049_v58 }
 0x162   : > { %5777 = vmatmul.msk.bf16.vlgmr.msra.gmra.mxu3 %vm754_vm2, %v1049_v58  ;;  %8183 = vmatpush.bf16.msra.mxu1 %v1743_v0  ;;  %v7824_v0 = vld [vmem:[%s10928_s2 + $0x310] sm:$0xf0] }
 0x163   : > { %v9137_v62 = vpop.f32.mrf.mxu2  ;;  %v9139_v63 = vpop.f32.mrf.mxu3  ;;  %1769 = vmatpush.bf16.msra.mxu2 %v1746_v1  ;;  %1787 = vmatpush.bf16.msra.mxu3 %v1749_v2  ;;  %v5978_v2 = vor.u32 %v7822_v60, %v5975_v25 }
 0x166   : > { %v1045_v15 = vpop.f32.mrf.mxu0  ;;  %8184 = vmatpush.bf16.msra.mxu1 %v6022_v8  ;;  %v5982_v8 = vor.u32 %v7824_v0, %v5981_v61 }
 0x167   : > { %1770 = vmatpush.bf16.msra.mxu2 %v6026_v16  ;;  %1788 = vmatpush.bf16.msra.mxu3 %v6030_v17  ;;  %v1050_v46 = vpack.c.bf16 %v1045_v15, %v1045_v15  ;;  %v5969_v15 = vld [vmem:[%s10928_s2 + $0x2f0] sm:$0xf]  ;;  %v7821_v16 = vld [vmem:[%s10928_s2 + $0x2f8] sm:$0xf0] }
 0x168   : > { %v5970_v17 = vor.u32 %v7821_v16, %v5969_v15 }
 0x16a   : > { %8185 = vmatpush.bf16.msra.mxu1 %v6010_v23  ;;  %v5950_v23 = vor.u32 %v7817_v19, %v5949_v18 }
 0x16b   : > { %v991_v30 = vpop.f32.mrf.mxu2  ;;  %v1009_v31 = vpop.f32.mrf.mxu3  ;;  %1771 = vmatpush.bf16.msra.mxu2 %v6014_v28  ;;  %1789 = vmatpush.bf16.msra.mxu3 %v6018_v29  ;;  %v5954_v29 = vor.u32 %v7816_v22, %v5951_v24 }
 0x16c   : > { %v9181_v34 = vadd.f32 %v991_v30, %v9028_v55  ;;  %v9184_v35 = vadd.f32 %v1009_v31, %v9008_v41  ;;  %v5998_v55 = vor.u32 %v7829_v37, %v5997_v36  ;;  %v5999_v41 = vld [vmem:[%s10928_s2 + $0x33c] sm:$0xf0]  ;;  %v5958_v31 = vor.u32 %v7818_v27, %v5957_v26 }
 0x16d   : > { %v6002_v43 = vor.u32 %v7828_v38, %v5999_v41 }
 0x16e   : > { %v1047_v42 = vpop.f32.mrf.mxu0  ;;  %1754 = vmatpush.bf16.msrb.mxu0 %v5998_v55  ;;  %8186 = vmatpush.bf16.msra.mxu1 %v5998_v55 }
 0x16f   : > { %1772 = vmatpush.bf16.msra.mxu2 %v6002_v43  ;;  %1790 = vmatpush.bf16.msra.mxu3 %v6006_v47 }
 0x171   : > { %5774 = vmatmul.msk.bf16.gmra.mxu1 %vm754_vm2, %v1050_v46  ;;  %5776 = vmatmul.msk.bf16.gmra.mxu2 %vm754_vm2, %v1050_v46 }
 0x172   : > { %5778 = vmatmul.msk.bf16.gmra.mxu3 %vm754_vm2, %v1050_v46  ;;  %1755 = vmatpush.bf16.msrb.mxu0 %v5986_v4 }
 0x173   : > { %v993_v57 = vpop.f32.mrf.mxu2  ;;  %v1011_v58 = vpop.f32.mrf.mxu3  ;;  %1773 = vmatpush.bf16.msra.mxu2 %v5990_v53  ;;  %8187 = vmatpush.bf16.msra.mxu1 %v5986_v4 }
 0x174   : > { %1791 = vmatpush.bf16.msra.mxu3 %v5994_v54 }
 0x176   : > { %v1307_v1 = vpop.f32.mrf.mxu0  ;;  %1756 = vmatpush.bf16.msrb.mxu0 %v5974_v10 }
 0x177   : > { %1774 = vmatpush.bf16.msra.mxu2 %v5978_v2  ;;  %8188 = vmatpush.bf16.msra.mxu1 %v5974_v10 }
 0x178   : > { %1792 = vmatpush.bf16.msra.mxu3 %v5982_v8  ;;  %v971_v8 = vadd.f32 %v8981_v21, %v8986_v32 }
 0x17a   : > { %1757 = vmatpush.bf16.msrb.mxu0 %v5962_v13 }
 0x17b   : > { %1775 = vmatpush.bf16.msra.mxu2 %v5966_v14  ;;  %8189 = vmatpush.bf16.msra.mxu1 %v5962_v13  ;;  %v1814_v14 = vld [vmem:[%s10929_s3] sm:$0x7] }
 0x17c   : > { %1793 = vmatpush.bf16.msra.mxu3 %v5970_v17  ;;  %v1816_v24 = vperm.slane %v1814_v14, 0 }
 0x17e   : > { %v1309_v28 = vpop.f32.mrf.mxu0  ;;  %1758 = vmatpush.bf16.msrb.mxu0 %v5950_v23 }
 0x17f   : > { %v1316_v30 = vpack.c.bf16 %v1309_v28, %v1307_v1  ;;  %1776 = vmatpush.bf16.msra.mxu2 %v5954_v29  ;;  %8190 = vmatpush.bf16.msra.mxu1 %v5950_v23 }
 0x180   : > { %1794 = vmatpush.bf16.msra.mxu3 %v5958_v31 }
 0x181   : > { %5902 = vmatmul.msk.bf16.vlgmr.msrb.gmra.mxu1 %vm754_vm2, %v1316_v30  ;;  %5904 = vmatmul.msk.bf16.vlgmr.msrb.gmra.mxu2 %vm754_vm2, %v1316_v30 }
 0x182   : > { %5906 = vmatmul.msk.bf16.vlgmr.msrb.gmra.mxu3 %vm754_vm2, %v1316_v30 }
 0x186   : > { %v1312_v36 = vpop.f32.mrf.mxu0 }
 0x187   : > { %v1317_v38 = vpack.c.bf16 %v1312_v36, %v1312_v36 }
 0x18e   : > { %v1314_v37 = vpop.f32.mrf.mxu0 }
 0x18f   : > { %v989_v37 = vadd.f32 %v9137_v62, %v8988_v33 }
 0x191   : > { %5903 = vmatmul.msk.bf16.gmra.mxu1 %vm754_vm2, %v1317_v38  ;;  %5905 = vmatmul.msk.bf16.gmra.mxu2 %vm754_vm2, %v1317_v38 }
 0x192   : > { %5907 = vmatmul.msk.bf16.gmra.mxu3 %vm754_vm2, %v1317_v38 }
 0x196   : > { %v1574_v55 = vpop.f32.mrf.mxu0 }
 0x19e   : > { %v1576_v41 = vpop.f32.mrf.mxu0 }
 0x19f   : > { %v1583_v39 = vpack.c.bf16 %v1576_v41, %v1574_v55  ;;  %v1007_v41 = vadd.f32 %v9139_v63, %v8979_v20 }
 0x1a1   : > { %6031 = vmatmul.msk.bf16.vlgmr.msrb.gmra.mxu0 %vm754_vm2, %v1583_v39  ;;  %6033 = vmatmul.msk.bf16.vlgmr.msra.gmra.mxu2 %vm754_vm2, %v1583_v39 }
 0x1a2   : > { %6035 = vmatmul.msk.bf16.vlgmr.msra.gmra.mxu3 %vm754_vm2, %v1583_v39 }
 0x1a6   : > { %v1579_v40 = vpop.f32.mrf.mxu0 }
 0x1a7   : > { %v1584_v42 = vpack.c.bf16 %v1579_v40, %v1579_v40 }
 0x1a9   : > { %6032 = vmatmul.msk.bf16.vlgmr.msra.gmra.mxu1 %vm754_vm2, %v1584_v42 }
 0x1ae   : > { %v1581_v43 = vpop.f32.mrf.mxu0 }
 0x1b1   : > { %6034 = vmatmul.msk.bf16.gmra.mxu2 %vm754_vm2, %v1584_v42 }
 0x1b2   : > { %6036 = vmatmul.msk.bf16.gmra.mxu3 %vm754_vm2, %v1584_v42 }
 0x1de   : > { %v1226_v46 = vpop.f32.mrf.mxu1 }
 0x1df   : > { %v1271_v47 = vadd.f32 %v1226_v46, %v8962_v9 }
 0x1e4   : > { %v1244_v48 = vpop.f32.mrf.mxu2 }
 0x1e5   : > { %v9293_v49 = vadd.f32 %v1244_v48, %v9105_v44  ;;  %v1262_v6 = vpop.f32.mrf.mxu3 }
 0x1e6   : > { %v9296_v4 = vadd.f32 %v1262_v6, %v9108_v45  ;;  %v1228_v50 = vpop.f32.mrf.mxu1 }
 0x1e7   : > { %v1274_v12 = vadd.f32 %v1228_v50, %v971_v8 }
 0x1ec   : > { %v1246_v51 = vpop.f32.mrf.mxu2 }
 0x1ed   : > { %v1264_v52 = vpop.f32.mrf.mxu3  ;;  %v1275_v40 = vadd.f32 %v1246_v51, %v989_v37  ;;  %v7903_v37 = vld [vmem:[%s10931_s5 + $0x214] sm:$0xf] }
 0x1ee   : > { %v1231_v53 = vpop.f32.mrf.mxu1  ;;  %v1276_v43 = vadd.f32 %v1264_v52, %v1007_v41  ;;  %v7883_v41 = vld [vmem:[%s10931_s5 + $0x174] sm:$0xf] }
 0x1ef   : > { %v1277_v13 = vadd.f32 %v1231_v53, %v9030_v56 }
 0x1f4   : > { %v1249_v54 = vpop.f32.mrf.mxu2 }
 0x1f5   : > { %v1267_v57 = vpop.f32.mrf.mxu3  ;;  %v1278_v46 = vadd.f32 %v1249_v54, %v9181_v34 }
 0x1f6   : > { %v1233_v58 = vpop.f32.mrf.mxu1 }
 0x1f7   : > { %v1817_v58 = vperm.slane %v1814_v14, 1 }
 0x1fc   : > { %v1251_v59 = vpop.f32.mrf.mxu2 }
 0x1fd   : > { %v1269_v11 = vpop.f32.mrf.mxu3 }
 0x1fe   : > { %v1493_v60 = vpop.f32.mrf.mxu1  ;;  %v9322_v11 = vld [vmem:[%s10930_s4] sm:$0xf] }
 0x1ff   : > { %v1538_v19 = vadd.f32 %v1493_v60, %v1271_v47  ;;  %v1279_v47 = vadd.f32 %v1267_v57, %v9184_v35  ;;  %v1818_v35 = vperm.slane %v1814_v14, 2 }
 0x204   : > { %v1511_v10 = vpop.f32.mrf.mxu2 }
 0x205   : > { %v1529_v9 = vpop.f32.mrf.mxu3  ;;  %v1539_v50 = vadd.f32 %v1511_v10, %v9293_v49 }
 0x206   : > { %v1495_v25 = vpop.f32.mrf.mxu1  ;;  %v1540_v51 = vadd.f32 %v1529_v9, %v9296_v4 }
 0x207   : > { %v1541_v16 = vadd.f32 %v1495_v25, %v1274_v12  ;;  %v7887_v12 = vld [vmem:[%s10931_s5 + $0x194] sm:$0xf] }
 0x20c   : > { %v1513_v61 = vpop.f32.mrf.mxu2 }
 0x20d   : > { %v1531_v44 = vpop.f32.mrf.mxu3  ;;  %v1542_v48 = vadd.f32 %v1513_v61, %v1275_v40  ;;  %v6124_v40 = vld [vmem:[%s10931_s5 + $0x178] sm:$0xf0] }
 0x20e   : > { %v1498_v0 = vpop.f32.mrf.mxu1  ;;  %v1543_v33 = vadd.f32 %v1531_v44, %v1276_v43  ;;  %v6194_v43 = vld [vmem:[%s10931_s5 + $0x200] sm:$0xf] }
 0x20f   : > { %v1544_v17 = vadd.f32 %v1498_v0, %v1277_v13  ;;  %v6140_v13 = vld [vmem:[%s10931_s5 + $0x198] sm:$0xf0] }
 0x214   : > { %v1516_v1 = vpop.f32.mrf.mxu2 }
 0x215   : > { %v1534_v2 = vpop.f32.mrf.mxu3  ;;  %v1545_v62 = vadd.f32 %v1516_v1, %v1278_v46  ;;  %v7902_v46 = vld [vmem:[%s10931_s5 + $0x204] sm:$0xf0] }
 0x216   : > { %v1500_v45 = vpop.f32.mrf.mxu1  ;;  %v1546_v20 = vadd.f32 %v1534_v2, %v1279_v47 }
 0x21c   : > { %v1518_v3 = vpop.f32.mrf.mxu2 }
 0x21d   : > { %v1536_v5 = vpop.f32.mrf.mxu3 }
 0x21e   : > { %v1760_v7 = vpop.f32.mrf.mxu0 }
 0x21f   : > { %v1805_v28 = vadd.f32 %v1760_v7, %v1538_v19 }
 0x221   : > { %v1822_v30 = vadd.f32 %v1816_v24, %v1805_v28  ;;  %v6132_v28 = vld [vmem:[%s10931_s5 + $0x188] sm:$0xf0] }
 0x223   : > { %v1831_v42 = vmax.f32 %v1822_v30, 0.0  ;;  %v7888_v30 = vld [vmem:[%s10931_s5 + $0x194] sm:$0xf0] }
 0x224   : > { %v1778_v15 = vpop.f32.mrf.mxu2 }
 0x225   : > { %v1796_v18 = vpop.f32.mrf.mxu3  ;;  %v1806_v54 = vadd.f32 %v1778_v15, %v1539_v50  ;;  %v6127_v50 = vor.u32 %v7883_v41, %v6124_v40 }
 0x226   : > { %v1762_v22 = vpop.f32.mrf.mxu0  ;;  %v1765_v23 = vpop.f32.mrf.mxu1  ;;  %v1807_v49 = vadd.f32 %v1796_v18, %v1540_v51  ;;  %v7908_v18 = vld [vmem:[%s10931_s5 + $0x234] sm:$0xf0]  ;;  %v7881_v51 = vld [vmem:[%s10931_s5 + $0x164] sm:$0xf] }
 0x227   : > { %v1808_v26 = vadd.f32 %v1762_v22, %v1541_v16  ;;  %v1811_v27 = vadd.f32 %v1765_v23, %v1544_v17  ;;  %v1823_v61 = vadd.f32 %v1817_v58, %v1806_v54  ;;  %v6218_v17 = vld [vmem:[%s10931_s5 + $0x230] sm:$0xf]  ;;  %v9353_v22 = vld [vmem:[%s10930_s4 + $0x4] sm:$0xf]  ;;  %v6143_v23 = vor.u32 %v7887_v12, %v6140_v13  ;;  %v7896_v13 = vld [vmem:[%s10931_s5 + $0x1d4] sm:$0xf0] }
 0x228   : > { %v1824_v0 = vadd.f32 %v1818_v35, %v1807_v49  ;;  %v7899_v49 = vld [vmem:[%s10931_s5 + $0x1f4] sm:$0xf]  ;;  %v6170_v12 = vld [vmem:[%s10931_s5 + $0x1d0] sm:$0xf] }
 0x229   : > { %v1828_v29 = vadd.f32 %v1816_v24, %v1811_v27  ;;  %v1825_v21 = vadd.f32 %v1816_v24, %v1808_v26  ;;  %v1832_v14 = vmax.f32 %v1823_v61, 0.0  ;;  %v6202_v26 = vld [vmem:[%s10931_s5 + $0x210] sm:$0xf]  ;;  %v7885_v27 = vld [vmem:[%s10931_s5 + $0x184] sm:$0xf] }
 0x22a   : > { %v1833_v16 = vmax.f32 %v1824_v0, 0.0  ;;  %v6178_v61 = vld [vmem:[%s10931_s5 + $0x1e0] sm:$0xf] }
 0x22b   : > { %v1837_v32 = vmax.f32 %v1828_v29, 0.0  ;;  %v1834_v38 = vmax.f32 %v1825_v21, 0.0  ;;  %v7904_v29 = vld [vmem:[%s10931_s5 + $0x214] sm:$0xf0]  ;;  %v6219_v21 = vor.u32 %v7908_v18, %v6218_v17  ;;  %v7895_v17 = vld [vmem:[%s10931_s5 + $0x1d4] sm:$0xf] }
 0x22c   : > { %v1780_v56 = vpop.f32.mrf.mxu2  ;;  %v6172_v18 = vld [vmem:[%s10931_s5 + $0x1d8] sm:$0xf0] }
 0x22d   : > { %v1843_v31 = vpack.c.bf16 %v1837_v32, %v1837_v32  ;;  %v1798_v36 = vpop.f32.mrf.mxu3  ;;  %v9314_v6 = vpack.c.bf16 %v1834_v38, %v1831_v42  ;;  %v1809_v63 = vadd.f32 %v1780_v56, %v1542_v48  ;;  %v6138_v32 = vld [vmem:[%s10931_s5 + $0x190] sm:$0xf]  ;;  %v6210_v56 = vld [vmem:[%s10931_s5 + $0x220] sm:$0xf]  ;;  %v6204_v38 = vld [vmem:[%s10931_s5 + $0x218] sm:$0xf0] }
 0x22e   : > { %v1767_v55 = vpop.f32.mrf.mxu1  ;;  %v1810_v52 = vadd.f32 %v1798_v36, %v1543_v33  ;;  %v6135_v36 = vor.u32 %v7885_v27, %v6132_v28  ;;  %v6139_v42 = vor.u32 %v7888_v30, %v6138_v32  ;;  %v6207_v48 = vor.u32 %v7903_v37, %v6204_v38  ;;  %v6130_v33 = vld [vmem:[%s10931_s5 + $0x180] sm:$0xf]  ;;  %v7873_v32 = vld [vmem:[%s10931_s5 + $0x124] sm:$0xf]  ;;  %v6084_v30 = vld [vmem:[%s10931_s5 + $0x128] sm:$0xf0] }
 0x22f   : > { %v9309_v39 = vsel %vm1851_vm3, %v1843_v31, 0  ;;  %v1826_v10 = vadd.f32 %v1817_v58, %v1809_v63  ;;  %v7906_v31 = vld [vmem:[%s10931_s5 + $0x224] sm:$0xf0]  ;;  %v6203_v55 = vor.u32 %v7904_v29, %v6202_v26  ;;  %v6196_v63 = vld [vmem:[%s10931_s5 + $0x208] sm:$0xf0]  ;;  %v6171_v27 = vor.u32 %v7896_v13, %v6170_v12 }
 0x230   : > { %1867 = vmatpush.bf16.msra.mxu0 %v9309_v39  ;;  %v1827_v9 = vadd.f32 %v1818_v35, %v1810_v52  ;;  %v6211_v47 = vor.u32 %v7906_v31, %v6210_v56  ;;  %v6092_v26 = vld [vmem:[%s10931_s5 + $0x138] sm:$0xf0]  ;;  %v6162_v28 = vld [vmem:[%s10931_s5 + $0x1c0] sm:$0xf]  ;;  %v7894_v29 = vld [vmem:[%s10931_s5 + $0x1c4] sm:$0xf0] }
 0x231   : > { %v1835_v2 = vmax.f32 %v1826_v10, 0.0  ;;  %v6163_v56 = vor.u32 %v7894_v29, %v6162_v28  ;;  %v6348_v31 = vld [vmem:[%s10931_s5 + $0xf0] sm:$0xf]  ;;  %v7892_v38 = vld [vmem:[%s10931_s5 + $0x1b4] sm:$0xf0] }
 0x232   : > { %v1836_v5 = vmax.f32 %v1827_v9, 0.0  ;;  %v6108_v9 = vld [vmem:[%s10931_s5 + $0x158] sm:$0xf0]  ;;  %v6154_v37 = vld [vmem:[%s10931_s5 + $0x1b0] sm:$0xf] }
 0x233   : > { %v9348_v19 = vpack.c.bf16 %v1835_v2, %v1832_v14  ;;  %v7897_v2 = vld [vmem:[%s10931_s5 + $0x1e4] sm:$0xf]  ;;  %v6155_v40 = vor.u32 %v7892_v38, %v6154_v37  ;;  %v6316_v13 = vld [vmem:[%s10931_s5 + $0xb0] sm:$0xf] }
 0x234   : > { %v1783_v53 = vpop.f32.mrf.mxu2  ;;  %1868 = vmatpush.bf16.msra.mxu0 %v9314_v6  ;;  %v9355_v24 = vpack.c.bf16 %v1836_v5, %v1833_v16  ;;  %v6100_v5 = vld [vmem:[%s10931_s5 + $0x148] sm:$0xf0]  ;;  %v7889_v28 = vld [vmem:[%s10931_s5 + $0x1a4] sm:$0xf]  ;;  %v6090_v38 = vld [vmem:[%s10931_s5 + $0x130] sm:$0xf] }
 0x235   : > { %v1812_v59 = vadd.f32 %v1783_v53, %v1545_v62  ;;  %v1801_v34 = vpop.f32.mrf.mxu3  ;;  %v7886_v62 = vld [vmem:[%s10931_s5 + $0x184] sm:$0xf0]  ;;  %v6195_v53 = vor.u32 %v7902_v46, %v6194_v43  ;;  %v6146_v46 = vld [vmem:[%s10931_s5 + $0x1a0] sm:$0xf] }
 0x236   : > { %v1813_v57 = vadd.f32 %v1801_v34, %v1546_v20  ;;  %v7901_v20 = vld [vmem:[%s10931_s5 + $0x204] sm:$0xf]  ;;  %v6131_v52 = vor.u32 %v7886_v62, %v6130_v33  ;;  %v7900_v34 = vld [vmem:[%s10931_s5 + $0x1f4] sm:$0xf0]  ;;  %v7866_v43 = vld [vmem:[%s10931_s5 + $0xe4] sm:$0xf0] }
 0x237   : > { %v1829_v60 = vadd.f32 %v1817_v58, %v1812_v59  ;;  %6037 = vmatmul.msk.bf16.vlgmr.msra.gmra.mxu0 %vm1847_vm4, %v9322_v11  ;;  %v6116_v58 = vld [vmem:[%s10931_s5 + $0x168] sm:$0xf0]  ;;  %v6186_v59 = vld [vmem:[%s10931_s5 + $0x1f0] sm:$0xf]  ;;  %v6199_v54 = vor.u32 %v7901_v20, %v6196_v63  ;;  %v7852_v33 = vld [vmem:[%s10931_s5 + $0x74] sm:$0xf0] }
 0x238   : > { %v1830_v4 = vadd.f32 %v1818_v35, %v1813_v57  ;;  %v6122_v35 = vld [vmem:[%s10931_s5 + $0x170] sm:$0xf]  ;;  %v7884_v57 = vld [vmem:[%s10931_s5 + $0x174] sm:$0xf0]  ;;  %v6187_v10 = vor.u32 %v7900_v34, %v6186_v59 }
 0x239   : > { %v1838_v25 = vmax.f32 %v1829_v60, 0.0  ;;  %v6188_v60 = vld [vmem:[%s10931_s5 + $0x1f8] sm:$0xf0]  ;;  %v6332_v20 = vld [vmem:[%s10931_s5 + $0xd0] sm:$0xf] }
 0x23a   : > { %v1839_v44 = vmax.f32 %v1830_v4, 0.0  ;;  %v7879_v4 = vld [vmem:[%s10931_s5 + $0x154] sm:$0xf]  ;;  %v6191_v0 = vor.u32 %v7899_v49, %v6188_v60  ;;  %v7864_v63 = vld [vmem:[%s10931_s5 + $0xd4] sm:$0xf0] }
 0x23b   : > { %v1844_v1 = vpack.c.bf16 %v1838_v25, %v1838_v25  ;;  %v6123_v25 = vor.u32 %v7884_v57, %v6122_v35  ;;  %v6268_v34 = vld [vmem:[%s10931_s5 + $0x50] sm:$0xf]  ;;  %v6114_v57 = vld [vmem:[%s10931_s5 + $0x160] sm:$0xf]  ;;  %v7893_v49 = vld [vmem:[%s10931_s5 + $0x1c4] sm:$0xf] }
 0x23c   : > { %v1845_v45 = vpack.c.bf16 %v1839_v44, %v1839_v44  ;;  %v1785_v3 = vpop.f32.mrf.mxu2  ;;  %v7898_v44 = vld [vmem:[%s10931_s5 + $0x1e4] sm:$0xf0] }
 0x23d   : > { %v9327_v7 = vsel %vm1851_vm3, %v1844_v1, 0  ;;  %v1803_v8 = vpop.f32.mrf.mxu3  ;;  %v6111_v1 = vor.u32 %v7879_v4, %v6108_v9  ;;  %v7877_v3 = vld [vmem:[%s10931_s5 + $0x144] sm:$0xf]  ;;  %v6324_v9 = vld [vmem:[%s10931_s5 + $0xc0] sm:$0xf] }
 0x23e   : > { %v9336_v15 = vsel %vm1851_vm3, %v1845_v45, 0  ;;  %1880 = vmatpush.bf16.msrb.mxu1 %v9327_v7  ;;  %1963 = vmatpush.bf16.msrb.mxu2 %v9327_v7  ;;  %v6180_v45 = vld [vmem:[%s10931_s5 + $0x1e8] sm:$0xf0]  ;;  %v6179_v8 = vor.u32 %v7898_v44, %v6178_v61  ;;  %v6103_v16 = vor.u32 %v7877_v3, %v6100_v5  ;;  %v6260_v44 = vld [vmem:[%s10931_s5 + $0x40] sm:$0xf] }
 0x23f   : > { %1893 = vmatpush.bf16.msrb.mxu0 %v9336_v15  ;;  %1976 = vmatpush.bf16.msrb.mxu3 %v9336_v15  ;;  %v6183_v14 = vor.u32 %v7897_v2, %v6180_v45  ;;  %v7880_v45 = vld [vmem:[%s10931_s5 + $0x154] sm:$0xf0]  ;;  %v7891_v3 = vld [vmem:[%s10931_s5 + $0x1b4] sm:$0xf]  ;;  %v6156_v5 = vld [vmem:[%s10931_s5 + $0x1b8] sm:$0xf0] }
 0x240   : > { %v6159_v12 = vor.u32 %v7891_v3, %v6156_v5  ;;  %v7869_v5 = vld [vmem:[%s10931_s5 + $0x104] sm:$0xf] }
 0x242   : > { %1881 = vmatpush.bf16.msrb.mxu1 %v9348_v19  ;;  %1964 = vmatpush.bf16.msrb.mxu2 %v9348_v19 }
 0x243   : > { %1894 = vmatpush.bf16.msrb.mxu0 %v9355_v24  ;;  %1977 = vmatpush.bf16.msrb.mxu3 %v9355_v24 }
 0x245   : > { %6038 = vmatmul.msk.bf16.vlgmr.msrb.gmra.mxu1 %vm1847_vm4, %v9322_v11  ;;  %6042 = vmatmul.msk.bf16.vlgmr.msrb.gmra.mxu2 %vm1847_vm4, %v9353_v22 }
 0x246   : > { %1950 = vmatpush.bf16.msra.mxu1 %v9309_v39  ;;  %6043 = vmatmul.msk.bf16.vlgmr.msrb.gmra.mxu3 %vm1847_vm4, %v9353_v22 }
 0x247   : > { %2246 = vmatpush.bf16.msra.mxu3 %v6143_v23  ;;  %2239 = vmatpush.bf16.msra.mxu2 %v6219_v21  ;;  %v7875_v23 = vld [vmem:[%s10931_s5 + $0x134] sm:$0xf] }
 0x248   : > { %6039 = vmatmul.msk.bf16.vlgmr.msrb.gmra.mxu0 %vm1847_vm4, %v9322_v11  ;;  %v6119_v11 = vor.u32 %v7881_v51, %v6116_v58  ;;  %v6095_v21 = vor.u32 %v7875_v23, %v6092_v26  ;;  %v6276_v51 = vld [vmem:[%s10931_s5 + $0x60] sm:$0xf]  ;;  %v7850_v58 = vld [vmem:[%s10931_s5 + $0x64] sm:$0xf0] }
 0x249   : > { %2207 = vmatpush.bf16.msra.mxu0 %v6139_v42  ;;  %v6340_v42 = vld [vmem:[%s10931_s5 + $0xe0] sm:$0xf]  ;;  %v6277_v59 = vor.u32 %v7850_v58, %v6276_v51  ;;  %v7838_v58 = vld [vmem:[%s10931_s5 + $0x4] sm:$0xf0] }
 0x24a   : > { %1951 = vmatpush.bf16.msra.mxu1 %v9314_v6  ;;  %v6341_v62 = vor.u32 %v7866_v43, %v6340_v42  ;;  %v6098_v26 = vld [vmem:[%s10931_s5 + $0x140] sm:$0xf]  ;;  %v7856_v42 = vld [vmem:[%s10931_s5 + $0x94] sm:$0xf0] }
 0x24b   : > { %2247 = vmatpush.bf16.msra.mxu3 %v6135_v36  ;;  %2240 = vmatpush.bf16.msra.mxu2 %v6211_v47  ;;  %v7868_v36 = vld [vmem:[%s10931_s5 + $0xf4] sm:$0xf0]  ;;  %v7890_v47 = vld [vmem:[%s10931_s5 + $0x1a4] sm:$0xf0]  ;;  %v6228_v51 = vld [vmem:[%s10931_s5] sm:$0xf] }
 0x24c   : > { %v6349_v41 = vor.u32 %v7868_v36, %v6348_v31  ;;  %v6244_v31 = vld [vmem:[%s10931_s5 + $0x20] sm:$0xf]  ;;  %v7842_v36 = vld [vmem:[%s10931_s5 + $0x24] sm:$0xf0] }
 0x24d   : > { %2208 = vmatpush.bf16.msra.mxu0 %v6131_v52  ;;  %v6333_v52 = vor.u32 %v7864_v63, %v6332_v20  ;;  %v6245_v37 = vor.u32 %v7842_v36, %v6244_v31  ;;  %v6292_v20 = vld [vmem:[%s10931_s5 + $0x80] sm:$0xf]  ;;  %v7854_v63 = vld [vmem:[%s10931_s5 + $0x84] sm:$0xf0]  ;;  %v6262_v31 = vld [vmem:[%s10931_s5 + $0x48] sm:$0xf0] }
 0x24e   : > { %2220 = vmatpush.bf16.msrb.mxu1 %v6203_v55  ;;  %v6087_v55 = vor.u32 %v7873_v32, %v6084_v30  ;;  %v6308_v32 = vld [vmem:[%s10931_s5 + $0xa0] sm:$0xf]  ;;  %v7858_v30 = vld [vmem:[%s10931_s5 + $0xa4] sm:$0xf0] }
 0x24f   : > { %2259 = vmatpush.bf16.msrb.mxu2 %v6207_v48  ;;  %2248 = vmatpush.bf16.msra.mxu3 %v6127_v50  ;;  %v6284_v48 = vld [vmem:[%s10931_s5 + $0x70] sm:$0xf]  ;;  %v6147_v50 = vor.u32 %v7890_v47, %v6146_v46  ;;  %v7840_v47 = vld [vmem:[%s10931_s5 + $0x14] sm:$0xf0] }
 0x250   : > { %v6236_v46 = vld [vmem:[%s10931_s5 + $0x10] sm:$0xf] }
 0x251   : > { %2209 = vmatpush.bf16.msra.mxu0 %v6123_v25  ;;  %v7862_v25 = vld [vmem:[%s10931_s5 + $0xc4] sm:$0xf0] }
 0x252   : > { %2221 = vmatpush.bf16.msrb.mxu1 %v6195_v53  ;;  %v6285_v53 = vor.u32 %v7852_v33, %v6284_v48  ;;  %v6325_v61 = vor.u32 %v7862_v25, %v6324_v9  ;;  %v6237_v48 = vor.u32 %v7840_v47, %v6236_v46  ;;  %v6082_v33 = vld [vmem:[%s10931_s5 + $0x120] sm:$0xf]  ;;  %v6366_v9 = vld [vmem:[%s10931_s5 + $0x118] sm:$0xf0]  ;;  %v7851_v25 = vld [vmem:[%s10931_s5 + $0x74] sm:$0xf] }
 0x253   : > { %2260 = vmatpush.bf16.msrb.mxu2 %v6199_v54  ;;  %2249 = vmatpush.bf16.msra.mxu3 %v6119_v11  ;;  %v7848_v54 = vld [vmem:[%s10931_s5 + $0x54] sm:$0xf0]  ;;  %v7882_v11 = vld [vmem:[%s10931_s5 + $0x164] sm:$0xf0] }
 0x254   : > { %v6269_v35 = vor.u32 %v7848_v54, %v6268_v34  ;;  %v6115_v60 = vor.u32 %v7882_v11, %v6114_v57  ;;  %v7907_v34 = vld [vmem:[%s10931_s5 + $0x234] sm:$0xf]  ;;  %v6220_v54 = vld [vmem:[%s10931_s5 + $0x238] sm:$0xf0]  ;;  %v7905_v57 = vld [vmem:[%s10931_s5 + $0x224] sm:$0xf] }
 0x255   : > { %6041 = vmatmul.msk.bf16.vlgmr.msra.gmra.mxu1 %vm1847_vm4, %v9353_v22  ;;  %v6175_v22 = vor.u32 %v7895_v17, %v6172_v18  ;;  %v6252_v17 = vld [vmem:[%s10931_s5 + $0x30] sm:$0xf]  ;;  %v7844_v18 = vld [vmem:[%s10931_s5 + $0x34] sm:$0xf0]  ;;  %v6212_v11 = vld [vmem:[%s10931_s5 + $0x228] sm:$0xf0] }
 0x256   : > { %2222 = vmatpush.bf16.msrb.mxu1 %v6187_v10  ;;  %v6164_v10 = vld [vmem:[%s10931_s5 + $0x1c8] sm:$0xf0]  ;;  %2210 = vmatpush.bf16.msra.mxu0 %v6115_v60  ;;  %v6253_v23 = vor.u32 %v7844_v18, %v6252_v17 }
 0x257   : > { %2261 = vmatpush.bf16.msrb.mxu2 %v6191_v0  ;;  %2250 = vmatpush.bf16.msra.mxu3 %v6111_v1  ;;  %v6167_v4 = vor.u32 %v7893_v49, %v6164_v10  ;;  %v7846_v0 = vld [vmem:[%s10931_s5 + $0x44] sm:$0xf0]  ;;  %v6106_v1 = vld [vmem:[%s10931_s5 + $0x150] sm:$0xf]  ;;  %v6215_v49 = vor.u32 %v7905_v57, %v6212_v11 }
 0x258   : > { %v6261_v2 = vor.u32 %v7846_v0, %v6260_v44 }
 0x25a   : > { %2223 = vmatpush.bf16.msrb.mxu1 %v6179_v8  ;;  %v6107_v8 = vor.u32 %v7880_v45, %v6106_v1 }
 0x25b   : > { %2262 = vmatpush.bf16.msrb.mxu2 %v6183_v14  ;;  %2251 = vmatpush.bf16.msra.mxu3 %v6103_v16  ;;  %v7860_v14 = vld [vmem:[%s10931_s5 + $0xb4] sm:$0xf0] }
 0x25c   : > { %2211 = vmatpush.bf16.msra.mxu0 %v6107_v8  ;;  %v6317_v16 = vor.u32 %v7860_v14, %v6316_v13  ;;  %v6358_v8 = vld [vmem:[%s10931_s5 + $0x108] sm:$0xf0]  ;;  %v7849_v14 = vld [vmem:[%s10931_s5 + $0x64] sm:$0xf] }
 0x25d   : > { %v6361_v17 = vor.u32 %v7869_v5, %v6358_v8  ;;  %v7859_v8 = vld [vmem:[%s10931_s5 + $0xb4] sm:$0xf] }
 0x25e   : > { %2224 = vmatpush.bf16.msrb.mxu1 %v6171_v27  ;;  %v7878_v27 = vld [vmem:[%s10931_s5 + $0x144] sm:$0xf0] }
 0x25f   : > { %2263 = vmatpush.bf16.msrb.mxu2 %v6175_v22  ;;  %2252 = vmatpush.bf16.msra.mxu3 %v6095_v21  ;;  %v6099_v29 = vor.u32 %v7878_v27, %v6098_v26  ;;  %v6148_v22 = vld [vmem:[%s10931_s5 + $0x1a8] sm:$0xf0]  ;;  %v6270_v26 = vld [vmem:[%s10931_s5 + $0x58] sm:$0xf0]  ;;  %v6364_v27 = vld [vmem:[%s10931_s5 + $0x110] sm:$0xf] }
 0x260   : > { %v6151_v21 = vor.u32 %v7889_v28, %v6148_v22  ;;  %v7872_v28 = vld [vmem:[%s10931_s5 + $0x114] sm:$0xf0] }
 0x261   : > { %2212 = vmatpush.bf16.msra.mxu0 %v6099_v29  ;;  %v6365_v36 = vor.u32 %v7872_v28, %v6364_v27  ;;  %v7917_v27 = vld [vmem:[%s10931_s5 + $0x284] sm:$0xf]  ;;  %v6448_v28 = vld [vmem:[%s10931_s5 + $0x288] sm:$0xf0] }
 0x262   : > { %2225 = vmatpush.bf16.msrb.mxu1 %v6163_v56  ;;  %v6309_v56 = vor.u32 %v7858_v30, %v6308_v32 }
 0x263   : > { %2253 = vmatpush.bf16.msra.mxu3 %v6087_v55  ;;  %2264 = vmatpush.bf16.msrb.mxu2 %v6167_v4  ;;  %v7876_v55 = vld [vmem:[%s10931_s5 + $0x134] sm:$0xf0]  ;;  %v7871_v4 = vld [vmem:[%s10931_s5 + $0x114] sm:$0xf] }
 0x264   : > { %v6369_v0 = vor.u32 %v7871_v4, %v6366_v9  ;;  %v7863_v4 = vld [vmem:[%s10931_s5 + $0xd4] sm:$0xf] }
 0x265   : > { %v7923_v9 = vld [vmem:[%s10931_s5 + $0x2b4] sm:$0xf] }
 0x266   : > { %2226 = vmatpush.bf16.msrb.mxu1 %v6155_v40  ;;  %v6300_v40 = vld [vmem:[%s10931_s5 + $0x90] sm:$0xf] }
 0x267   : > { %2481 = vmatpush.bf16.msrb.mxu3 %v6349_v41  ;;  %2265 = vmatpush.bf16.msrb.mxu2 %v6159_v12  ;;  %v6091_v41 = vor.u32 %v7876_v55, %v6090_v38  ;;  %v6301_v43 = vor.u32 %v7856_v42, %v6300_v40  ;;  %v6356_v38 = vld [vmem:[%s10931_s5 + $0x100] sm:$0xf]  ;;  %v7870_v55 = vld [vmem:[%s10931_s5 + $0x104] sm:$0xf0]  ;;  %v7843_v40 = vld [vmem:[%s10931_s5 + $0x34] sm:$0xf] }
 0x268   : > { %v6254_v42 = vld [vmem:[%s10931_s5 + $0x38] sm:$0xf0] }
 0x269   : > { %2213 = vmatpush.bf16.msra.mxu0 %v6091_v41  ;;  %v6257_v47 = vor.u32 %v7843_v40, %v6254_v42  ;;  %v6534_v40 = vld [vmem:[%s10931_s5 + $0x330] sm:$0xf]  ;;  %v7940_v42 = vld [vmem:[%s10931_s5 + $0x334] sm:$0xf0] }
 0x26a   : > { %2227 = vmatpush.bf16.msrb.mxu1 %v6147_v50 }
 0x26b   : > { %2482 = vmatpush.bf16.msrb.mxu3 %v6341_v62  ;;  %2266 = vmatpush.bf16.msrb.mxu2 %v6151_v21  ;;  %v7874_v62 = vld [vmem:[%s10931_s5 + $0x124] sm:$0xf0] }
 0x26c   : > { %v6083_v50 = vor.u32 %v7874_v62, %v6082_v33  ;;  %v7841_v33 = vld [vmem:[%s10931_s5 + $0x24] sm:$0xf]  ;;  %v6246_v62 = vld [vmem:[%s10931_s5 + $0x28] sm:$0xf0] }
 0x26e   : > { %2468 = vmatpush.bf16.msra.mxu1 %v6285_v53  ;;  %2214 = vmatpush.bf16.msra.mxu0 %v6083_v50  ;;  %v6293_v53 = vor.u32 %v7854_v63, %v6292_v20  ;;  %v6249_v50 = vor.u32 %v7841_v33, %v6246_v62  ;;  %v7839_v20 = vld [vmem:[%s10931_s5 + $0x14] sm:$0xf]  ;;  %v6238_v63 = vld [vmem:[%s10931_s5 + $0x18] sm:$0xf0]  ;;  %v6526_v62 = vld [vmem:[%s10931_s5 + $0x320] sm:$0xf] }
 0x26f   : > { %2483 = vmatpush.bf16.msrb.mxu3 %v6333_v52  ;;  %v6229_v52 = vor.u32 %v7838_v58, %v6228_v51  ;;  %v6350_v51 = vld [vmem:[%s10931_s5 + $0xf8] sm:$0xf0]  ;;  %v6241_v58 = vor.u32 %v7839_v20, %v6238_v63 }
 0x270   : > { %v6424_v33 = vld [vmem:[%s10931_s5 + $0x258] sm:$0xf0] }
 0x272   : > { %2469 = vmatpush.bf16.msra.mxu1 %v6277_v59 }
 0x273   : > { %2484 = vmatpush.bf16.msrb.mxu3 %v6325_v61  ;;  %v6286_v61 = vld [vmem:[%s10931_s5 + $0x78] sm:$0xf0] }
 0x274   : > { %v6289_v3 = vor.u32 %v7851_v25, %v6286_v61  ;;  %v6472_v25 = vld [vmem:[%s10931_s5 + $0x2b8] sm:$0xf0] }
 0x276   : > { %2470 = vmatpush.bf16.msra.mxu1 %v6269_v35  ;;  %v6223_v35 = vor.u32 %v7907_v34, %v6220_v54  ;;  %v6230_v34 = vld [vmem:[%s10931_s5 + $0x8] sm:$0xf0]  ;;  %v7865_v54 = vld [vmem:[%s10931_s5 + $0xe4] sm:$0xf] }
 0x277   : > { %2485 = vmatpush.bf16.msrb.mxu3 %v6317_v16  ;;  %v6278_v16 = vld [vmem:[%s10931_s5 + $0x68] sm:$0xf0] }
 0x278   : > { %2278 = vmatpush.bf16.msrb.mxu0 %v6223_v35  ;;  %v6281_v18 = vor.u32 %v7849_v14, %v6278_v16  ;;  %v6342_v35 = vld [vmem:[%s10931_s5 + $0xe8] sm:$0xf0]  ;;  %v6456_v14 = vld [vmem:[%s10931_s5 + $0x298] sm:$0xf0] }
 0x27a   : > { %2471 = vmatpush.bf16.msra.mxu1 %v6261_v2 }
 0x27b   : > { %2486 = vmatpush.bf16.msrb.mxu3 %v6309_v56  ;;  %v7845_v56 = vld [vmem:[%s10931_s5 + $0x44] sm:$0xf] }
 0x27c   : > { %2279 = vmatpush.bf16.msrb.mxu0 %v6215_v49  ;;  %v6265_v41 = vor.u32 %v7845_v56, %v6262_v31  ;;  %v6345_v49 = vor.u32 %v7865_v54, %v6342_v35  ;;  %v6440_v56 = vld [vmem:[%s10931_s5 + $0x278] sm:$0xf0]  ;;  %v6510_v54 = vld [vmem:[%s10931_s5 + $0x300] sm:$0xf]  ;;  %v7934_v35 = vld [vmem:[%s10931_s5 + $0x304] sm:$0xf0] }
 0x27e   : > { %2472 = vmatpush.bf16.msra.mxu1 %v6253_v23  ;;  %v7847_v23 = vld [vmem:[%s10931_s5 + $0x54] sm:$0xf] }
 0x27f   : > { %2487 = vmatpush.bf16.msrb.mxu3 %v6301_v43  ;;  %v6273_v21 = vor.u32 %v7847_v23, %v6270_v26  ;;  %v6357_v43 = vor.u32 %v7870_v55, %v6356_v38  ;;  %v7857_v23 = vld [vmem:[%s10931_s5 + $0xa4] sm:$0xf]  ;;  %v6310_v26 = vld [vmem:[%s10931_s5 + $0xa8] sm:$0xf0] }
 0x280   : > { %v6294_v38 = vld [vmem:[%s10931_s5 + $0x88] sm:$0xf0]  ;;  %v7913_v55 = vld [vmem:[%s10931_s5 + $0x264] sm:$0xf] }
 0x282   : > { %2473 = vmatpush.bf16.msra.mxu1 %v6245_v37 }
 0x283   : > { %2488 = vmatpush.bf16.msrb.mxu3 %v6293_v53  ;;  %v7867_v53 = vld [vmem:[%s10931_s5 + $0xf4] sm:$0xf] }
 0x286   : > { %2474 = vmatpush.bf16.msra.mxu1 %v6237_v48 }
 0x28a   : > { %2475 = vmatpush.bf16.msra.mxu1 %v6229_v52  ;;  %v6353_v52 = vor.u32 %v7867_v53, %v6350_v51  ;;  %v7909_v53 = vld [vmem:[%s10931_s5 + $0x244] sm:$0xf]  ;;  %v6416_v51 = vld [vmem:[%s10931_s5 + $0x248] sm:$0xf0] }
 0x2b4   : > { %v1870_v59 = vpop.f32.mrf.mxu0 }
 0x2b5   : > { %v1900_v46 = vpack.c.bf16 %v1870_v59, %v1870_v59  ;;  %v7837_v59 = vld [vmem:[%s10931_s5 + $0x4] sm:$0xf] }
 0x2b6   : > { %v6233_v11 = vor.u32 %v7837_v59, %v6230_v34  ;;  %v6419_v59 = vor.u32 %v7909_v53, %v6416_v51 }
 0x2bc   : > { %v1872_v60 = vpop.f32.mrf.mxu0 }
 0x2c2   : > { %v9673_v10 = vpop.f32.mrf.mxu1 }
 0x2c3   : > { %v9771_v57 = vpack.c.bf16 %v9673_v10, %v9673_v10  ;;  %v6334_v10 = vld [vmem:[%s10931_s5 + $0xd8] sm:$0xf0] }
 0x2c4   : > { %v6337_v61 = vor.u32 %v7863_v4, %v6334_v10  ;;  %v6494_v4 = vld [vmem:[%s10931_s5 + $0x2e0] sm:$0xf]  ;;  %v7930_v10 = vld [vmem:[%s10931_s5 + $0x2e4] sm:$0xf0] }
 0x2c5   : > { %v9687_v1 = vpop.f32.mrf.mxu0 }
 0x2c6   : > { %v1902_v60 = vpack.c.bf16 %v9687_v1, %v9687_v1  ;;  %v6326_v1 = vld [vmem:[%s10931_s5 + $0xc8] sm:$0xf0] }
 0x2c8   : > { %v1966_v44 = vpop.f32.mrf.mxu2 }
 0x2c9   : > { %v1984_v2 = vpack.c.bf16 %v1966_v44, %v1966_v44  ;;  %v1979_v45 = vpop.f32.mrf.mxu3  ;;  %v6475_v44 = vor.u32 %v7923_v9, %v6472_v25  ;;  %v6495_v9 = vor.u32 %v7930_v10, %v6494_v4  ;;  %v6486_v25 = vld [vmem:[%s10931_s5 + $0x2d0] sm:$0xf] }
 0x2ca   : > { %v9695_v12 = vpack.c.bf16 %v1979_v45, %v1979_v45  ;;  %v1885_v13 = vpop.f32.mrf.mxu1  ;;  %v6464_v45 = vld [vmem:[%s10931_s5 + $0x2a8] sm:$0xf0] }
 0x2cb   : > { %2228 = vmatmul.bf16.vlgmr.msrb.gmra.mxu1 %v1984_v2  ;;  %v7919_v13 = vld [vmem:[%s10931_s5 + $0x294] sm:$0xf] }
 0x2cc   : > { %6224 = vmatmul.msk.bf16.vlgmr.msra.gmra.mxu2 %vm2203_vm5, %v9695_v12  ;;  %2539 = vmatpush.bf16.msrb.mxu1 %v6369_v0  ;;  %v7861_v0 = vld [vmem:[%s10931_s5 + $0xc4] sm:$0xf] }
 0x2cd   : > { %2507 = vmatpush.bf16.msra.mxu2 %v6289_v3  ;;  %v1898_v22 = vpop.f32.mrf.mxu0  ;;  %v6329_v3 = vor.u32 %v7861_v0, %v6326_v1  ;;  %v6478_v0 = vld [vmem:[%s10931_s5 + $0x2c0] sm:$0xf]  ;;  %v7926_v1 = vld [vmem:[%s10931_s5 + $0x2c4] sm:$0xf0] }
 0x2ce   : > { %v6451_v22 = vor.u32 %v7917_v27, %v6448_v28  ;;  %v6542_v27 = vld [vmem:[%s10931_s5 + $0x340] sm:$0xf]  ;;  %v7942_v28 = vld [vmem:[%s10931_s5 + $0x344] sm:$0xf0] }
 0x2d0   : > { %v1968_v29 = vpop.f32.mrf.mxu2  ;;  %2540 = vmatpush.bf16.msrb.mxu1 %v6361_v17  ;;  %v6372_v17 = vld [vmem:[%s10930_s4 + $0x8] sm:$0xf] }
 0x2d1   : > { %2508 = vmatpush.bf16.msra.mxu2 %v6281_v18  ;;  %v1981_v32 = vpop.f32.mrf.mxu3  ;;  %v6459_v18 = vor.u32 %v7919_v13, %v6456_v14  ;;  %v6313_v29 = vor.u32 %v7857_v23, %v6310_v26  ;;  %v6550_v14 = vld [vmem:[%s10931_s5 + $0x350] sm:$0xf]  ;;  %v7920_v23 = vld [vmem:[%s10931_s5 + $0x294] sm:$0xf0] }
 0x2d2   : > { %v1953_v30 = vpop.f32.mrf.mxu1  ;;  %v6302_v32 = vld [vmem:[%s10931_s5 + $0x98] sm:$0xf0] }
 0x2d3   : > { %v1983_v37 = vpack.c.bf16 %v1953_v30, %v1953_v30  ;;  %v7915_v30 = vld [vmem:[%s10931_s5 + $0x274] sm:$0xf] }
 0x2d5   : > { %2509 = vmatpush.bf16.msra.mxu2 %v6273_v21  ;;  %2215 = vmatmul.bf16.vlgmr.msra.gmra.mxu0 %v1983_v37  ;;  %v7855_v21 = vld [vmem:[%s10931_s5 + $0x94] sm:$0xf] }
 0x2d6   : > { %2254 = vmatmul.bf16.vlgmr.msra.gmra.mxu3 %v1983_v37  ;;  %2500 = vmatpush.bf16.msra.mxu0 %v6365_v36  ;;  %v6305_v31 = vor.u32 %v7855_v21, %v6302_v32  ;;  %v6443_v36 = vor.u32 %v7915_v30, %v6440_v56  ;;  %v7853_v37 = vld [vmem:[%s10931_s5 + $0x84] sm:$0xf]  ;;  %v6536_v21 = vld [vmem:[%s10931_s5 + $0x338] sm:$0xf0]  ;;  %v6446_v32 = vld [vmem:[%s10931_s5 + $0x280] sm:$0xf] }
 0x2d7   : > { %2557 = vmatpush.bf16.msra.mxu3 %v9309_v39  ;;  %v7918_v56 = vld [vmem:[%s10931_s5 + $0x284] sm:$0xf0] }
 0x2d9   : > { %2510 = vmatpush.bf16.msra.mxu2 %v6265_v41  ;;  %v6432_v41 = vld [vmem:[%s10931_s5 + $0x268] sm:$0xf0] }
 0x2da   : > { %v1955_v48 = vpop.f32.mrf.mxu1  ;;  %2501 = vmatpush.bf16.msra.mxu0 %v6357_v43  ;;  %v6297_v43 = vor.u32 %v7853_v37, %v6294_v38  ;;  %v6528_v37 = vld [vmem:[%s10931_s5 + $0x328] sm:$0xf0] }
 0x2db   : > { %2558 = vmatpush.bf16.msra.mxu3 %v9314_v6  ;;  %2476 = vmatmul.bf16.vlgmr.msra.gmra.mxu1 %v1900_v46  ;;  %v7911_v48 = vld [vmem:[%s10931_s5 + $0x254] sm:$0xf] }
 0x2dc   : > { %2267 = vmatmul.bf16.vlgmr.msrb.gmra.mxu2 %v1984_v2  ;;  %2570 = vmatpush.bf16.msra.mxu1 %v9327_v7  ;;  %v7921_v2 = vld [vmem:[%s10931_s5 + $0x2a4] sm:$0xf]  ;;  %v6427_v20 = vor.u32 %v7911_v48, %v6424_v33  ;;  %v7914_v33 = vld [vmem:[%s10931_s5 + $0x264] sm:$0xf0] }
 0x2dd   : > { %2511 = vmatpush.bf16.msra.mxu2 %v6257_v47  ;;  %v6467_v5 = vor.u32 %v7921_v2, %v6464_v45  ;;  %v6535_v47 = vor.u32 %v7940_v42, %v6534_v40  ;;  %v6479_v2 = vor.u32 %v7926_v1, %v6478_v0  ;;  %v6470_v45 = vld [vmem:[%s10931_s5 + $0x2b0] sm:$0xf]  ;;  %v7916_v40 = vld [vmem:[%s10931_s5 + $0x274] sm:$0xf0]  ;;  %v7929_v0 = vld [vmem:[%s10931_s5 + $0x2e4] sm:$0xf] }
 0x2de   : > { %v6496_v1 = vld [vmem:[%s10931_s5 + $0x2e8] sm:$0xf0] }
 0x2e0   : > { %2571 = vmatpush.bf16.msra.mxu1 %v9348_v19 }
 0x2e1   : > { %2512 = vmatpush.bf16.msra.mxu2 %v6249_v50  ;;  %v7938_v50 = vld [vmem:[%s10931_s5 + $0x324] sm:$0xf0] }
 0x2e2   : > { %v6527_v63 = vor.u32 %v7938_v50, %v6526_v62 }
 0x2e5   : > { %2513 = vmatpush.bf16.msra.mxu2 %v6241_v58  ;;  %6225 = vmatmul.msk.bf16.vlgmr.msrb.gmra.mxu0 %vm2203_vm5, %v9695_v12  ;;  %v6318_v12 = vld [vmem:[%s10931_s5 + $0xb8] sm:$0xf0]  ;;  %v6518_v58 = vld [vmem:[%s10931_s5 + $0x310] sm:$0xf] }
 0x2e6   : > { %2489 = vmatmul.bf16.vlgmr.msrb.gmra.mxu3 %v9771_v57  ;;  %2520 = vmatpush.bf16.msrb.mxu0 %v6353_v52  ;;  %v6321_v16 = vor.u32 %v7859_v8, %v6318_v12  ;;  %v7936_v52 = vld [vmem:[%s10931_s5 + $0x314] sm:$0xf0]  ;;  %v6462_v8 = vld [vmem:[%s10931_s5 + $0x2a0] sm:$0xf]  ;;  %v7922_v12 = vld [vmem:[%s10931_s5 + $0x2a4] sm:$0xf0] }
 0x2e7   : > { %v6519_v34 = vor.u32 %v7936_v52, %v6518_v58  ;;  %v6463_v13 = vor.u32 %v7922_v12, %v6462_v8  ;;  %v6422_v58 = vld [vmem:[%s10931_s5 + $0x250] sm:$0xf]  ;;  %v7912_v52 = vld [vmem:[%s10931_s5 + $0x254] sm:$0xf0]  ;;  %v7941_v8 = vld [vmem:[%s10931_s5 + $0x344] sm:$0xf] }
 0x2e8   : > { %v6544_v12 = vld [vmem:[%s10931_s5 + $0x348] sm:$0xf0] }
 0x2e9   : > { %2514 = vmatpush.bf16.msra.mxu2 %v6233_v11  ;;  %v6511_v11 = vor.u32 %v7934_v35, %v6510_v54  ;;  %v7931_v35 = vld [vmem:[%s10931_s5 + $0x2f4] sm:$0xf] }
 0x2ea   : > { %2521 = vmatpush.bf16.msrb.mxu0 %v6345_v49  ;;  %v7932_v49 = vld [vmem:[%s10931_s5 + $0x2f4] sm:$0xf0] }
 0x2eb   : > { %6371 = vmatmul.msk.bf16.vlgmr.msrb.gmra.mxu1 %vm2203_vm5, %v1902_v60 }
 0x2ec   : > { %2515 = vmatmul.bf16.vlgmr.msra.gmra.mxu2 %v1900_v46  ;;  %v6435_v46 = vor.u32 %v7913_v55, %v6432_v41  ;;  %v6438_v41 = vld [vmem:[%s10931_s5 + $0x270] sm:$0xf] }
 0x2ed   : > { %2583 = vmatpush.bf16.msrb.mxu2 %v9336_v15  ;;  %v6439_v42 = vor.u32 %v7916_v40, %v6438_v41 }
 0x2ee   : > { %2522 = vmatpush.bf16.msrb.mxu0 %v6337_v61  ;;  %v7928_v61 = vld [vmem:[%s10931_s5 + $0x2d4] sm:$0xf0] }
 0x2f1   : > { %2584 = vmatpush.bf16.msrb.mxu2 %v9355_v24 }
 0x2f2   : > { %2523 = vmatpush.bf16.msrb.mxu0 %v6329_v3  ;;  %v7924_v3 = vld [vmem:[%s10931_s5 + $0x2b4] sm:$0xf0] }
 0x2f5   : > { %2852 = vmatpush.bf16.msra.mxu2 %v6475_v44  ;;  %6370 = vmatmul.msk.bf16.vlgmr.msra.gmra.mxu0 %vm2203_vm5, %v1902_v60  ;;  %v6487_v44 = vor.u32 %v7928_v61, %v6486_v25  ;;  %v6552_v25 = vld [vmem:[%s10931_s5 + $0x358] sm:$0xf0] }
 0x2f6   : > { %2524 = vmatpush.bf16.msrb.mxu0 %v6321_v16  ;;  %6373 = vmatmul.msk.bf16.vlgmr.msra.gmra.mxu3 %vm1847_vm4, %v6372_v17  ;;  %v7944_v16 = vld [vmem:[%s10931_s5 + $0x354] sm:$0xf0] }
 0x2f9   : > { %2853 = vmatpush.bf16.msra.mxu2 %v6467_v5  ;;  %v6471_v5 = vor.u32 %v7924_v3, %v6470_v45  ;;  %v6499_v45 = vor.u32 %v7929_v0, %v6496_v1  ;;  %v6558_v0 = vld [vmem:[%s10930_s4 + $0xc] sm:$0xf]  ;;  %v6696_v1 = vld [vmem:[%s10931_s5 + $0x420] sm:$0xf] }
 0x2fa   : > { %2525 = vmatpush.bf16.msrb.mxu0 %v6313_v29  ;;  %v6543_v29 = vor.u32 %v7942_v28, %v6542_v27  ;;  %v6480_v27 = vld [vmem:[%s10931_s5 + $0x2c8] sm:$0xf0] }
 0x2fb   : > { %6374 = vmatmul.msk.bf16.vlgmr.msra.gmra.mxu1 %vm1847_vm4, %v6372_v17  ;;  %2813 = vmatpush.bf16.msrb.mxu3 %v6471_v5 }
 0x2fc   : > { %6375 = vmatmul.msk.bf16.vlgmr.msrb.gmra.mxu2 %vm1847_vm4, %v6372_v17  ;;  %v6551_v17 = vor.u32 %v7944_v16, %v6550_v14  ;;  %v6547_v14 = vor.u32 %v7941_v8, %v6544_v12  ;;  %v7927_v16 = vld [vmem:[%s10931_s5 + $0x2d4] sm:$0xf]  ;;  %v6650_v8 = vld [vmem:[%s10931_s5 + $0x3c8] sm:$0xf0] }
 0x2fd   : > { %2854 = vmatpush.bf16.msra.mxu2 %v6459_v18  ;;  %v6454_v18 = vld [vmem:[%s10931_s5 + $0x290] sm:$0xf] }
 0x2fe   : > { %2526 = vmatpush.bf16.msrb.mxu0 %v6305_v31  ;;  %2845 = vmatpush.bf16.msrb.mxu1 %v6551_v17  ;;  %v6455_v26 = vor.u32 %v7920_v23, %v6454_v18  ;;  %v6447_v31 = vor.u32 %v7918_v56, %v6446_v32  ;;  %v6488_v17 = vld [vmem:[%s10931_s5 + $0x2d8] sm:$0xf0] }
 0x2ff   : > { %2814 = vmatpush.bf16.msrb.mxu3 %v6463_v13  ;;  %v6491_v18 = vor.u32 %v7927_v16, %v6488_v17  ;;  %v7955_v17 = vld [vmem:[%s10931_s5 + $0x3b4] sm:$0xf] }
 0x301   : > { %2855 = vmatpush.bf16.msra.mxu2 %v6451_v22  ;;  %v7939_v22 = vld [vmem:[%s10931_s5 + $0x334] sm:$0xf] }
 0x302   : > { %2527 = vmatpush.bf16.msrb.mxu0 %v6297_v43  ;;  %v6539_v30 = vor.u32 %v7939_v22, %v6536_v21  ;;  %2846 = vmatpush.bf16.msrb.mxu1 %v6543_v29  ;;  %v7935_v43 = vld [vmem:[%s10931_s5 + $0x314] sm:$0xf] }
 0x303   : > { %2815 = vmatpush.bf16.msrb.mxu3 %v6455_v26  ;;  %v7925_v26 = vld [vmem:[%s10931_s5 + $0x2c4] sm:$0xf] }
 0x304   : > { %v6483_v22 = vor.u32 %v7925_v26, %v6480_v27  ;;  %v7960_v26 = vld [vmem:[%s10931_s5 + $0x3d4] sm:$0xf0]  ;;  %v6648_v27 = vld [vmem:[%s10931_s5 + $0x3c0] sm:$0xf] }
 0x305   : > { %2856 = vmatpush.bf16.msra.mxu2 %v6443_v36  ;;  %2528 = vmatmul.bf16.vlgmr.msrb.gmra.mxu0 %v9771_v57  ;;  %v6502_v57 = vld [vmem:[%s10931_s5 + $0x2f0] sm:$0xf]  ;;  %v7937_v36 = vld [vmem:[%s10931_s5 + $0x324] sm:$0xf] }
 0x306   : > { %2826 = vmatpush.bf16.msra.mxu0 %v6535_v47  ;;  %v6503_v60 = vor.u32 %v7932_v49, %v6502_v57  ;;  %2865 = vmatpush.bf16.msra.mxu1 %v6539_v30  ;;  %v6531_v55 = vor.u32 %v7937_v36, %v6528_v37  ;;  %v6430_v47 = vld [vmem:[%s10931_s5 + $0x260] sm:$0xf] }
 0x307   : > { %2816 = vmatpush.bf16.msrb.mxu3 %v6447_v31  ;;  %v6431_v62 = vor.u32 %v7914_v33, %v6430_v47  ;;  %v6414_v57 = vld [vmem:[%s10931_s5 + $0x240] sm:$0xf] }
 0x309   : > { %2857 = vmatpush.bf16.msra.mxu2 %v6435_v46  ;;  %v6520_v46 = vld [vmem:[%s10931_s5 + $0x318] sm:$0xf0] }
 0x30a   : > { %2827 = vmatpush.bf16.msra.mxu0 %v6527_v63  ;;  %2866 = vmatpush.bf16.msra.mxu1 %v6531_v55  ;;  %v6523_v48 = vor.u32 %v7935_v43, %v6520_v46  ;;  %v6512_v63 = vld [vmem:[%s10931_s5 + $0x308] sm:$0xf0] }
 0x30b   : > { %2817 = vmatpush.bf16.msrb.mxu3 %v6439_v42 }
 0x30d   : > { %2858 = vmatpush.bf16.msra.mxu2 %v6427_v20  ;;  %v7933_v20 = vld [vmem:[%s10931_s5 + $0x304] sm:$0xf] }
 0x30e   : > { %2828 = vmatpush.bf16.msra.mxu0 %v6519_v34  ;;  %2867 = vmatpush.bf16.msra.mxu1 %v6523_v48  ;;  %v6515_v51 = vor.u32 %v7933_v20, %v6512_v63  ;;  %v6720_v63 = vld [vmem:[%s10931_s5 + $0x450] sm:$0xf] }
 0x30f   : > { %2818 = vmatpush.bf16.msrb.mxu3 %v6431_v62 }
 0x311   : > { %2859 = vmatpush.bf16.msra.mxu2 %v6419_v59  ;;  %v6423_v59 = vor.u32 %v7912_v52, %v6422_v58 }
 0x312   : > { %2829 = vmatpush.bf16.msra.mxu0 %v6511_v11  ;;  %2868 = vmatpush.bf16.msra.mxu1 %v6515_v51  ;;  %v6504_v11 = vld [vmem:[%s10931_s5 + $0x2f8] sm:$0xf0] }
 0x313   : > { %2819 = vmatpush.bf16.msrb.mxu3 %v6423_v59  ;;  %v6507_v49 = vor.u32 %v7931_v35, %v6504_v11 }
 0x315   : > { %2917 = vmatpush.bf16.msrb.mxu2 %v9327_v7 }
 0x316   : > { %2830 = vmatpush.bf16.msra.mxu0 %v6503_v60  ;;  %v7910_v60 = vld [vmem:[%s10931_s5 + $0x244] sm:$0xf0]  ;;  %2869 = vmatpush.bf16.msra.mxu1 %v6507_v49 }
 0x317   : > { %v6415_v10 = vor.u32 %v7910_v60, %v6414_v57  ;;  %v6704_v60 = vld [vmem:[%s10931_s5 + $0x430] sm:$0xf] }
 0x319   : > { %2918 = vmatpush.bf16.msrb.mxu2 %v9348_v19  ;;  %2820 = vmatpush.bf16.msrb.mxu3 %v6415_v10 }
 0x31a   : > { %2831 = vmatpush.bf16.msra.mxu0 %v6495_v9  ;;  %v7943_v9 = vld [vmem:[%s10931_s5 + $0x354] sm:$0xf]  ;;  %2870 = vmatpush.bf16.msra.mxu1 %v6499_v45 }
 0x31b   : > { %v6555_v61 = vor.u32 %v7943_v9, %v6552_v25  ;;  %v7959_v9 = vld [vmem:[%s10931_s5 + $0x3d4] sm:$0xf]  ;;  %v6658_v25 = vld [vmem:[%s10931_s5 + $0x3d8] sm:$0xf0] }
 0x31c   : > { %v6661_v45 = vor.u32 %v7959_v9, %v6658_v25  ;;  %v6616_v9 = vld [vmem:[%s10931_s5 + $0x380] sm:$0xf]  ;;  %v7950_v25 = vld [vmem:[%s10931_s5 + $0x384] sm:$0xf0] }
 0x31d   : > { %2884 = vmatpush.bf16.msra.mxu3 %v6555_v61 }
 0x31e   : > { %2832 = vmatpush.bf16.msra.mxu0 %v6487_v44  ;;  %2871 = vmatpush.bf16.msra.mxu1 %v6491_v18  ;;  %v6642_v18 = vld [vmem:[%s10931_s5 + $0x3b8] sm:$0xf0] }
 0x321   : > { %2885 = vmatpush.bf16.msra.mxu3 %v6547_v14  ;;  %v7968_v14 = vld [vmem:[%s10931_s5 + $0x414] sm:$0xf0] }
 0x322   : > { %2833 = vmatpush.bf16.msra.mxu0 %v6479_v2  ;;  %2872 = vmatpush.bf16.msra.mxu1 %v6483_v22  ;;  %v7958_v22 = vld [vmem:[%s10931_s5 + $0x3c4] sm:$0xf0] }
 0x326   : > { %2904 = vmatpush.bf16.msrb.mxu0 %v9309_v39 }
 0x32a   : > { %2905 = vmatpush.bf16.msrb.mxu0 %v9314_v6 }
 0x348   : > { %v2229_v38 = vpop.f32.mrf.mxu1 }
 0x34f   : > { %v2242_v50 = vpop.f32.mrf.mxu2 }
 0x350   : > { %v2231_v53 = vpop.f32.mrf.mxu1 }
 0x351   : > { %v7976_v53 = vld [vmem:[%s10931_s5 + $0x454] sm:$0xf0] }
 0x352   : > { %v2216_v34 = vpop.f32.mrf.mxu0  ;;  %v6721_v58 = vor.u32 %v7976_v53, %v6720_v63  ;;  %v7962_v63 = vld [vmem:[%s10931_s5 + $0x3e4] sm:$0xf0] }
 0x353   : > { %v2230_v54 = vadd.f32 %v2229_v38, %v2216_v34  ;;  %v6712_v34 = vld [vmem:[%s10931_s5 + $0x440] sm:$0xf] }
 0x355   : > { %v2243_v4 = vadd.f32 %v2242_v50, %v2230_v54  ;;  %v7974_v54 = vld [vmem:[%s10931_s5 + $0x444] sm:$0xf0] }
 0x356   : > { %v6713_v49 = vor.u32 %v7974_v54, %v6712_v34  ;;  %v7947_v54 = vld [vmem:[%s10931_s5 + $0x374] sm:$0xf] }
 0x357   : > { %v2244_v44 = vpop.f32.mrf.mxu2 }
 0x358   : > { %v2477_v2 = vpop.f32.mrf.mxu1 }
 0x359   : > { %v2255_v3 = vpop.f32.mrf.mxu3  ;;  %v2478_v5 = vadd.f32 %v2477_v2, %v2243_v4  ;;  %v7972_v4 = vld [vmem:[%s10931_s5 + $0x434] sm:$0xf0]  ;;  %v7970_v2 = vld [vmem:[%s10931_s5 + $0x424] sm:$0xf0] }
 0x35a   : > { %v2218_v13 = vpop.f32.mrf.mxu0  ;;  %v6705_v61 = vor.u32 %v7972_v4, %v6704_v60  ;;  %v6697_v12 = vor.u32 %v7970_v2, %v6696_v1  ;;  %v7952_v4 = vld [vmem:[%s10931_s5 + $0x394] sm:$0xf0]  ;;  %v7946_v1 = vld [vmem:[%s10931_s5 + $0x364] sm:$0xf0] }
 0x35b   : > { %v6688_v13 = vld [vmem:[%s10931_s5 + $0x410] sm:$0xf] }
 0x35f   : > { %v2268_v23 = vpop.f32.mrf.mxu2 }
 0x360   : > { %v2269_v28 = vadd.f32 %v2268_v23, %v2255_v3  ;;  %v2479_v29 = vpop.f32.mrf.mxu1  ;;  %v6656_v23 = vld [vmem:[%s10931_s5 + $0x3d0] sm:$0xf] }
 0x361   : > { %v2257_v21 = vpop.f32.mrf.mxu3  ;;  %v6657_v29 = vor.u32 %v7960_v26, %v6656_v23  ;;  %v7978_v23 = vld [vmem:[%s10931_s5 + $0x464] sm:$0xf0] }
 0x362   : > { %v2281_v32 = vpop.f32.mrf.mxu0  ;;  %v6680_v21 = vld [vmem:[%s10931_s5 + $0x400] sm:$0xf] }
 0x363   : > { %v2282_v30 = vadd.f32 %v2281_v32, %v2269_v28  ;;  %v6689_v28 = vor.u32 %v7968_v14, %v6688_v13  ;;  %v7966_v32 = vld [vmem:[%s10931_s5 + $0x404] sm:$0xf0]  ;;  %v6736_v14 = vld [vmem:[%s10931_s5 + $0x470] sm:$0xf] }
 0x367   : > { %v2270_v56 = vpop.f32.mrf.mxu2 }
 0x368   : > { %v2542_v31 = vpop.f32.mrf.mxu1  ;;  %v7953_v56 = vld [vmem:[%s10931_s5 + $0x3a4] sm:$0xf] }
 0x369   : > { %v2490_v36 = vpop.f32.mrf.mxu3 }
 0x36a   : > { %v2491_v37 = vadd.f32 %v2490_v36, %v2478_v5  ;;  %v2283_v38 = vpop.f32.mrf.mxu0  ;;  %v7957_v5 = vld [vmem:[%s10931_s5 + $0x3c4] sm:$0xf]  ;;  %v6634_v36 = vld [vmem:[%s10931_s5 + $0x3a8] sm:$0xf0] }
 0x36b   : > { %v6653_v16 = vor.u32 %v7957_v5, %v6650_v8  ;;  %v7956_v38 = vld [vmem:[%s10931_s5 + $0x3b4] sm:$0xf0]  ;;  %v7977_v8 = vld [vmem:[%s10931_s5 + $0x464] sm:$0xf] }
 0x36f   : > { %v2516_v55 = vpop.f32.mrf.mxu2 }
 0x370   : > { %v2517_v41 = vadd.f32 %v2516_v55, %v2282_v30  ;;  %v2544_v40 = vpop.f32.mrf.mxu1  ;;  %v6645_v30 = vor.u32 %v7955_v17, %v6642_v18  ;;  %v6681_v55 = vor.u32 %v7966_v32, %v6680_v21  ;;  %v6728_v18 = vld [vmem:[%s10931_s5 + $0x460] sm:$0xf]  ;;  %v6714_v21 = vld [vmem:[%s10931_s5 + $0x448] sm:$0xf0] }
 0x371   : > { %v2492_v42 = vpop.f32.mrf.mxu3  ;;  %v7964_v40 = vld [vmem:[%s10931_s5 + $0x3f4] sm:$0xf0]  ;;  %v6729_v26 = vor.u32 %v7978_v23, %v6728_v18  ;;  %v6906_v18 = vld [vmem:[%s10931_s5 + $0x570] sm:$0xf] }
 0x372   : > { %v2503_v43 = vpop.f32.mrf.mxu0  ;;  %v6637_v42 = vor.u32 %v7953_v56, %v6634_v36  ;;  %v6706_v56 = vld [vmem:[%s10931_s5 + $0x438] sm:$0xf0]  ;;  %v8012_v23 = vld [vmem:[%s10931_s5 + $0x574] sm:$0xf0] }
 0x373   : > { %v10045_v46 = vadd.f32 %v2503_v43, %v2491_v37  ;;  %v6640_v37 = vld [vmem:[%s10931_s5 + $0x3b0] sm:$0xf]  ;;  %v7951_v43 = vld [vmem:[%s10931_s5 + $0x394] sm:$0xf] }
 0x377   : > { %v2518_v47 = vpop.f32.mrf.mxu2 }
 0x378   : > { %v2573_v48 = vpop.f32.mrf.mxu1  ;;  %v6641_v47 = vor.u32 %v7956_v38, %v6640_v37  ;;  %v7969_v37 = vld [vmem:[%s10931_s5 + $0x424] sm:$0xf]  ;;  %v6698_v38 = vld [vmem:[%s10931_s5 + $0x428] sm:$0xf0] }
 0x379   : > { %v2560_v33 = vpop.f32.mrf.mxu3  ;;  %v2591_v62 = vpack.c.bf16 %v2573_v48, %v2573_v48  ;;  %v6626_v48 = vld [vmem:[%s10931_s5 + $0x398] sm:$0xf0] }
 0x37a   : > { %v2590_v50 = vpack.c.bf16 %v2560_v33, %v2560_v33  ;;  %v2505_v20 = vpop.f32.mrf.mxu0  ;;  %v6632_v33 = vld [vmem:[%s10931_s5 + $0x3a0] sm:$0xf]  ;;  %v6629_v53 = vor.u32 %v7951_v43, %v6626_v48  ;;  %v7967_v48 = vld [vmem:[%s10931_s5 + $0x414] sm:$0xf] }
 0x37b   : > { %2834 = vmatmul.bf16.vlgmr.msra.gmra.mxu0 %v2591_v62  ;;  %v6664_v20 = vld [vmem:[%s10931_s5 + $0x3e0] sm:$0xf] }
 0x37c   : > { %2821 = vmatmul.bf16.vlgmr.msrb.gmra.mxu3 %v2590_v50  ;;  %2860 = vmatmul.bf16.vlgmr.msra.gmra.mxu2 %v2590_v50 }
 0x37d   : > { %2930 = vmatpush.bf16.msrb.mxu3 %v9336_v15  ;;  %3160 = vmatpush.bf16.msra.mxu0 %v6657_v29 }
 0x37f   : > { %v2586_v51 = vpop.f32.mrf.mxu2 }
 0x380   : > { %v2592_v52 = vpack.c.bf16 %v2586_v51, %v2586_v51  ;;  %v2575_v59 = vpop.f32.mrf.mxu1 }
 0x381   : > { %2931 = vmatpush.bf16.msrb.mxu3 %v9355_v24  ;;  %v2562_v35 = vpop.f32.mrf.mxu3  ;;  %v6665_v59 = vor.u32 %v7962_v63, %v6664_v20  ;;  %v7965_v63 = vld [vmem:[%s10931_s5 + $0x404] sm:$0xf] }
 0x382   : > { %6556 = vmatmul.msk.bf16.vlgmr.msrb.gmra.mxu1 %vm2203_vm5, %v2592_v52  ;;  %v2529_v11 = vpop.f32.mrf.mxu0  ;;  %v6610_v35 = vld [vmem:[%s10931_s5 + $0x378] sm:$0xf0] }
 0x383   : > { %3173 = vmatpush.bf16.msrb.mxu1 %v6721_v58  ;;  %v2530_v57 = vadd.f32 %v2529_v11, %v2517_v41  ;;  %v6672_v41 = vld [vmem:[%s10931_s5 + $0x3f0] sm:$0xf]  ;;  %v7949_v58 = vld [vmem:[%s10931_s5 + $0x384] sm:$0xf]  ;;  %v6613_v11 = vor.u32 %v7947_v54, %v6610_v35 }
 0x384   : > { %v6673_v50 = vor.u32 %v7964_v40, %v6672_v41 }
 0x385   : > { %v10068_v10 = vadd.f32 %v2542_v31, %v2530_v57  ;;  %v6649_v31 = vor.u32 %v7958_v22, %v6648_v27  ;;  %v7945_v57 = vld [vmem:[%s10931_s5 + $0x364] sm:$0xf]  ;;  %v7975_v27 = vld [vmem:[%s10931_s5 + $0x454] sm:$0xf] }
 0x386   : > { %v7973_v22 = vld [vmem:[%s10931_s5 + $0x444] sm:$0xf] }
 0x387   : > { %3174 = vmatpush.bf16.msrb.mxu1 %v6713_v49  ;;  %v2588_v44 = vpop.f32.mrf.mxu2  ;;  %3161 = vmatpush.bf16.msra.mxu0 %v6649_v31  ;;  %v6602_v49 = vld [vmem:[%s10931_s5 + $0x368] sm:$0xf0]  ;;  %v6717_v32 = vor.u32 %v7973_v22, %v6714_v21  ;;  %v8010_v21 = vld [vmem:[%s10931_s5 + $0x564] sm:$0xf0] }
 0x388   : > { %v6605_v60 = vor.u32 %v7945_v57, %v6602_v49  ;;  %v7961_v57 = vld [vmem:[%s10931_s5 + $0x3e4] sm:$0xf]  ;;  %v6666_v49 = vld [vmem:[%s10931_s5 + $0x3e8] sm:$0xf0] }
 0x38a   : > { %v2531_v3 = vpop.f32.mrf.mxu0 }
 0x38b   : > { %3175 = vmatpush.bf16.msrb.mxu1 %v6705_v61  ;;  %6559 = vmatmul.msk.bf16.vlgmr.msrb.gmra.mxu0 %vm1847_vm4, %v6558_v0  ;;  %v7948_v61 = vld [vmem:[%s10931_s5 + $0x374] sm:$0xf0]  ;;  %v6738_v3 = vld [vmem:[%s10931_s5 + $0x478] sm:$0xf0] }
 0x38c   : > { %6557 = vmatmul.msk.bf16.vlgmr.msra.gmra.mxu3 %vm2203_vm5, %v2592_v52  ;;  %6560 = vmatmul.msk.bf16.vlgmr.msrb.gmra.mxu2 %vm1847_vm4, %v6558_v0  ;;  %v6618_v52 = vld [vmem:[%s10931_s5 + $0x388] sm:$0xf0] }
 0x38d   : > { %3199 = vmatpush.bf16.msra.mxu3 %v6661_v45  ;;  %3162 = vmatpush.bf16.msra.mxu0 %v6641_v47  ;;  %v6621_v34 = vor.u32 %v7949_v58, %v6618_v52  ;;  %v7979_v45 = vld [vmem:[%s10931_s5 + $0x474] sm:$0xf] }
 0x38e   : > { %v6741_v5 = vor.u32 %v7979_v45, %v6738_v3  ;;  %v6826_v45 = vld [vmem:[%s10931_s5 + $0x4d0] sm:$0xf]  ;;  %v7992_v3 = vld [vmem:[%s10931_s5 + $0x4d4] sm:$0xf0] }
 0x38f   : > { %3176 = vmatpush.bf16.msrb.mxu1 %v6697_v12  ;;  %v6730_v12 = vld [vmem:[%s10931_s5 + $0x468] sm:$0xf0] }
 0x390   : > { %v6733_v13 = vor.u32 %v7977_v8, %v6730_v12 }
 0x391   : > { %3200 = vmatpush.bf16.msra.mxu3 %v6653_v16  ;;  %v7980_v16 = vld [vmem:[%s10931_s5 + $0x474] sm:$0xf0] }
 0x392   : > { %2873 = vmatmul.bf16.vlgmr.msra.gmra.mxu1 %v2591_v62  ;;  %v7954_v62 = vld [vmem:[%s10931_s5 + $0x3a4] sm:$0xf0]  ;;  %v6737_v17 = vor.u32 %v7980_v16, %v6736_v14 }
 0x393   : > { %3177 = vmatpush.bf16.msrb.mxu1 %v6689_v28  ;;  %v6633_v51 = vor.u32 %v7954_v62, %v6632_v33  ;;  %v6722_v28 = vld [vmem:[%s10931_s5 + $0x458] sm:$0xf0] }
 0x394   : > { %3192 = vmatpush.bf16.msra.mxu2 %v6737_v17  ;;  %v6725_v29 = vor.u32 %v7975_v27, %v6722_v28  ;;  %v6690_v33 = vld [vmem:[%s10931_s5 + $0x418] sm:$0xf0]  ;;  %v6818_v27 = vld [vmem:[%s10931_s5 + $0x4c0] sm:$0xf]  ;;  %v7990_v28 = vld [vmem:[%s10931_s5 + $0x4c4] sm:$0xf0] }
 0x395   : > { %3201 = vmatpush.bf16.msra.mxu3 %v6645_v30  ;;  %3163 = vmatpush.bf16.msra.mxu0 %v6633_v51  ;;  %v7971_v30 = vld [vmem:[%s10931_s5 + $0x434] sm:$0xf]  ;;  %v6819_v22 = vor.u32 %v7990_v28, %v6818_v27  ;;  %v6850_v27 = vld [vmem:[%s10931_s5 + $0x500] sm:$0xf] }
 0x396   : > { %v6709_v36 = vor.u32 %v7971_v30, %v6706_v56  ;;  %v7995_v30 = vld [vmem:[%s10931_s5 + $0x4f4] sm:$0xf]  ;;  %v6844_v56 = vld [vmem:[%s10931_s5 + $0x4f8] sm:$0xf0] }
 0x397   : > { %3178 = vmatpush.bf16.msrb.mxu1 %v6681_v55  ;;  %v6701_v55 = vor.u32 %v7969_v37, %v6698_v38  ;;  %v7988_v37 = vld [vmem:[%s10931_s5 + $0x4b4] sm:$0xf0]  ;;  %v6890_v38 = vld [vmem:[%s10931_s5 + $0x550] sm:$0xf] }
 0x398   : > { %3193 = vmatpush.bf16.msra.mxu2 %v6729_v26  ;;  %v6907_v26 = vor.u32 %v8012_v23, %v6906_v18  ;;  %v8009_v23 = vld [vmem:[%s10931_s5 + $0x564] sm:$0xf] }
 0x399   : > { %3202 = vmatpush.bf16.msra.mxu3 %v6637_v42 }
 0x39b   : > { %3179 = vmatpush.bf16.msrb.mxu1 %v6673_v50  ;;  %v6693_v50 = vor.u32 %v7967_v48, %v6690_v33  ;;  %v6802_v48 = vld [vmem:[%s10931_s5 + $0x4a0] sm:$0xf]  ;;  %v7986_v33 = vld [vmem:[%s10931_s5 + $0x4a4] sm:$0xf0] }
 0x39c   : > { %6561 = vmatmul.msk.bf16.vlgmr.msrb.gmra.mxu3 %vm1847_vm4, %v6558_v0  ;;  %v6600_v0 = vld [vmem:[%s10931_s5 + $0x360] sm:$0xf]  ;;  %3212 = vmatpush.bf16.msrb.mxu2 %v6725_v29 }
 0x39d   : > { %3203 = vmatpush.bf16.msra.mxu3 %v6629_v53  ;;  %v6601_v2 = vor.u32 %v7946_v1, %v6600_v0  ;;  %v6682_v53 = vld [vmem:[%s10931_s5 + $0x408] sm:$0xf0]  ;;  %v6898_v29 = vld [vmem:[%s10931_s5 + $0x560] sm:$0xf] }
 0x39e   : > { %v6685_v51 = vor.u32 %v7965_v63, %v6682_v53  ;;  %v8006_v63 = vld [vmem:[%s10931_s5 + $0x544] sm:$0xf0] }
 0x39f   : > { %3180 = vmatpush.bf16.msrb.mxu1 %v6665_v59  ;;  %v7963_v59 = vld [vmem:[%s10931_s5 + $0x3f4] sm:$0xf] }
 0x3a0   : > { %3213 = vmatpush.bf16.msrb.mxu2 %v6717_v32  ;;  %v6899_v32 = vor.u32 %v8010_v21, %v6898_v29  ;;  %v7998_v29 = vld [vmem:[%s10931_s5 + $0x504] sm:$0xf0]  ;;  %v7983_v21 = vld [vmem:[%s10931_s5 + $0x494] sm:$0xf] }
 0x3a1   : > { %3204 = vmatpush.bf16.msra.mxu3 %v6621_v34 }
 0x3a3   : > { %3251 = vmatpush.bf16.msra.mxu1 %v9309_v39  ;;  %v6624_v39 = vld [vmem:[%s10931_s5 + $0x390] sm:$0xf] }
 0x3a4   : > { %3214 = vmatpush.bf16.msrb.mxu2 %v6709_v36  ;;  %v6810_v36 = vld [vmem:[%s10931_s5 + $0x4b0] sm:$0xf] }
 0x3a5   : > { %3205 = vmatpush.bf16.msra.mxu3 %v6613_v11 }
 0x3a7   : > { %3252 = vmatpush.bf16.msra.mxu1 %v9314_v6  ;;  %v6625_v6 = vor.u32 %v7952_v4, %v6624_v39 }
 0x3a8   : > { %3215 = vmatpush.bf16.msrb.mxu2 %v6701_v55  ;;  %v6811_v55 = vor.u32 %v7988_v37, %v6810_v36  ;;  %v8015_v36 = vld [vmem:[%s10931_s5 + $0x594] sm:$0xf] }
 0x3a9   : > { %3206 = vmatpush.bf16.msra.mxu3 %v6605_v60  ;;  %3164 = vmatpush.bf16.msra.mxu0 %v6625_v6  ;;  %v6669_v60 = vor.u32 %v7961_v57, %v6666_v49  ;;  %v8004_v57 = vld [vmem:[%s10931_s5 + $0x534] sm:$0xf0] }
 0x3ac   : > { %3216 = vmatpush.bf16.msrb.mxu2 %v6693_v50  ;;  %v6803_v50 = vor.u32 %v7986_v33, %v6802_v48  ;;  %v6884_v48 = vld [vmem:[%s10931_s5 + $0x548] sm:$0xf0]  ;;  %v8013_v33 = vld [vmem:[%s10931_s5 + $0x584] sm:$0xf] }
 0x3ad   : > { %3264 = vmatpush.bf16.msrb.mxu3 %v9327_v7  ;;  %v6617_v7 = vor.u32 %v7950_v25, %v6616_v9 }
 0x3af   : > { %3165 = vmatpush.bf16.msra.mxu0 %v6617_v7 }
 0x3b0   : > { %3217 = vmatpush.bf16.msrb.mxu2 %v6685_v51  ;;  %v7991_v51 = vld [vmem:[%s10931_s5 + $0x4d4] sm:$0xf] }
 0x3b1   : > { %3265 = vmatpush.bf16.msrb.mxu3 %v9348_v19  ;;  %v6608_v19 = vld [vmem:[%s10931_s5 + $0x370] sm:$0xf] }
 0x3b2   : > { %v6609_v44 = vor.u32 %v7948_v61, %v6608_v19  ;;  %v6842_v61 = vld [vmem:[%s10931_s5 + $0x4f0] sm:$0xf] }
 0x3b4   : > { %3166 = vmatpush.bf16.msra.mxu0 %v6609_v44  ;;  %v6834_v44 = vld [vmem:[%s10931_s5 + $0x4e0] sm:$0xf] }
 0x3b8   : > { %3167 = vmatpush.bf16.msra.mxu0 %v6601_v2 }
 0x3bc   : > { %3231 = vmatpush.bf16.msrb.mxu0 %v6741_v5 }
 0x3c0   : > { %3232 = vmatpush.bf16.msrb.mxu0 %v6733_v13  ;;  %v6827_v13 = vor.u32 %v7992_v3, %v6826_v45 }
 0x3f8   : > { %v2835_v31 = vpop.f32.mrf.mxu0 }
 0x3ff   : > { %v2822_v41 = vpop.f32.mrf.mxu3  ;;  %v2848_v40 = vpop.f32.mrf.mxu1 }
 0x400   : > { %v2836_v42 = vadd.f32 %v2835_v31, %v2822_v41  ;;  %v2861_v43 = vpop.f32.mrf.mxu2  ;;  %v2837_v47 = vpop.f32.mrf.mxu0  ;;  %v6847_v31 = vor.u32 %v7995_v30, %v6844_v56  ;;  %v8008_v41 = vld [vmem:[%s10931_s5 + $0x554] sm:$0xf0]  ;;  %v8007_v56 = vld [vmem:[%s10931_s5 + $0x554] sm:$0xf] }
 0x402   : > { %v2849_v62 = vadd.f32 %v2848_v40, %v2836_v42  ;;  %v6891_v40 = vor.u32 %v8008_v41, %v6890_v38  ;;  %v7993_v42 = vld [vmem:[%s10931_s5 + $0x4e4] sm:$0xf] }
 0x404   : > { %v10262_v20 = vadd.f32 %v2849_v62, %v10045_v46  ;;  %v6674_v46 = vld [vmem:[%s10931_s5 + $0x3f8] sm:$0xf0]  ;;  %v6882_v62 = vld [vmem:[%s10931_s5 + $0x540] sm:$0xf] }
 0x405   : > { %v6677_v35 = vor.u32 %v7963_v59, %v6674_v46  ;;  %v6883_v53 = vor.u32 %v8006_v63, %v6882_v62  ;;  %v7984_v59 = vld [vmem:[%s10931_s5 + $0x494] sm:$0xf0]  ;;  %v6922_v46 = vld [vmem:[%s10931_s5 + $0x590] sm:$0xf]  ;;  %v6916_v63 = vld [vmem:[%s10931_s5 + $0x588] sm:$0xf0] }
 0x407   : > { %v2824_v58 = vpop.f32.mrf.mxu3  ;;  %v2850_v52 = vpop.f32.mrf.mxu1  ;;  %3218 = vmatpush.bf16.msrb.mxu2 %v6677_v35  ;;  %v8016_v35 = vld [vmem:[%s10931_s5 + $0x594] sm:$0xf0] }
 0x408   : > { %v2863_v34 = vpop.f32.mrf.mxu2  ;;  %v2907_v54 = vpop.f32.mrf.mxu0  ;;  %v6828_v58 = vld [vmem:[%s10931_s5 + $0x4d8] sm:$0xf0]  ;;  %v6794_v52 = vld [vmem:[%s10931_s5 + $0x490] sm:$0xf]  ;;  %v6923_v49 = vor.u32 %v8016_v35, %v6922_v46  ;;  %v6868_v35 = vld [vmem:[%s10931_s5 + $0x528] sm:$0xf0] }
 0x409   : > { %v2937_v11 = vpack.c.bf16 %v2907_v54, %v2907_v54  ;;  %v6831_v34 = vor.u32 %v7991_v51, %v6828_v58  ;;  %v6795_v54 = vor.u32 %v7984_v59, %v6794_v52  ;;  %v8003_v59 = vld [vmem:[%s10931_s5 + $0x534] sm:$0xf]  ;;  %v6876_v46 = vld [vmem:[%s10931_s5 + $0x538] sm:$0xf0] }
 0x40b   : > { %3168 = vmatmul.bf16.vlgmr.msra.gmra.mxu0 %v2937_v11  ;;  %3207 = vmatmul.bf16.vlgmr.msra.gmra.mxu3 %v2937_v11  ;;  %v6874_v11 = vld [vmem:[%s10931_s5 + $0x530] sm:$0xf] }
 0x40c   : > { %3277 = vmatpush.bf16.msra.mxu0 %v9336_v15  ;;  %3219 = vmatpush.bf16.msrb.mxu2 %v6669_v60  ;;  %v7996_v15 = vld [vmem:[%s10931_s5 + $0x4f4] sm:$0xf0]  ;;  %v6875_v60 = vor.u32 %v8004_v57, %v6874_v11 }
 0x40d   : > { %v6843_v0 = vor.u32 %v7996_v15, %v6842_v61  ;;  %3539 = vmatpush.bf16.msra.mxu3 %v6923_v49  ;;  %v8002_v61 = vld [vmem:[%s10931_s5 + $0x524] sm:$0xf0] }
 0x40f   : > { %v2874_v39 = vpop.f32.mrf.mxu1  ;;  %v2887_v4 = vpop.f32.mrf.mxu3 }
 0x410   : > { %v2875_v9 = vadd.f32 %v2874_v39, %v2861_v43  ;;  %v2920_v6 = vpop.f32.mrf.mxu2  ;;  %3278 = vmatpush.bf16.msra.mxu0 %v9355_v24  ;;  %v2909_v25 = vpop.f32.mrf.mxu0  ;;  %v7994_v24 = vld [vmem:[%s10931_s5 + $0x4e4] sm:$0xf0]  ;;  %v6836_v43 = vld [vmem:[%s10931_s5 + $0x4e8] sm:$0xf0]  ;;  %v7989_v39 = vld [vmem:[%s10931_s5 + $0x4c4] sm:$0xf] }
 0x411   : > { %v2938_v7 = vpack.c.bf16 %v2920_v6, %v2920_v6  ;;  %v6835_v2 = vor.u32 %v7994_v24, %v6834_v44  ;;  %v6839_v47 = vor.u32 %v7993_v42, %v6836_v43  ;;  %v6786_v6 = vld [vmem:[%s10931_s5 + $0x480] sm:$0xf]  ;;  %v7982_v25 = vld [vmem:[%s10931_s5 + $0x484] sm:$0xf0]  ;;  %v7987_v44 = vld [vmem:[%s10931_s5 + $0x4b4] sm:$0xf] }
 0x412   : > { %v2888_v19 = vadd.f32 %v2887_v4, %v2875_v9  ;;  %v6820_v4 = vld [vmem:[%s10931_s5 + $0x4c8] sm:$0xf0]  ;;  %v6914_v24 = vld [vmem:[%s10931_s5 + $0x580] sm:$0xf] }
 0x413   : > { %3181 = vmatmul.bf16.vlgmr.msrb.gmra.mxu1 %v2938_v7  ;;  %v6823_v9 = vor.u32 %v7989_v39, %v6820_v4  ;;  %v6788_v42 = vld [vmem:[%s10931_s5 + $0x488] sm:$0xf0]  ;;  %v6860_v39 = vld [vmem:[%s10931_s5 + $0x518] sm:$0xf0] }
 0x414   : > { %v10297_v1 = vadd.f32 %v2888_v19, %v10068_v10  ;;  %3507 = vmatpush.bf16.msrb.mxu1 %v6843_v0  ;;  %v6744_v10 = vld [vmem:[%s10930_s4 + $0x10] sm:$0xf]  ;;  %v6787_v19 = vor.u32 %v7982_v25, %v6786_v6  ;;  %v6812_v0 = vld [vmem:[%s10931_s5 + $0x4b8] sm:$0xf0]  ;;  %v6852_v6 = vld [vmem:[%s10931_s5 + $0x508] sm:$0xf0] }
 0x415   : > { %v6815_v45 = vor.u32 %v7987_v44, %v6812_v0 }
 0x417   : > { %v2876_v5 = vpop.f32.mrf.mxu1  ;;  %v2889_v8 = vpop.f32.mrf.mxu3 }
 0x418   : > { %v2922_v12 = vpop.f32.mrf.mxu2  ;;  %3508 = vmatpush.bf16.msrb.mxu1 %v6835_v2  ;;  %v8014_v2 = vld [vmem:[%s10931_s5 + $0x584] sm:$0xf0]  ;;  %v8011_v5 = vld [vmem:[%s10931_s5 + $0x574] sm:$0xf]  ;;  %v6908_v8 = vld [vmem:[%s10931_s5 + $0x578] sm:$0xf0] }
 0x419   : > { %v6915_v3 = vor.u32 %v8014_v2, %v6914_v24  ;;  %v6858_v12 = vld [vmem:[%s10931_s5 + $0x510] sm:$0xf] }
 0x41b   : > { %6746 = vmatmul.msk.bf16.vlgmr.msrb.gmra.mxu3 %vm1847_vm4, %v6744_v10 }
 0x41c   : > { %3509 = vmatpush.bf16.msrb.mxu1 %v6827_v13  ;;  %v6911_v13 = vor.u32 %v8011_v5, %v6908_v8  ;;  %3540 = vmatpush.bf16.msra.mxu3 %v6915_v3 }
 0x41f   : > { %v2933_v14 = vpop.f32.mrf.mxu3 }
 0x420   : > { %v2939_v16 = vpack.c.bf16 %v2933_v14, %v2933_v14  ;;  %3510 = vmatpush.bf16.msrb.mxu1 %v6819_v22  ;;  %3559 = vmatpush.bf16.msrb.mxu3 %v6911_v13  ;;  %v6851_v22 = vor.u32 %v7998_v29, %v6850_v27  ;;  %v8036_v27 = vld [vmem:[%s10934_s8 + $0x98] sm:$0xff]  ;;  %v8033_v29 = vld [vmem:[%s10934_s8 + $0x80] sm:$0xff] }
 0x422   : > { %6742 = vmatmul.msk.bf16.vlgmr.msra.gmra.mxu2 %vm2203_vm5, %v2939_v16  ;;  %6743 = vmatmul.msk.bf16.vlgmr.msrb.gmra.mxu0 %vm2203_vm5, %v2939_v16  ;;  %v7985_v16 = vld [vmem:[%s10931_s5 + $0x4a4] sm:$0xf] }
 0x423   : > { %6745 = vmatmul.msk.bf16.vlgmr.msra.gmra.mxu1 %vm1847_vm4, %v6744_v10  ;;  %3520 = vmatpush.bf16.msra.mxu2 %v6907_v26  ;;  %v6900_v26 = vld [vmem:[%s10931_s5 + $0x568] sm:$0xf0] }
 0x424   : > { %3546 = vmatpush.bf16.msrb.mxu0 %v6847_v31  ;;  %3511 = vmatpush.bf16.msrb.mxu1 %v6811_v55  ;;  %v6903_v28 = vor.u32 %v8009_v23, %v6900_v26  ;;  %v6892_v31 = vld [vmem:[%s10931_s5 + $0x558] sm:$0xf0]  ;;  %v8037_v26 = vld [vmem:[%s10934_s8 + $0xa0] sm:$0xff] }
 0x425   : > { %v6895_v38 = vor.u32 %v8007_v56, %v6892_v31  ;;  %v6924_v55 = vld [vmem:[%s10931_s5 + $0x598] sm:$0xf0] }
 0x426   : > { %3560 = vmatpush.bf16.msrb.mxu3 %v6903_v28  ;;  %v6927_v41 = vor.u32 %v8015_v36, %v6924_v55  ;;  %v8034_v28 = vld [vmem:[%s10934_s8 + $0x88] sm:$0xff] }
 0x427   : > { %v2935_v17 = vpop.f32.mrf.mxu3  ;;  %3521 = vmatpush.bf16.msra.mxu2 %v6899_v32  ;;  %v6796_v32 = vld [vmem:[%s10931_s5 + $0x498] sm:$0xf0] }
 0x428   : > { %3547 = vmatpush.bf16.msrb.mxu0 %v6839_v47  ;;  %3512 = vmatpush.bf16.msrb.mxu1 %v6803_v50  ;;  %v6804_v17 = vld [vmem:[%s10931_s5 + $0x4a8] sm:$0xf0]  ;;  %v6799_v37 = vor.u32 %v7983_v21, %v6796_v32  ;;  %v8005_v47 = vld [vmem:[%s10931_s5 + $0x544] sm:$0xf] }
 0x429   : > { %v6807_v18 = vor.u32 %v7985_v16, %v6804_v17  ;;  %v6887_v50 = vor.u32 %v8005_v47, %v6884_v48 }
 0x42a   : > { %3561 = vmatpush.bf16.msrb.mxu3 %v6895_v38 }
 0x42b   : > { %3522 = vmatpush.bf16.msra.mxu2 %v6891_v40  ;;  %v7981_v40 = vld [vmem:[%s10931_s5 + $0x484] sm:$0xf] }
 0x42c   : > { %3548 = vmatpush.bf16.msrb.mxu0 %v6831_v34  ;;  %3513 = vmatpush.bf16.msrb.mxu1 %v6795_v54  ;;  %v6791_v43 = vor.u32 %v7981_v40, %v6788_v42  ;;  %v6879_v34 = vor.u32 %v8003_v59, %v6876_v46  ;;  %v8001_v54 = vld [vmem:[%s10931_s5 + $0x524] sm:$0xf]  ;;  %v3599_v59 = vld [vmem:[%s10933_s7] sm:$0x1]  ;;  %v6932_v46 = vld [vmem:[%s10933_s7 + $0x1] sm:$0x1] }
 0x42d   : > { %v6871_v57 = vor.u32 %v8001_v54, %v6868_v35 }
 0x42e   : > { %3562 = vmatpush.bf16.msrb.mxu3 %v6887_v50 }
 0x42f   : > { %3523 = vmatpush.bf16.msra.mxu2 %v6883_v53  ;;  %v6919_v53 = vor.u32 %v8013_v33, %v6916_v63 }
 0x430   : > { %3549 = vmatpush.bf16.msrb.mxu0 %v6823_v9  ;;  %3514 = vmatpush.bf16.msrb.mxu1 %v6787_v19  ;;  %v7997_v9 = vld [vmem:[%s10931_s5 + $0x504] sm:$0xf] }
 0x432   : > { %3220 = vmatmul.bf16.vlgmr.msrb.gmra.mxu2 %v2938_v7  ;;  %6747 = vmatmul.msk.bf16.vlgmr.msra.gmra.mxu0 %vm1847_vm4, %v6744_v10  ;;  %v6866_v7 = vld [vmem:[%s10931_s5 + $0x520] sm:$0xf]  ;;  %v8000_v10 = vld [vmem:[%s10931_s5 + $0x514] sm:$0xf0] }
 0x433   : > { %3524 = vmatpush.bf16.msra.mxu2 %v6875_v60  ;;  %v6867_v15 = vor.u32 %v8002_v61, %v6866_v7  ;;  %v6859_v14 = vor.u32 %v8000_v10, %v6858_v12  ;;  %3563 = vmatpush.bf16.msrb.mxu3 %v6879_v34  ;;  %v7999_v60 = vld [vmem:[%s10931_s5 + $0x514] sm:$0xf]  ;;  %v6855_v7 = vor.u32 %v7997_v9, %v6852_v6 }
 0x434   : > { %3550 = vmatpush.bf16.msrb.mxu0 %v6815_v45  ;;  %3578 = vmatpush.bf16.msra.mxu1 %v6927_v41  ;;  %v6863_v4 = vor.u32 %v7999_v60, %v6860_v39  ;;  %v3587_v41 = vld [vmem:[%s10932_s6] sm:$0x3]  ;;  %v8023_v39 = vld [vmem:[%s10934_s8 + $0x30] sm:$0xff] }
 0x437   : > { %3525 = vmatpush.bf16.msra.mxu2 %v6867_v15  ;;  %3564 = vmatpush.bf16.msrb.mxu3 %v6871_v57 }
 0x438   : > { %3551 = vmatpush.bf16.msrb.mxu0 %v6807_v18  ;;  %3579 = vmatpush.bf16.msra.mxu1 %v6919_v53 }
 0x43b   : > { %3526 = vmatpush.bf16.msra.mxu2 %v6859_v14  ;;  %3565 = vmatpush.bf16.msrb.mxu3 %v6863_v4 }
 0x43c   : > { %3552 = vmatpush.bf16.msrb.mxu0 %v6799_v37 }
 0x43f   : > { %3527 = vmatpush.bf16.msra.mxu2 %v6851_v22  ;;  %3566 = vmatpush.bf16.msrb.mxu3 %v6855_v7  ;;  %v8032_v22 = vld [vmem:[%s10934_s8 + $0x78] sm:$0xff]  ;;  %v8022_v7 = vld [vmem:[%s10934_s8 + $0x28] sm:$0xff] }
 0x440   : > { %3553 = vmatpush.bf16.msrb.mxu0 %v6791_v43  ;;  %v3589_v43 = vperm.slane %v3587_v41, 0 }
 0x488   : > { %v3169_v30 = vpop.f32.mrf.mxu0 }
 0x48e   : > { %v3208_v62 = vpop.f32.mrf.mxu3 }
 0x490   : > { %v3182_v51 = vpop.f32.mrf.mxu1  ;;  %v3171_v58 = vpop.f32.mrf.mxu0 }
 0x491   : > { %v3183_v52 = vadd.f32 %v3182_v51, %v3169_v30  ;;  %v8031_v30 = vld [vmem:[%s10934_s8 + $0x70] sm:$0xff] }
 0x496   : > { %v3210_v11 = vpop.f32.mrf.mxu3 }
 0x497   : > { %v3590_v11 = vperm.slane %v3587_v41, 1 }
 0x498   : > { %v3184_v49 = vpop.f32.mrf.mxu1 }
 0x499   : > { %v8024_v49 = vld [vmem:[%s10934_s8 + $0x38] sm:$0xff] }
 0x49e   : > { %v3267_v25 = vpop.f32.mrf.mxu3 }
 0x49f   : > { %v3234_v19 = vpop.f32.mrf.mxu0  ;;  %v3285_v61 = vpack.c.bf16 %v3267_v25, %v3267_v25  ;;  %v8044_v25 = vld [vmem:[%s10934_s8 + $0xd8] sm:$0xff] }
 0x4a0   : > { %v3254_v15 = vpop.f32.mrf.mxu1 }
 0x4a1   : > { %v3284_v44 = vpack.c.bf16 %v3254_v15, %v3254_v15  ;;  %3528 = vmatmul.bf16.vlgmr.msra.gmra.mxu2 %v3285_v61  ;;  %v8043_v15 = vld [vmem:[%s10934_s8 + $0xd0] sm:$0xff] }
 0x4a3   : > { %3515 = vmatmul.bf16.vlgmr.msrb.gmra.mxu1 %v3284_v44  ;;  %3554 = vmatmul.bf16.vlgmr.msrb.gmra.mxu0 %v3284_v44  ;;  %v8021_v44 = vld [vmem:[%s10934_s8 + $0x20] sm:$0xff] }
 0x4a5   : > { %v3195_v0 = vpop.f32.mrf.mxu2 }
 0x4a6   : > { %v3196_v24 = vadd.f32 %v3195_v0, %v3183_v52  ;;  %v3269_v2 = vpop.f32.mrf.mxu3  ;;  %v8029_v0 = vld [vmem:[%s10934_s8 + $0x60] sm:$0xff] }
 0x4a7   : > { %v3236_v45 = vpop.f32.mrf.mxu0  ;;  %v8020_v2 = vld [vmem:[%s10934_s8 + $0x18] sm:$0xff] }
 0x4a8   : > { %v3238_v3 = vadd.f32 %v3196_v24, %v10262_v20  ;;  %v3256_v5 = vpop.f32.mrf.mxu1  ;;  %v8038_v20 = vld [vmem:[%s10934_s8 + $0xa8] sm:$0xff]  ;;  %v8028_v45 = vld [vmem:[%s10934_s8 + $0x58] sm:$0xff] }
 0x4a9   : > { %v8042_v24 = vld [vmem:[%s10934_s8 + $0xc8] sm:$0xff]  ;;  %v8019_v5 = vld [vmem:[%s10934_s8 + $0x10] sm:$0xff] }
 0x4ad   : > { %v3197_v8 = vpop.f32.mrf.mxu2 }
 0x4ae   : > { %v8027_v8 = vld [vmem:[%s10934_s8 + $0x50] sm:$0xff] }
 0x4af   : > { %v3280_v12 = vpop.f32.mrf.mxu0 }
 0x4b0   : > { %v3286_v13 = vpack.c.bf16 %v3280_v12, %v3280_v12  ;;  %v8040_v12 = vld [vmem:[%s10934_s8 + $0xb8] sm:$0xff] }
 0x4b2   : > { %6928 = vmatmul.msk.bf16.vlgmr.msra.gmra.mxu3 %vm2203_vm5, %v3286_v13 }
 0x4b3   : > { %6929 = vmatmul.msk.bf16.vlgmr.msra.gmra.mxu1 %vm2203_vm5, %v3286_v13  ;;  %3819 = vmatpush.bf16.msra.mxu3 %v8038_v20  ;;  %v8018_v13 = vld [vmem:[%s10934_s8 + $0x8] sm:$0xff]  ;;  %v8057_v20 = vld [vmem:[%s10934_s8 + $0x140] sm:$0xff] }
 0x4b5   : > { %v3221_v10 = vpop.f32.mrf.mxu2 }
 0x4b6   : > { %v3222_v14 = vadd.f32 %v3221_v10, %v3208_v62  ;;  %v8346_v62 = vmov 65535   ;;  %v8026_v10 = vld [vmem:[%s10934_s8 + $0x48] sm:$0xff] }
 0x4b7   : > { %v3282_v16 = vpop.f32.mrf.mxu0  ;;  %3820 = vmatpush.bf16.msra.mxu3 %v8037_v26  ;;  %v3605_v50 = vsel %vm3604_vm6, 4294967295, %v8346_v62  ;;  %v8051_v26 = vld [vmem:[%s10934_s8 + $0x110] sm:$0xff] }
 0x4b8   : > { %v3235_v17 = vadd.f32 %v3234_v19, %v3222_v14  ;;  %v3606_v53 = vsel %vm511_vm0, %v3605_v50, 0  ;;  %v8039_v14 = vld [vmem:[%s10934_s8 + $0xb0] sm:$0xff]  ;;  %v8017_v16 = vld [vmem:[%s10934_s8] sm:$0xff] }
 0x4ba   : > { %v3239_v18 = vadd.f32 %v3235_v17, %v10297_v1  ;;  %v8035_v1 = vld [vmem:[%s10934_s8 + $0x90] sm:$0xff]  ;;  %v8058_v17 = vld [vmem:[%s10934_s8 + $0x148] sm:$0xff] }
 0x4bb   : > { %3821 = vmatpush.bf16.msra.mxu3 %v8036_v27  ;;  %v8056_v27 = vld [vmem:[%s10934_s8 + $0x138] sm:$0xff] }
 0x4bd   : > { %v3223_v23 = vpop.f32.mrf.mxu2 }
 0x4be   : > { %v8052_v23 = vld [vmem:[%s10934_s8 + $0x118] sm:$0xff] }
 0x4bf   : > { %3822 = vmatpush.bf16.msra.mxu3 %v8035_v1  ;;  %v8050_v1 = vld [vmem:[%s10934_s8 + $0x108] sm:$0xff] }
 0x4c2   : > { %3567 = vmatmul.bf16.vlgmr.msrb.gmra.mxu3 %v3285_v61  ;;  %v8030_v61 = vld [vmem:[%s10934_s8 + $0x68] sm:$0xff] }
 0x4c3   : > { %3823 = vmatpush.bf16.msra.mxu3 %v8034_v28  ;;  %v8055_v28 = vld [vmem:[%s10934_s8 + $0x130] sm:$0xff] }
 0x4c7   : > { %3824 = vmatpush.bf16.msra.mxu3 %v8033_v29  ;;  %v8049_v29 = vld [vmem:[%s10934_s8 + $0x100] sm:$0xff] }
 0x4cb   : > { %3825 = vmatpush.bf16.msra.mxu3 %v8032_v22  ;;  %v8054_v22 = vld [vmem:[%s10934_s8 + $0x128] sm:$0xff] }
 0x4cf   : > { %3826 = vmatpush.bf16.msra.mxu3 %v8031_v30  ;;  %v8047_v30 = vld [vmem:[%s10934_s8 + $0xf0] sm:$0xff] }
 0x520   : > { %v3516_v21 = vpop.f32.mrf.mxu1  ;;  %v3555_v32 = vpop.f32.mrf.mxu0 }
 0x524   : > { %v3529_v56 = vpop.f32.mrf.mxu2 }
 0x525   : > { %v3530_v55 = vadd.f32 %v3529_v56, %v3516_v21  ;;  %v8048_v21 = vld [vmem:[%s10934_s8 + $0xf8] sm:$0xff]  ;;  %v8046_v56 = vld [vmem:[%s10934_s8 + $0xe8] sm:$0xff] }
 0x528   : > { %v3518_v31 = vpop.f32.mrf.mxu1  ;;  %v3557_v36 = vpop.f32.mrf.mxu0 }
 0x529   : > { %v8045_v31 = vld [vmem:[%s10934_s8 + $0xe0] sm:$0xff] }
 0x52c   : > { %v3531_v37 = vpop.f32.mrf.mxu2 }
 0x530   : > { %v3581_v38 = vpop.f32.mrf.mxu1 }
 0x535   : > { %v3542_v40 = vpop.f32.mrf.mxu3 }
 0x536   : > { %v3543_v42 = vadd.f32 %v3542_v40, %v3530_v55 }
 0x538   : > { %v3585_v47 = vadd.f32 %v3543_v42, %v3238_v3  ;;  %v3583_v48 = vpop.f32.mrf.mxu1  ;;  %v8041_v3 = vld [vmem:[%s10934_s8 + $0xc0] sm:$0xff] }
 0x539   : > { %v7077_v42 = vld [vmem:[%s10933_s7 + $0x2] sm:$0x1] }
 0x53a   : > { %v3593_v33 = vadd.f32 %v3589_v43, %v3585_v47 }
 0x53c   : > { %v3595_v63 = vmax.f32 %v3593_v33, 0.0 }
 0x53d   : > { %v3544_v51 = vpop.f32.mrf.mxu3 }
 0x53e   : > { %v3597_v58 = vpack.c.bf16 %v3595_v63, %v3595_v63  ;;  %v7165_v63 = vld [vmem:[%s10933_s7 + $0x3] sm:$0x1] }
 0x53f   : > { %v8065_v51 = vld [vmem:[%s10934_s8 + $0x180] sm:$0xff] }
 0x540   : > { %v10543_v52 = vand.u32 %v3606_v53, %v3597_v58  ;;  %v8064_v58 = vld [vmem:[%s10934_s8 + $0x178] sm:$0xff] }
 0x542   : > { %3620 = vmatpush.bf16.msrb.mxu2 %v10543_v52  ;;  %3681 = vmatpush.bf16.msrb.mxu1 %v10543_v52 }
 0x543   : > { %3970 = vmatpush.bf16.msrb.mxu3 %v10543_v52 }
 0x545   : > { %v3568_v34 = vpop.f32.mrf.mxu3  ;;  %6930 = vmatmul.msk.bf16.vlgmr.msrb.gmra.mxu2 %vm3600_vm7, %v3599_v59  ;;  %6933 = vmatmul.msk.bf16.vlgmr.msrb.gmra.mxu1 %vm3600_vm7, %v6932_v46 }
 0x546   : > { %v3569_v54 = vadd.f32 %v3568_v34, %v3555_v32  ;;  %3932 = vmatpush.bf16.msra.mxu1 %v8024_v49  ;;  %v8053_v32 = vld [vmem:[%s10934_s8 + $0x120] sm:$0xff]  ;;  %v8060_v49 = vld [vmem:[%s10934_s8 + $0x158] sm:$0xff] }
 0x548   : > { %v3582_v35 = vadd.f32 %v3581_v38, %v3569_v54 }
 0x54a   : > { %v3586_v57 = vadd.f32 %v3582_v35, %v3239_v18  ;;  %3933 = vmatpush.bf16.msra.mxu1 %v8023_v39  ;;  %v8025_v18 = vld [vmem:[%s10934_s8 + $0x40] sm:$0xff]  ;;  %v8071_v35 = vld [vmem:[%s10934_s8 + $0x1b0] sm:$0xff] }
 0x54c   : > { %v3594_v60 = vadd.f32 %v3590_v11, %v3586_v57  ;;  %v8061_v11 = vld [vmem:[%s10934_s8 + $0x160] sm:$0xff]  ;;  %v8070_v57 = vld [vmem:[%s10934_s8 + $0x1a8] sm:$0xff] }
 0x54d   : > { %v3570_v4 = vpop.f32.mrf.mxu3 }
 0x54e   : > { %v3596_v9 = vmax.f32 %v3594_v60, 0.0  ;;  %3934 = vmatpush.bf16.msra.mxu1 %v8022_v7  ;;  %v8069_v4 = vld [vmem:[%s10934_s8 + $0x1a0] sm:$0xff] }
 0x550   : > { %v3598_v6 = vpack.c.bf16 %v3596_v9, %v3596_v9  ;;  %v8059_v9 = vld [vmem:[%s10934_s8 + $0x150] sm:$0xff] }
 0x552   : > { %v10568_v19 = vand.u32 %v3606_v53, %v3598_v6  ;;  %3935 = vmatpush.bf16.msra.mxu1 %v8021_v44  ;;  %v8066_v53 = vld [vmem:[%s10934_s8 + $0x188] sm:$0xff]  ;;  %v8068_v6 = vld [vmem:[%s10934_s8 + $0x198] sm:$0xff] }
 0x554   : > { %3633 = vmatpush.bf16.msra.mxu0 %v10568_v19  ;;  %3694 = vmatpush.bf16.msra.mxu2 %v10568_v19 }
 0x556   : > { %3936 = vmatpush.bf16.msra.mxu1 %v8020_v2 }
 0x557   : > { %6931 = vmatmul.msk.bf16.vlgmr.msra.gmra.mxu0 %vm3600_vm7, %v3599_v59  ;;  %6934 = vmatmul.msk.bf16.vlgmr.msra.gmra.mxu2 %vm3600_vm7, %v6932_v46  ;;  %v8072_v59 = vld [vmem:[%s10934_s8 + $0x1b8] sm:$0xff]  ;;  %v8062_v46 = vld [vmem:[%s10934_s8 + $0x168] sm:$0xff] }
 0x558   : > { %3834 = vmatpush.bf16.msrb.mxu0 %v8044_v25  ;;  %3947 = vmatpush.bf16.msrb.mxu2 %v8030_v61 }
 0x55a   : > { %3937 = vmatpush.bf16.msra.mxu1 %v8019_v5 }
 0x55c   : > { %3835 = vmatpush.bf16.msrb.mxu0 %v8043_v15  ;;  %3948 = vmatpush.bf16.msrb.mxu2 %v8029_v0 }
 0x55e   : > { %3938 = vmatpush.bf16.msra.mxu1 %v8018_v13 }
 0x560   : > { %3836 = vmatpush.bf16.msrb.mxu0 %v8042_v24  ;;  %3949 = vmatpush.bf16.msrb.mxu2 %v8028_v45  ;;  %v8086_v24 = vld [vmem:[%s10934_s8 + $0x228] sm:$0xff] }
 0x562   : > { %3939 = vmatpush.bf16.msra.mxu1 %v8017_v16 }
 0x564   : > { %3837 = vmatpush.bf16.msrb.mxu0 %v8041_v3  ;;  %3950 = vmatpush.bf16.msrb.mxu2 %v8027_v8  ;;  %v7253_v8 = vld [vmem:[%s10933_s7 + $0x4] sm:$0x1] }
 0x566   : > { %4122 = vmatpush.bf16.msrb.mxu1 %v8058_v17  ;;  %v8079_v17 = vld [vmem:[%s10934_s8 + $0x1f0] sm:$0xff] }
 0x568   : > { %3838 = vmatpush.bf16.msrb.mxu0 %v8040_v12  ;;  %3951 = vmatpush.bf16.msrb.mxu2 %v8026_v10 }
 0x56a   : > { %4123 = vmatpush.bf16.msrb.mxu1 %v8057_v20 }
 0x56c   : > { %3839 = vmatpush.bf16.msrb.mxu0 %v8039_v14  ;;  %3952 = vmatpush.bf16.msrb.mxu2 %v8025_v18  ;;  %v8080_v14 = vld [vmem:[%s10934_s8 + $0x1f8] sm:$0xff] }
 0x56e   : > { %4124 = vmatpush.bf16.msrb.mxu1 %v8056_v27 }
 0x570   : > { %3983 = vmatpush.bf16.msra.mxu0 %v10568_v19  ;;  %4107 = vmatpush.bf16.msra.mxu2 %v8052_v23 }
 0x572   : > { %4125 = vmatpush.bf16.msrb.mxu1 %v8055_v28  ;;  %v8078_v28 = vld [vmem:[%s10934_s8 + $0x1e8] sm:$0xff] }
 0x574   : > { %4108 = vmatpush.bf16.msra.mxu2 %v8051_v26 }
 0x576   : > { %4126 = vmatpush.bf16.msrb.mxu1 %v8054_v22  ;;  %v8083_v22 = vld [vmem:[%s10934_s8 + $0x210] sm:$0xff] }
 0x578   : > { %4109 = vmatpush.bf16.msra.mxu2 %v8050_v1  ;;  %v8085_v1 = vld [vmem:[%s10934_s8 + $0x220] sm:$0xff] }
 0x57a   : > { %4127 = vmatpush.bf16.msrb.mxu1 %v8053_v32  ;;  %v8082_v32 = vld [vmem:[%s10934_s8 + $0x208] sm:$0xff] }
 0x57c   : > { %4110 = vmatpush.bf16.msra.mxu2 %v8049_v29  ;;  %v8084_v29 = vld [vmem:[%s10934_s8 + $0x218] sm:$0xff] }
 0x580   : > { %4111 = vmatpush.bf16.msra.mxu2 %v8048_v21  ;;  %v8077_v21 = vld [vmem:[%s10934_s8 + $0x1e0] sm:$0xff] }
 0x584   : > { %4112 = vmatpush.bf16.msra.mxu2 %v8047_v30  ;;  %v8076_v30 = vld [vmem:[%s10934_s8 + $0x1d8] sm:$0xff] }
 0x588   : > { %4113 = vmatpush.bf16.msra.mxu2 %v8046_v56  ;;  %v8081_v56 = vld [vmem:[%s10934_s8 + $0x200] sm:$0xff] }
 0x58c   : > { %4114 = vmatpush.bf16.msra.mxu2 %v8045_v31  ;;  %v8075_v31 = vld [vmem:[%s10934_s8 + $0x1d0] sm:$0xff] }
 0x5c2   : > { %v3683_v36 = vpop.f32.mrf.mxu1 }
 0x5c3   : > { %v3700_v37 = vpack.c.bf16 %v3683_v36, %v3683_v36  ;;  %v8074_v36 = vld [vmem:[%s10934_s8 + $0x1c8] sm:$0xff] }
 0x5c5   : > { %3827 = vmatmul.bf16.vlgmr.msra.gmra.mxu3 %v3700_v37  ;;  %v8073_v37 = vld [vmem:[%s10934_s8 + $0x1c0] sm:$0xff] }
 0x5c6   : > { %4146 = vmatpush.bf16.msra.mxu3 %v10543_v52 }
 0x5c8   : > { %v3622_v38 = vpop.f32.mrf.mxu2 }
 0x5c9   : > { %v3639_v55 = vpack.c.bf16 %v3622_v38, %v3622_v38 }
 0x5ca   : > { %v3685_v41 = vpop.f32.mrf.mxu1 }
 0x5cb   : > { %3940 = vmatmul.bf16.vlgmr.msra.gmra.mxu1 %v3639_v55  ;;  %v7455_v55 = vld [vmem:[#allocation2 + $0xe0] sm:$0xf]  ;;  %v8117_v41 = vld [vmem:[#allocation2 + $0xec] sm:$0xf0] }
 0x5cc   : > { %4322 = vmatpush.bf16.msra.mxu1 %v10543_v52  ;;  %v8063_v52 = vld [vmem:[%s10934_s8 + $0x170] sm:$0xff] }
 0x5d0   : > { %v3624_v40 = vpop.f32.mrf.mxu2 }
 0x5d1   : > { %v8115_v40 = vld [vmem:[#allocation2 + $0xe4] sm:$0xf] }
 0x5d4   : > { %v3635_v43 = vpop.f32.mrf.mxu0 }
 0x5d5   : > { %v3640_v47 = vpack.c.bf16 %v3635_v43, %v3635_v43  ;;  %7078 = vmatmul.msk.bf16.vlgmr.msrb.gmra.mxu3 %vm3600_vm7, %v7077_v42  ;;  %v7457_v43 = vld [vmem:[#allocation2 + $0xf0] sm:$0xf0] }
 0x5d6   : > { %4283 = vmatpush.bf16.msrb.mxu3 %v8066_v53  ;;  %v7439_v53 = vld [vmem:[#allocation2 + $0xc0] sm:$0xf] }
 0x5d7   : > { %7076 = vmatmul.msk.bf16.vlgmr.msrb.gmra.mxu2 %vm3815_vm8, %v3640_v47  ;;  %v7463_v47 = vld [vmem:[#allocation2 + $0xe8] sm:$0xf] }
 0x5d8   : > { %4335 = vmatpush.bf16.msrb.mxu2 %v10568_v19 }
 0x5da   : > { %v3696_v48 = vpop.f32.mrf.mxu2  ;;  %4284 = vmatpush.bf16.msrb.mxu3 %v8065_v51 }
 0x5db   : > { %v3701_v33 = vpack.c.bf16 %v3696_v48, %v3696_v48  ;;  %v8118_v48 = vld [vmem:[#allocation2 + $0xf4] sm:$0xf0] }
 0x5dc   : > { %v3637_v62 = vpop.f32.mrf.mxu0 }
 0x5dd   : > { %7019 = vmatmul.msk.bf16.vlgmr.msrb.gmra.mxu0 %vm3815_vm8, %v3701_v33  ;;  %v7460_v33 = vor.u32 %v8115_v40, %v7457_v43  ;;  %v7464_v62 = vor.u32 %v8118_v48, %v7463_v47  ;;  %v8097_v43 = vld [vmem:[#allocation2 + $0x4c] sm:$0xf0]  ;;  %v8095_v47 = vld [vmem:[#allocation2 + $0x44] sm:$0xf] }
 0x5de   : > { %4159 = vmatpush.bf16.msrb.mxu0 %v10568_v19  ;;  %4285 = vmatpush.bf16.msrb.mxu3 %v8064_v58  ;;  %v8067_v19 = vld [vmem:[%s10934_s8 + $0x190] sm:$0xff] }
 0x5df   : > { %v8113_v58 = vld [vmem:[#allocation2 + $0xcc] sm:$0xf0] }
 0x5e2   : > { %v3698_v50 = vpop.f32.mrf.mxu2  ;;  %4286 = vmatpush.bf16.msrb.mxu3 %v8063_v52  ;;  %v8111_v52 = vld [vmem:[#allocation2 + $0xc4] sm:$0xf] }
 0x5e3   : > { %v8116_v50 = vld [vmem:[#allocation2 + $0xec] sm:$0xf] }
 0x5e5   : > { %7166 = vmatmul.msk.bf16.vlgmr.msra.gmra.mxu3 %vm3600_vm7, %v7165_v63 }
 0x5e6   : > { %4287 = vmatpush.bf16.msrb.mxu3 %v8062_v46 }
 0x5ea   : > { %4288 = vmatpush.bf16.msrb.mxu3 %v8061_v11  ;;  %v8114_v11 = vld [vmem:[#allocation2 + $0xd4] sm:$0xf0] }
 0x5ed   : > { %7079 = vmatmul.msk.bf16.vlgmr.msra.gmra.mxu0 %vm3600_vm7, %v7077_v42  ;;  %v7456_v42 = vor.u32 %v8117_v41, %v7455_v55 }
 0x5ee   : > { %4298 = vmatpush.bf16.msra.mxu0 %v8072_v59  ;;  %4289 = vmatpush.bf16.msrb.mxu3 %v8060_v49  ;;  %v7441_v59 = vld [vmem:[#allocation2 + $0xd0] sm:$0xf0] }
 0x5f2   : > { %4299 = vmatpush.bf16.msra.mxu0 %v8071_v35  ;;  %4290 = vmatpush.bf16.msrb.mxu3 %v8059_v9  ;;  %v7447_v35 = vld [vmem:[#allocation2 + $0xc8] sm:$0xf] }
 0x5f3   : > { %v7448_v49 = vor.u32 %v8114_v11, %v7447_v35 }
 0x5f6   : > { %4300 = vmatpush.bf16.msra.mxu0 %v8070_v57  ;;  %4699 = vmatpush.bf16.msra.mxu3 %v7460_v33  ;;  %v8112_v57 = vld [vmem:[#allocation2 + $0xcc] sm:$0xf]  ;;  %v7377_v33 = vld [vmem:[#allocation2 + $0x50] sm:$0xf0] }
 0x5fa   : > { %4301 = vmatpush.bf16.msra.mxu0 %v8069_v4  ;;  %v8109_v4 = vld [vmem:[#allocation2 + $0xac] sm:$0xf0] }
 0x5fd   : > { %7167 = vmatmul.msk.bf16.vlgmr.msrb.gmra.mxu0 %vm3600_vm7, %v7165_v63  ;;  %v7465_v63 = vld [vmem:[#allocation2 + $0xf8] sm:$0xf0] }
 0x5fe   : > { %4302 = vmatpush.bf16.msra.mxu0 %v8068_v6  ;;  %v7468_v51 = vor.u32 %v8116_v50, %v7465_v63  ;;  %v8107_v6 = vld [vmem:[#allocation2 + $0xa4] sm:$0xf]  ;;  %v8098_v50 = vld [vmem:[#allocation2 + $0x54] sm:$0xf0]  ;;  %v8096_v63 = vld [vmem:[#allocation2 + $0x4c] sm:$0xf] }
 0x602   : > { %4303 = vmatpush.bf16.msra.mxu0 %v8067_v19 }
 0x606   : > { %4686 = vmatpush.bf16.msrb.mxu0 %v7456_v42  ;;  %v7375_v42 = vld [vmem:[#allocation2 + $0x40] sm:$0xf] }
 0x648   : > { %v3828_v34 = vpop.f32.mrf.mxu3  ;;  %v3941_v54 = vpop.f32.mrf.mxu1 }
 0x650   : > { %v3830_v60 = vpop.f32.mrf.mxu3  ;;  %v3943_v39 = vpop.f32.mrf.mxu1 }
 0x651   : > { %v7449_v60 = vld [vmem:[#allocation2 + $0xd8] sm:$0xf0]  ;;  %v7423_v39 = vld [vmem:[#allocation2 + $0xa0] sm:$0xf] }
 0x652   : > { %v7452_v9 = vor.u32 %v8112_v57, %v7449_v60  ;;  %v7424_v19 = vor.u32 %v8109_v4, %v7423_v39  ;;  %v7361_v57 = vld [vmem:[#allocation2 + $0x30] sm:$0xf0]  ;;  %v8094_v60 = vld [vmem:[#allocation2 + $0x34] sm:$0xf0]  ;;  %v8092_v39 = vld [vmem:[#allocation2 + $0x2c] sm:$0xf] }
 0x653   : > { %v7369_v4 = vld [vmem:[#allocation2 + $0x38] sm:$0xf0] }
 0x658   : > { %v3972_v25 = vpop.f32.mrf.mxu3 }
 0x659   : > { %v3989_v7 = vpack.c.bf16 %v3972_v25, %v3972_v25  ;;  %v7425_v25 = vld [vmem:[#allocation2 + $0xb0] sm:$0xf0] }
 0x65a   : > { %v3841_v61 = vpop.f32.mrf.mxu0  ;;  %v3954_v15 = vpop.f32.mrf.mxu2 }
 0x65b   : > { %v3842_v44 = vadd.f32 %v3841_v61, %v3828_v34  ;;  %4115 = vmatmul.bf16.vlgmr.msra.gmra.mxu2 %v3989_v7  ;;  %v7440_v34 = vor.u32 %v8113_v58, %v7439_v53  ;;  %v7431_v7 = vld [vmem:[#allocation2 + $0xa8] sm:$0xf]  ;;  %v8110_v61 = vld [vmem:[#allocation2 + $0xb4] sm:$0xf0]  ;;  %v7385_v53 = vld [vmem:[#allocation2 + $0x58] sm:$0xf0] }
 0x65c   : > { %4474 = vmatpush.bf16.msra.mxu2 %v8086_v24  ;;  %v7428_v24 = vor.u32 %v8107_v6, %v7425_v25  ;;  %v7388_v11 = vor.u32 %v8096_v63, %v7385_v53  ;;  %v7343_v6 = vld [vmem:[#allocation2] sm:$0xf]  ;;  %v8089_v25 = vld [vmem:[#allocation2 + $0xc] sm:$0xf0]  ;;  %v8139_v53 = vld [vmem:[#allocation2 + $0x1a4] sm:$0xf] }
 0x65d   : > { %v3942_v0 = vadd.f32 %v3941_v54, %v3842_v44  ;;  %v7444_v54 = vor.u32 %v8111_v52, %v7441_v59  ;;  %4687 = vmatpush.bf16.msrb.mxu0 %v7440_v34  ;;  %v7433_v44 = vld [vmem:[#allocation2 + $0xb8] sm:$0xf0]  ;;  %v7380_v52 = vor.u32 %v8095_v47, %v7377_v33  ;;  %v8093_v34 = vld [vmem:[#allocation2 + $0x2c] sm:$0xf0] }
 0x65e   : > { %v7577_v33 = vld [vmem:[#allocation2 + $0x1d8] sm:$0xf0]  ;;  %v8141_v63 = vld [vmem:[#allocation2 + $0x1ac] sm:$0xf0] }
 0x65f   : > { %v10726_v2 = vadd.f32 %v3954_v15, %v3942_v0  ;;  %v8108_v15 = vld [vmem:[#allocation2 + $0xac] sm:$0xf]  ;;  %4700 = vmatpush.bf16.msra.mxu3 %v7444_v54  ;;  %v8091_v54 = vld [vmem:[#allocation2 + $0x24] sm:$0xf] }
 0x660   : > { %v3974_v45 = vpop.f32.mrf.mxu3  ;;  %4475 = vmatpush.bf16.msra.mxu2 %v8085_v1 }
 0x661   : > { %v7432_v45 = vor.u32 %v8110_v61, %v7431_v7  ;;  %4688 = vmatpush.bf16.msrb.mxu0 %v7424_v19  ;;  %v7364_v61 = vor.u32 %v8091_v54, %v7361_v57  ;;  %v7561_v54 = vld [vmem:[#allocation2 + $0x1b8] sm:$0xf0]  ;;  %v7535_v57 = vld [vmem:[#allocation2 + $0x180] sm:$0xf] }
 0x662   : > { %v3843_v3 = vpop.f32.mrf.mxu0  ;;  %v3956_v5 = vpop.f32.mrf.mxu2 }
 0x663   : > { %v7407_v3 = vld [vmem:[#allocation2 + $0x80] sm:$0xf]  ;;  %v8105_v5 = vld [vmem:[#allocation2 + $0x8c] sm:$0xf0]  ;;  %4701 = vmatpush.bf16.msra.mxu3 %v7428_v24  ;;  %v7351_v24 = vld [vmem:[#allocation2 + $0x8] sm:$0xf] }
 0x664   : > { %4476 = vmatpush.bf16.msra.mxu2 %v8084_v29  ;;  %v7391_v29 = vld [vmem:[#allocation2 + $0x60] sm:$0xf] }
 0x668   : > { %v4148_v12 = vpop.f32.mrf.mxu3  ;;  %4477 = vmatpush.bf16.msra.mxu2 %v8083_v22  ;;  %v8101_v22 = vld [vmem:[#allocation2 + $0x6c] sm:$0xf0] }
 0x669   : > { %v4165_v13 = vpack.c.bf16 %v4148_v12, %v4148_v12 }
 0x66a   : > { %v3985_v10 = vpop.f32.mrf.mxu0 }
 0x66b   : > { %v3990_v16 = vpack.c.bf16 %v3985_v10, %v3985_v10  ;;  %7255 = vmatmul.msk.bf16.vlgmr.msrb.gmra.mxu2 %vm3600_vm7, %v7253_v8  ;;  %4291 = vmatmul.bf16.vlgmr.msrb.gmra.mxu3 %v4165_v13  ;;  %v7436_v13 = vor.u32 %v8108_v15, %v7433_v44  ;;  %v7409_v10 = vld [vmem:[#allocation2 + $0x90] sm:$0xf0]  ;;  %v8087_v44 = vld [vmem:[#allocation2 + $0x4] sm:$0xf] }
 0x66c   : > { %4478 = vmatpush.bf16.msra.mxu2 %v8082_v32 }
 0x66d   : > { %7164 = vmatmul.msk.bf16.vlgmr.msrb.gmra.mxu1 %vm3815_vm8, %v3990_v16  ;;  %v8106_v16 = vld [vmem:[#allocation2 + $0x94] sm:$0xf0] }
 0x66e   : > { %4459 = vmatpush.bf16.msrb.mxu1 %v8080_v14  ;;  %v7415_v14 = vld [vmem:[#allocation2 + $0x88] sm:$0xf] }
 0x670   : > { %v4150_v18 = vpop.f32.mrf.mxu3  ;;  %4479 = vmatpush.bf16.msra.mxu2 %v8081_v56  ;;  %v7393_v56 = vld [vmem:[#allocation2 + $0x70] sm:$0xf0] }
 0x671   : > { %v7417_v18 = vld [vmem:[#allocation2 + $0x98] sm:$0xf0] }
 0x672   : > { %v3987_v23 = vpop.f32.mrf.mxu0  ;;  %4460 = vmatpush.bf16.msrb.mxu1 %v8079_v17  ;;  %v8104_v17 = vld [vmem:[#allocation2 + $0x8c] sm:$0xf] }
 0x674   : > { %4712 = vmatpush.bf16.msrb.mxu2 %v7464_v62  ;;  %v7383_v62 = vld [vmem:[#allocation2 + $0x48] sm:$0xf] }
 0x675   : > { %v7384_v59 = vor.u32 %v8098_v50, %v7383_v62  ;;  %v7551_v50 = vld [vmem:[#allocation2 + $0x1a0] sm:$0xf] }
 0x676   : > { %4461 = vmatpush.bf16.msrb.mxu1 %v8078_v28  ;;  %v7416_v28 = vor.u32 %v8106_v16, %v7415_v14  ;;  %v8149_v14 = vld [vmem:[#allocation2 + $0x1ec] sm:$0xf0]  ;;  %v8147_v16 = vld [vmem:[#allocation2 + $0x1e4] sm:$0xf] }
 0x678   : > { %4713 = vmatpush.bf16.msrb.mxu2 %v7448_v49  ;;  %v7367_v49 = vld [vmem:[#allocation2 + $0x28] sm:$0xf] }
 0x679   : > { %v7368_v15 = vor.u32 %v8094_v60, %v7367_v49  ;;  %v8137_v49 = vld [vmem:[#allocation2 + $0x18c] sm:$0xf0]  ;;  %v8135_v60 = vld [vmem:[#allocation2 + $0x184] sm:$0xf] }
 0x67a   : > { %v4161_v20 = vpop.f32.mrf.mxu0  ;;  %4462 = vmatpush.bf16.msrb.mxu1 %v8077_v21  ;;  %v8099_v21 = vld [vmem:[#allocation2 + $0x64] sm:$0xf] }
 0x67b   : > { %v4166_v26 = vpack.c.bf16 %v4161_v20, %v4161_v20  ;;  %v7408_v20 = vor.u32 %v8105_v5, %v7407_v3  ;;  %v7396_v41 = vor.u32 %v8099_v21, %v7393_v56  ;;  %v7372_v5 = vor.u32 %v8092_v39, %v7369_v4  ;;  %v7537_v4 = vld [vmem:[#allocation2 + $0x190] sm:$0xf0] }
 0x67c   : > { %4714 = vmatpush.bf16.msrb.mxu2 %v7432_v45  ;;  %v7536_v39 = vor.u32 %v8137_v49, %v7535_v57  ;;  %v8244_v57 = vld [vmem:[%s10935_s9] ss:$0 sm:$0xff] }
 0x67d   : > { %7252 = vmatmul.msk.bf16.vlgmr.msra.gmra.mxu0 %vm3815_vm8, %v4166_v26  ;;  %7254 = vmatmul.msk.bf16.vlgmr.msra.gmra.mxu1 %vm3600_vm7, %v7253_v8  ;;  %v8103_v8 = vld [vmem:[#allocation2 + $0x84] sm:$0xf] }
 0x67e   : > { %4463 = vmatpush.bf16.msrb.mxu1 %v8076_v30  ;;  %v7412_v1 = vor.u32 %v8103_v8, %v7409_v10  ;;  %v7420_v30 = vor.u32 %v8104_v17, %v7417_v18  ;;  %4689 = vmatpush.bf16.msrb.mxu0 %v7408_v20  ;;  %v8090_v8 = vld [vmem:[#allocation2 + $0x14] sm:$0xf0]  ;;  %v7583_v10 = vld [vmem:[#allocation2 + $0x1e0] sm:$0xf]  ;;  %v7344_v18 = vor.u32 %v8089_v25, %v7343_v6  ;;  %v7585_v20 = vld [vmem:[#allocation2 + $0x1f0] sm:$0xf0] }
 0x67f   : > { %v8138_v6 = vld [vmem:[#allocation2 + $0x194] sm:$0xf0]  ;;  %v7540_v25 = vor.u32 %v8135_v60, %v7537_v4 }
 0x680   : > { %4702 = vmatpush.bf16.msra.mxu3 %v7412_v1  ;;  %4715 = vmatpush.bf16.msrb.mxu2 %v7416_v28  ;;  %v8150_v1 = vld [vmem:[#allocation2 + $0x1f4] sm:$0xf0]  ;;  %v7352_v28 = vor.u32 %v8090_v8, %v7351_v24  ;;  %v8131_v24 = vld [vmem:[#allocation2 + $0x164] sm:$0xf] }
 0x681   : > { %v8134_v8 = vld [vmem:[#allocation2 + $0x174] sm:$0xf0] }
 0x682   : > { %v4163_v27 = vpop.f32.mrf.mxu0  ;;  %4464 = vmatpush.bf16.msrb.mxu1 %v8075_v31  ;;  %v7399_v31 = vld [vmem:[#allocation2 + $0x68] sm:$0xf] }
 0x684   : > { %4703 = vmatpush.bf16.msra.mxu3 %v7396_v41  ;;  %v7569_v41 = vld [vmem:[#allocation2 + $0x1d0] sm:$0xf0] }
 0x686   : > { %4465 = vmatpush.bf16.msrb.mxu1 %v8074_v36  ;;  %v8102_v36 = vld [vmem:[#allocation2 + $0x74] sm:$0xf0] }
 0x687   : > { %v7400_v40 = vor.u32 %v8102_v36, %v7399_v31 }
 0x688   : > { %4704 = vmatpush.bf16.msra.mxu3 %v7380_v52  ;;  %v7559_v52 = vld [vmem:[#allocation2 + $0x1a8] sm:$0xf] }
 0x689   : > { %4716 = vmatpush.bf16.msrb.mxu2 %v7400_v40  ;;  %v7575_v40 = vld [vmem:[#allocation2 + $0x1c8] sm:$0xf] }
 0x68a   : > { %4466 = vmatpush.bf16.msrb.mxu1 %v8073_v37  ;;  %v7401_v37 = vld [vmem:[#allocation2 + $0x78] sm:$0xf0] }
 0x68c   : > { %4705 = vmatpush.bf16.msra.mxu3 %v7364_v61  ;;  %v7545_v61 = vld [vmem:[#allocation2 + $0x198] sm:$0xf0] }
 0x68d   : > { %4717 = vmatpush.bf16.msrb.mxu2 %v7384_v59 }
 0x68e   : > { %4725 = vmatpush.bf16.msra.mxu1 %v7468_v51  ;;  %v7376_v51 = vor.u32 %v8097_v43, %v7375_v42  ;;  %v8146_v42 = vld [vmem:[#allocation2 + $0x1d4] sm:$0xf0] }
 0x68f   : > { %v7576_v47 = vor.u32 %v8146_v42, %v7575_v40  ;;  %v7497_v40 = vld [vmem:[#allocation2 + $0x138] sm:$0xf0] }
 0x691   : > { %4718 = vmatpush.bf16.msrb.mxu2 %v7368_v15 }
 0x692   : > { %4726 = vmatpush.bf16.msra.mxu1 %v7452_v9 }
 0x695   : > { %4719 = vmatpush.bf16.msrb.mxu2 %v7352_v28 }
 0x696   : > { %4727 = vmatpush.bf16.msra.mxu1 %v7436_v13  ;;  %v7353_v13 = vld [vmem:[#allocation2 + $0x18] sm:$0xf0] }
 0x69a   : > { %4728 = vmatpush.bf16.msra.mxu1 %v7420_v30  ;;  %v7588_v30 = vor.u32 %v8147_v16, %v7585_v20  ;;  %v7503_v16 = vld [vmem:[#allocation2 + $0x140] sm:$0xf]  ;;  %v8129_v20 = vld [vmem:[#allocation2 + $0x14c] sm:$0xf0] }
 0x6de   : > { %v4116_v38 = vpop.f32.mrf.mxu2 }
 0x6e6   : > { %v4118_v46 = vpop.f32.mrf.mxu2 }
 0x6e7   : > { %v7359_v46 = vld [vmem:[#allocation2 + $0x20] sm:$0xf] }
 0x6e8   : > { %v7360_v9 = vor.u32 %v8093_v34, %v7359_v46  ;;  %v8142_v46 = vld [vmem:[#allocation2 + $0x1b4] sm:$0xf0]  ;;  %v8140_v34 = vld [vmem:[#allocation2 + $0x1ac] sm:$0xf] }
 0x6ea   : > { %v4129_v0 = vpop.f32.mrf.mxu1 }
 0x6eb   : > { %v4130_v12 = vadd.f32 %v4129_v0, %v4116_v38  ;;  %v7392_v38 = vor.u32 %v8101_v22, %v7391_v29  ;;  %v7345_v0 = vld [vmem:[#allocation2 + $0x10] sm:$0xf0]  ;;  %v8148_v29 = vld [vmem:[#allocation2 + $0x1ec] sm:$0xf]  ;;  %v7593_v22 = vld [vmem:[#allocation2 + $0x1f8] sm:$0xf0] }
 0x6ed   : > { %v10775_v23 = vadd.f32 %v4130_v12, %v10726_v2  ;;  %v8100_v2 = vld [vmem:[#allocation2 + $0x6c] sm:$0xf]  ;;  %4690 = vmatpush.bf16.msrb.mxu0 %v7392_v38  ;;  %v8143_v38 = vld [vmem:[#allocation2 + $0x1c4] sm:$0xf] }
 0x6ee   : > { %v4337_v26 = vpop.f32.mrf.mxu2  ;;  %v10777_v27 = vpop.f32.mrf.mxu3  ;;  %v7404_v48 = vor.u32 %v8100_v2, %v7401_v37  ;;  %v8088_v12 = vld [vmem:[#allocation2 + $0xc] sm:$0xf]  ;;  %v7567_v2 = vld [vmem:[#allocation2 + $0x1c0] sm:$0xf]  ;;  %v8145_v37 = vld [vmem:[#allocation2 + $0x1cc] sm:$0xf0]  ;;  %v7572_v43 = vor.u32 %v8143_v38, %v7569_v41 }
 0x6ef   : > { %v4342_v32 = vpack.c.bf16 %v4337_v26, %v4337_v26  ;;  %v7591_v26 = vld [vmem:[#allocation2 + $0x1e8] sm:$0xf]  ;;  %v7356_v21 = vor.u32 %v8088_v12, %v7353_v13  ;;  %v8124_v41 = vld [vmem:[#allocation2 + $0x12c] sm:$0xf] }
 0x6f0   : > { %4729 = vmatpush.bf16.msra.mxu1 %v7404_v48  ;;  %v7592_v56 = vor.u32 %v8150_v1, %v7591_v26  ;;  %v8144_v48 = vld [vmem:[#allocation2 + $0x1cc] sm:$0xf]  ;;  %v8127_v26 = vld [vmem:[#allocation2 + $0x144] sm:$0xf]  ;;  %v7505_v1 = vld [vmem:[#allocation2 + $0x150] sm:$0xf0] }
 0x6f1   : > { %7340 = vmatmul.msk.bf16.vlgmr.msra.gmra.mxu2 %vm3815_vm8, %v4342_v32  ;;  %4691 = vmatpush.bf16.msrb.mxu0 %v7376_v51  ;;  %v7584_v32 = vor.u32 %v8149_v14, %v7583_v10  ;;  %v7580_v62 = vor.u32 %v8144_v48, %v7577_v33  ;;  %v7552_v51 = vor.u32 %v8141_v63, %v7551_v50  ;;  %v8132_v10 = vld [vmem:[#allocation2 + $0x16c] sm:$0xf]  ;;  %v7529_v14 = vld [vmem:[#allocation2 + $0x178] sm:$0xf0]  ;;  %v7473_v50 = vld [vmem:[#allocation2 + $0x110] sm:$0xf0] }
 0x6f2   : > { %v4131_v55 = vpop.f32.mrf.mxu1  ;;  %4975 = vmatpush.bf16.msra.mxu2 %v7592_v56  ;;  %v7508_v28 = vor.u32 %v8127_v26, %v7505_v1  ;;  %v7487_v56 = vld [vmem:[#allocation2 + $0x120] sm:$0xf]  ;;  %v7500_v33 = vor.u32 %v8124_v41, %v7497_v40  ;;  %v7479_v63 = vld [vmem:[#allocation2 + $0x108] sm:$0xf]  ;;  %v8178_v26 = vld [vmem:[%s10938_s12 + $0xd8] sm:$0xff] }
 0x6f3   : > { %v7568_v55 = vor.u32 %v8145_v37, %v7567_v2  ;;  %v7489_v2 = vld [vmem:[#allocation2 + $0x130] sm:$0xf0]  ;;  %v7495_v37 = vld [vmem:[#allocation2 + $0x128] sm:$0xf] }
 0x6f4   : > { %4730 = vmatpush.bf16.msra.mxu1 %v7388_v11  ;;  %v7564_v11 = vor.u32 %v8140_v34, %v7561_v54  ;;  %v8153_v1 = vld [vmem:[%s10938_s12 + $0x10] sm:$0xff] }
 0x6f5   : > { %4692 = vmatpush.bf16.msrb.mxu0 %v7360_v9  ;;  %v7543_v9 = vld [vmem:[#allocation2 + $0x188] sm:$0xf] }
 0x6f6   : > { %v4339_v58 = vpop.f32.mrf.mxu2  ;;  %v4294_v35 = vpop.f32.mrf.mxu3  ;;  %4976 = vmatpush.bf16.msra.mxu2 %v7576_v47  ;;  %v8121_v47 = vld [vmem:[#allocation2 + $0x10c] sm:$0xf0] }
 0x6f7   : > { %v7553_v58 = vld [vmem:[#allocation2 + $0x1b0] sm:$0xf0]  ;;  %v7560_v35 = vor.u32 %v8142_v46, %v7559_v52 }
 0x6f8   : > { %4731 = vmatpush.bf16.msra.mxu1 %v7372_v5  ;;  %v7556_v59 = vor.u32 %v8139_v53, %v7553_v58  ;;  %v7527_v5 = vld [vmem:[#allocation2 + $0x168] sm:$0xf]  ;;  %v8122_v53 = vld [vmem:[#allocation2 + $0x114] sm:$0xf0]  ;;  %v7481_v58 = vld [vmem:[#allocation2 + $0x118] sm:$0xf0] }
 0x6f9   : > { %4693 = vmatpush.bf16.msrb.mxu0 %v7344_v18  ;;  %v7528_v13 = vor.u32 %v8134_v8, %v7527_v5  ;;  %v7532_v18 = vor.u32 %v8132_v10, %v7529_v14  ;;  %v7480_v46 = vor.u32 %v8122_v53, %v7479_v63  ;;  %v8172_v5 = vld [vmem:[%s10938_s12 + $0xa8] sm:$0xff]  ;;  %v8171_v10 = vld [vmem:[%s10938_s12 + $0xa0] sm:$0xff] }
 0x6fa   : > { %v4305_v7 = vpop.f32.mrf.mxu0  ;;  %v4324_v19 = vpop.f32.mrf.mxu1  ;;  %4977 = vmatpush.bf16.msra.mxu2 %v7560_v35  ;;  %v8180_v8 = vld [vmem:[%s10938_s12 + $0xe8] sm:$0xff]  ;;  %v8179_v14 = vld [vmem:[%s10938_s12 + $0xe0] sm:$0xff] }
 0x6fb   : > { %v4306_v45 = vadd.f32 %v4305_v7, %v10777_v27  ;;  %v4341_v3 = vpack.c.bf16 %v4324_v19, %v4324_v19  ;;  %v7348_v27 = vor.u32 %v8087_v44, %v7345_v0  ;;  %v7544_v7 = vor.u32 %v8138_v6, %v7543_v9  ;;  %v8136_v19 = vld [vmem:[#allocation2 + $0x18c] sm:$0xf]  ;;  %v7519_v44 = vld [vmem:[#allocation2 + $0x160] sm:$0xf]  ;;  %v8133_v0 = vld [vmem:[#allocation2 + $0x16c] sm:$0xf0] }
 0x6fc   : > { %4732 = vmatpush.bf16.msra.mxu1 %v7356_v21  ;;  %v7548_v15 = vor.u32 %v8136_v19, %v7545_v61  ;;  %v8128_v21 = vld [vmem:[#allocation2 + $0x14c] sm:$0xf]  ;;  %v8174_v19 = vld [vmem:[%s10938_s12 + $0xb8] sm:$0xff] }
 0x6fd   : > { %v10782_v17 = vadd.f32 %v4306_v45, %v10775_v23  ;;  %4467 = vmatmul.bf16.vlgmr.msrb.gmra.mxu1 %v4341_v3  ;;  %v7596_v23 = vor.u32 %v8148_v29, %v7593_v22  ;;  %4706 = vmatpush.bf16.msra.mxu3 %v7348_v27  ;;  %v7520_v45 = vor.u32 %v8133_v0, %v7519_v44  ;;  %v7521_v3 = vld [vmem:[#allocation2 + $0x170] sm:$0xf0]  ;;  %v7511_v29 = vld [vmem:[#allocation2 + $0x148] sm:$0xf]  ;;  %v8130_v22 = vld [vmem:[#allocation2 + $0x154] sm:$0xf0] }
 0x6fe   : > { %4949 = vmatpush.bf16.msra.mxu0 %v7584_v32  ;;  %4978 = vmatpush.bf16.msra.mxu2 %v7544_v7  ;;  %v7524_v12 = vor.u32 %v8131_v24, %v7521_v3  ;;  %v7504_v27 = vor.u32 %v8129_v20, %v7503_v16  ;;  %v7512_v32 = vor.u32 %v8130_v22, %v7511_v29  ;;  %v8158_v7 = vld [vmem:[%s10938_s12 + $0x38] sm:$0xff]  ;;  %v8165_v44 = vld [vmem:[%s10938_s12 + $0x70] sm:$0xff]  ;;  %v8164_v3 = vld [vmem:[%s10938_s12 + $0x68] sm:$0xff] }
 0x6ff   : > { %v8182_v61 = vld [vmem:[%s10938_s12 + $0xf8] sm:$0xff]  ;;  %v8173_v0 = vld [vmem:[%s10938_s12 + $0xb0] sm:$0xff]  ;;  %v8152_v22 = vld [vmem:[%s10938_s12 + $0x8] sm:$0xff] }
 0x700   : > { %4988 = vmatpush.bf16.msrb.mxu1 %v7596_v23  ;;  %v8125_v23 = vld [vmem:[#allocation2 + $0x12c] sm:$0xf0]  ;;  %v8154_v16 = vld [vmem:[%s10938_s12 + $0x18] sm:$0xff] }
 0x701   : > { %4962 = vmatpush.bf16.msrb.mxu3 %v7588_v30  ;;  %v7513_v30 = vld [vmem:[#allocation2 + $0x158] sm:$0xf0]  ;;  %v7488_v38 = vor.u32 %v8125_v23, %v7487_v56  ;;  %v8181_v24 = vld [vmem:[%s10938_s12 + $0xf0] sm:$0xff]  ;;  %v8151_v56 = vld [vmem:[%s10938_s12] sm:$0xff] }
 0x702   : > { %v4326_v31 = vpop.f32.mrf.mxu1  ;;  %v4307_v36 = vpop.f32.mrf.mxu0  ;;  %4950 = vmatpush.bf16.msra.mxu0 %v7568_v55  ;;  %4979 = vmatpush.bf16.msra.mxu2 %v7528_v13  ;;  %v8126_v55 = vld [vmem:[#allocation2 + $0x134] sm:$0xf0]  ;;  %v8163_v13 = vld [vmem:[%s10938_s12 + $0x60] sm:$0xff]  ;;  %v8177_v29 = vld [vmem:[%s10938_s12 + $0xd0] sm:$0xff] }
 0x703   : > { %v7516_v31 = vor.u32 %v8128_v21, %v7513_v30  ;;  %v8123_v36 = vld [vmem:[#allocation2 + $0x124] sm:$0xf]  ;;  %v7496_v48 = vor.u32 %v8126_v55, %v7495_v37  ;;  %v8170_v20 = vld [vmem:[%s10938_s12 + $0x98] sm:$0xff]  ;;  %v8160_v21 = vld [vmem:[%s10938_s12 + $0x48] sm:$0xff] }
 0x704   : > { %4989 = vmatpush.bf16.msrb.mxu1 %v7580_v62  ;;  %v7492_v42 = vor.u32 %v8123_v36, %v7489_v2  ;;  %v8119_v62 = vld [vmem:[#allocation2 + $0x104] sm:$0xf]  ;;  %v8176_v30 = vld [vmem:[%s10938_s12 + $0xc8] sm:$0xff] }
 0x705   : > { %4963 = vmatpush.bf16.msrb.mxu3 %v7572_v43  ;;  %v7471_v43 = vld [vmem:[#allocation2 + $0x100] sm:$0xf] }
 0x706   : > { %4951 = vmatpush.bf16.msra.mxu0 %v7552_v51  ;;  %4980 = vmatpush.bf16.msra.mxu2 %v7512_v32  ;;  %v8120_v51 = vld [vmem:[#allocation2 + $0x10c] sm:$0xf]  ;;  %v7472_v52 = vor.u32 %v8121_v47, %v7471_v43  ;;  %v8159_v23 = vld [vmem:[%s10938_s12 + $0x40] sm:$0xff] }
 0x707   : > { %v7484_v34 = vor.u32 %v8120_v51, %v7481_v58  ;;  %v8168_v32 = vld [vmem:[%s10938_s12 + $0x88] sm:$0xff]  ;;  %v8175_v2 = vld [vmem:[%s10938_s12 + $0xc0] sm:$0xff] }
 0x708   : > { %4990 = vmatpush.bf16.msrb.mxu1 %v7564_v11  ;;  %v4492_v58 = vld [vmem:[%s10937_s11] sm:$0xf] }
 0x709   : > { %4964 = vmatpush.bf16.msrb.mxu3 %v7556_v59  ;;  %v7476_v59 = vor.u32 %v8119_v62, %v7473_v50 }
 0x70a   : > { %4952 = vmatpush.bf16.msra.mxu0 %v7536_v39  ;;  %4981 = vmatpush.bf16.msra.mxu2 %v7496_v48 }
 0x70c   : > { %4991 = vmatpush.bf16.msrb.mxu1 %v7548_v15  ;;  %v8157_v15 = vld [vmem:[%s10938_s12 + $0x30] sm:$0xff] }
 0x70d   : > { %4965 = vmatpush.bf16.msrb.mxu3 %v7540_v25 }
 0x70e   : > { %4953 = vmatpush.bf16.msra.mxu0 %v7520_v45  ;;  %4982 = vmatpush.bf16.msra.mxu2 %v7480_v46  ;;  %v8156_v45 = vld [vmem:[%s10938_s12 + $0x28] sm:$0xff] }
 0x710   : > { %4992 = vmatpush.bf16.msrb.mxu1 %v7532_v18  ;;  %v8162_v18 = vld [vmem:[%s10938_s12 + $0x58] sm:$0xff] }
 0x711   : > { %4966 = vmatpush.bf16.msrb.mxu3 %v7524_v12  ;;  %v8155_v12 = vld [vmem:[%s10938_s12 + $0x20] sm:$0xff] }
 0x712   : > { %4954 = vmatpush.bf16.msra.mxu0 %v7504_v27  ;;  %v8161_v27 = vld [vmem:[%s10938_s12 + $0x50] sm:$0xff] }
 0x714   : > { %4993 = vmatpush.bf16.msrb.mxu1 %v7516_v31  ;;  %v8167_v31 = vld [vmem:[%s10938_s12 + $0x80] sm:$0xff] }
 0x715   : > { %4967 = vmatpush.bf16.msrb.mxu3 %v7508_v28  ;;  %v8169_v28 = vld [vmem:[%s10938_s12 + $0x90] sm:$0xff] }
 0x716   : > { %4955 = vmatpush.bf16.msra.mxu0 %v7488_v38 }
 0x718   : > { %4994 = vmatpush.bf16.msrb.mxu1 %v7500_v33 }
 0x719   : > { %4968 = vmatpush.bf16.msrb.mxu3 %v7492_v42 }
 0x71a   : > { %4956 = vmatpush.bf16.msra.mxu0 %v7472_v52 }
 0x71c   : > { %4995 = vmatpush.bf16.msrb.mxu1 %v7484_v34 }
 0x71d   : > { %4969 = vmatpush.bf16.msrb.mxu3 %v7476_v59 }
 0x774   : > { %v4481_v54 = vpop.f32.mrf.mxu2 }
 0x77a   : > { %v4468_v35 = vpop.f32.mrf.mxu1 }
 0x77b   : > { %v4482_v11 = vadd.f32 %v4481_v54, %v4468_v35 }
 0x77c   : > { %v4483_v49 = vpop.f32.mrf.mxu2 }
 0x77d   : > { %v4485_v60 = vadd.f32 %v4482_v11, %v10782_v17  ;;  %v8166_v17 = vld [vmem:[%s10938_s12 + $0x78] sm:$0xff] }
 0x77f   : > { %v4490_v39 = vadd.f32 %v8244_v57, %v4485_v60 }
 0x781   : > { %v4491_v4 = vmax.f32 %v4490_v39, 0.0 }
 0x782   : > { %v4470_v9 = vpop.f32.mrf.mxu1 }
 0x783   : > { %v4493_v6 = vpack.c.bf16 %v4491_v4, %v4491_v4 }
 0x785   : > { %4694 = vmatmul.bf16.vlgmr.msrb.gmra.mxu0 %v4493_v6  ;;  %4707 = vmatmul.bf16.vlgmr.msra.gmra.mxu3 %v4493_v6  ;;  %v4786_v25 = vshrl.u32 %v4493_v6, 16 }
 0x786   : > { %4720 = vmatmul.bf16.vlgmr.msrb.gmra.mxu2 %v4493_v6  ;;  %4733 = vmatmul.bf16.vlgmr.msra.gmra.mxu1 %v4493_v6 }
 0x787   : > { %5284 = vmatpush.bf16.msrb.mxu0 %v8158_v7  ;;  %5297 = vmatpush.bf16.msra.mxu3 %v8166_v17 }
 0x788   : > { %5310 = vmatpush.bf16.msrb.mxu2 %v8174_v19  ;;  %5323 = vmatpush.bf16.msra.mxu1 %v8182_v61 }
 0x78b   : > { %5285 = vmatpush.bf16.msrb.mxu0 %v8157_v15  ;;  %5298 = vmatpush.bf16.msra.mxu3 %v8165_v44 }
 0x78c   : > { %5311 = vmatpush.bf16.msrb.mxu2 %v8173_v0  ;;  %5324 = vmatpush.bf16.msra.mxu1 %v8181_v24 }
 0x78f   : > { %5286 = vmatpush.bf16.msrb.mxu0 %v8156_v45  ;;  %5299 = vmatpush.bf16.msra.mxu3 %v8164_v3 }
 0x790   : > { %5312 = vmatpush.bf16.msrb.mxu2 %v8172_v5  ;;  %5325 = vmatpush.bf16.msra.mxu1 %v8180_v8  ;;  %v5091_v5 = vld [vmem:[%s10939_s13] sm:$0x1] }
 0x793   : > { %5287 = vmatpush.bf16.msrb.mxu0 %v8155_v12  ;;  %5300 = vmatpush.bf16.msra.mxu3 %v8163_v13 }
 0x794   : > { %5313 = vmatpush.bf16.msrb.mxu2 %v8171_v10  ;;  %5326 = vmatpush.bf16.msra.mxu1 %v8179_v14 }
 0x795   : > { %4957 = vmatmul.bf16.vlgmr.msra.gmra.mxu0 %v4786_v25  ;;  %4970 = vmatmul.bf16.vlgmr.msrb.gmra.mxu3 %v4786_v25 }
 0x796   : > { %4983 = vmatmul.bf16.vlgmr.msra.gmra.mxu2 %v4786_v25  ;;  %4996 = vmatmul.bf16.vlgmr.msrb.gmra.mxu1 %v4786_v25 }
 0x797   : > { %5288 = vmatpush.bf16.msrb.mxu0 %v8154_v16  ;;  %5301 = vmatpush.bf16.msra.mxu3 %v8162_v18 }
 0x798   : > { %5314 = vmatpush.bf16.msrb.mxu2 %v8170_v20  ;;  %5327 = vmatpush.bf16.msra.mxu1 %v8178_v26 }
 0x79b   : > { %5289 = vmatpush.bf16.msrb.mxu0 %v8153_v1  ;;  %5302 = vmatpush.bf16.msra.mxu3 %v8161_v27 }
 0x79c   : > { %5315 = vmatpush.bf16.msrb.mxu2 %v8169_v28  ;;  %5328 = vmatpush.bf16.msra.mxu1 %v8177_v29 }
 0x79f   : > { %5290 = vmatpush.bf16.msrb.mxu0 %v8152_v22  ;;  %5303 = vmatpush.bf16.msra.mxu3 %v8160_v21 }
 0x7a0   : > { %5316 = vmatpush.bf16.msrb.mxu2 %v8168_v32  ;;  %5329 = vmatpush.bf16.msra.mxu1 %v8176_v30 }
 0x7a3   : > { %5291 = vmatpush.bf16.msrb.mxu0 %v8151_v56  ;;  %5304 = vmatpush.bf16.msra.mxu3 %v8159_v23 }
 0x7a4   : > { %5317 = vmatpush.bf16.msrb.mxu2 %v8167_v31  ;;  %5330 = vmatpush.bf16.msra.mxu1 %v8175_v2 }
 0x802   : > { %v4695_v36 = vpop.f32.mrf.mxu0 }
 0x803   : > { %v4734_v37 = vpop.f32.mrf.mxu1 }
 0x804   : > { %v4744_v50 = vrot.slane %v4734_v37, 5 }
 0x808   : > { %v4708_v38 = vpop.f32.mrf.mxu3 }
 0x809   : > { %v4721_v55 = vpop.f32.mrf.mxu2  ;;  %v4742_v47 = vrot.slane %v4708_v38, 7 }
 0x80a   : > { %v4697_v41 = vpop.f32.mrf.mxu0  ;;  %v4743_v48 = vrot.slane %v4721_v55, 6 }
 0x80b   : > { %v4736_v40 = vpop.f32.mrf.mxu1  ;;  %v4745_v63 = vsel %vm1851_vm3, %v4695_v36, %v4742_v47 }
 0x80c   : > { %v4747_v53 = vsel %vm4746_vm9, %v4743_v48, %v4744_v50 }
 0x80d   : > { %v4749_v52 = vsel %vm4748_vm10, %v4745_v63, %v4747_v53 }
 0x80e   : > { %v4751_v49 = vadd.f32 %v4749_v52, %v4492_v58 }
 0x810   : > { %v4710_v42 = vpop.f32.mrf.mxu3 }
 0x811   : > { %v4723_v43 = vpop.f32.mrf.mxu2 }
 0x812   : > { %v4958_v33 = vpop.f32.mrf.mxu0 }
 0x813   : > { %v4997_v62 = vpop.f32.mrf.mxu1 }
 0x814   : > { %v5007_v34 = vrot.slane %v4997_v62, 5 }
 0x818   : > { %v4971_v51 = vpop.f32.mrf.mxu3 }
 0x819   : > { %v5005_v59 = vrot.slane %v4971_v51, 7  ;;  %v4984_v46 = vpop.f32.mrf.mxu2 }
 0x81a   : > { %v5006_v54 = vrot.slane %v4984_v46, 6  ;;  %v4960_v35 = vpop.f32.mrf.mxu0 }
 0x81b   : > { %v5008_v11 = vsel %vm1851_vm3, %v4958_v33, %v5005_v59  ;;  %v4999_v57 = vpop.f32.mrf.mxu1 }
 0x81c   : > { %v5009_v60 = vsel %vm4746_vm9, %v5006_v54, %v5007_v34 }
 0x81d   : > { %v5010_v39 = vsel %vm4748_vm10, %v5008_v11, %v5009_v60 }
 0x81e   : > { %v5012_v4 = vadd.f32 %v5010_v39, %v4751_v49 }
 0x820   : > { %v5013_v9 = vmax.f32 %v5012_v4, 0.0  ;;  %v4973_v6 = vpop.f32.mrf.mxu3 }
 0x821   : > { %v4986_v25 = vpop.f32.mrf.mxu2 }
 0x822   : > { %v5015_v7 = vperm.slane %v5013_v9, 0  ;;  %v5016_v17 = vperm.slane %v5013_v9, 1  ;;  %v5017_v19 = vperm.slane %v5013_v9, 2  ;;  %v5018_v61 = vperm.slane %v5013_v9, 3 }
 0x824   : > { %v5023_v15 = vpack.c.bf16 %v5015_v7, %v5015_v7  ;;  %v5024_v44 = vpack.c.bf16 %v5016_v17, %v5016_v17  ;;  %v5025_v0 = vpack.c.bf16 %v5017_v19, %v5017_v19  ;;  %v5026_v24 = vpack.c.bf16 %v5018_v61, %v5018_v61 }
 0x826   : > { %5292 = vmatmul.bf16.vlgmr.msrb.gmra.mxu0 %v5023_v15  ;;  %5305 = vmatmul.bf16.vlgmr.msra.gmra.mxu3 %v5024_v44 }
 0x827   : > { %5318 = vmatmul.bf16.vlgmr.msrb.gmra.mxu2 %v5025_v0  ;;  %5331 = vmatmul.bf16.vlgmr.msra.gmra.mxu1 %v5026_v24 }
 0x8a3   : > { %v5293_v45 = vpop.f32.mrf.mxu0 }
 0x8a4   : > { %v5332_v3 = vpop.f32.mrf.mxu1  ;;  %v5294_v8 = vadd.f32 %v5293_v45, %v5091_v5 }
 0x8a9   : > { %v5306_v12 = vpop.f32.mrf.mxu3 }
 0x8aa   : > { %v5307_v13 = vadd.f32 %v5306_v12, %v5294_v8  ;;  %v5319_v10 = vpop.f32.mrf.mxu2 }
 0x8ab   : > { %v5295_v14 = vpop.f32.mrf.mxu0 }
 0x8ac   : > { %v5320_v16 = vadd.f32 %v5319_v10, %v5307_v13  ;;  %v5334_v18 = vpop.f32.mrf.mxu1 }
 0x8ae   : > { %v5333_v20 = vadd.f32 %v5332_v3, %v5320_v16 }
 0x8b0   : > { %5337 = vst.msk [vmem:[%s477_s21] sm:$0x1] %vm5336_vm11, %v5333_v20 }
 0x8b1   : > { %v5308_v26 = vpop.f32.mrf.mxu3 }
 0x8b2   : > { %8302 = shalt.err (!%p8299_p8)
}
 0x8b3   : > { %8195 = dma.vmem_to_hbm [thread:$0]  (%p8460_p5), %s5350_s0, 16, %s5352_s22, %s5339_s10   ;;  %v5321_v1 = vpop.f32.mrf.mxu2 }
 0x8b4 PF: > { %p8207_p9 = scmp.ge.s32.totalorder %s8341_s16, 2  ;;  %s5363_s18 = sand.u32 1, %s8329_s29  }
 0x8b5   : > { %s5364_s19 = scalar_lea.sflag [#allocation4], %s5363_s18 }
 0x8b6   : > { %p8202_p10 = pnand %p8207_p9, %p8464_p6 }
 0x8b8   : > { %p8203_p11 = pneg %p8202_p10 }
 0x8ba   : > { %8324 = dma.done.wait (%p8203_p11), %s5364_s19, 16  }
 0x8bb   : > { %8326 = vsyncadd (%p8203_p11), %s5364_s19, 4294967280  ;;  %s10953_s16 = sld [smem:[#allocation9_spill]]  ;;  %s10956_s29 = smov %s8333_s30 }
 0x8bc   : > { %s10954_s21 = sld [smem:[#allocation8_spill]] }
 0x8bd   : > { %s10955_s15 = sld [smem:[#allocation10_spill]] }
 0x8c1   : > { %p25_p12 = scmp.ge.s32.totalorder %s10953_s16, 4  }
 0x8c2   : > { %s10957_s30 = smov %s10954_s21 }
 0x8c3   :  { %27 = sbr.rel (!%p25_p12) target bundleno = 7 (0x7), region = 141 }
 0x8c8   :  { %5369 = vsyncpa [#allocation3], 1 }
 0x8c9   :  { %5371 = vsyncpa [#allocation3 + $0x1], 1 }
 0x8ca   :  { %5372 = vsyncpa [#allocation4], 1 }
 0x8cb   :  { %5374 = vsyncpa [#allocation4 + $0x1], 1 }

</bundles_post_ra>
